<compile_context>
chip_gen: v6e
topology: v6e:2x2x1
jax: 0.10.0
libtpu: 0.0.40
codegen_flags: <defaults>
</compile_context>

<pallas_src>
import functools

import jax
import jax.numpy as jnp
from jax.experimental import pallas as pl
from jax.experimental.pallas import tpu as pltpu

EPS = 1e-5
LANE = 128


# ----------------------------- helpers -----------------------------

def _pad_to_lane(c):
    return ((c + LANE - 1) // LANE) * LANE


@functools.lru_cache(maxsize=1)
def _vmem_limit_bytes():
    # ~25% headroom below physical VMEM (v5e/v6e: 128 MiB, v7x: 64 MiB).
    try:
        cap = int(pltpu.get_tpu_info().vmem_capacity_bytes)
    except Exception:
        cap = 64 * 1024 * 1024
    return int(max(32 * 1024 * 1024, min(cap * 3 // 4, 100 * 1024 * 1024)))


def _compiler_params(semantics):
    return pltpu.CompilerParams(dimension_semantics=semantics,
                                vmem_limit_bytes=_vmem_limit_bytes())


def _pick_tm(m, c_max):
    """Channel-aware M tile: keep a (tm, c_max) f32 tile around <= 4 MiB."""
    cap = max(8, min(1024, (4 * 1024 * 1024) // (4 * max(c_max, 1))))
    best = None
    t = 8
    while t <= min(cap, m):
        if m % t == 0:
            best = t
        t *= 2
    if best is None:
        # TODO(synk): pl.cdiv grid + masked tail instead of one big tile.
        best = m
    return best


def _w1x1(w, cin_p, cout_p):
    # (Cout, Cin, 1, 1) -> (cin_p, cout_p) bf16, zero padded
    cout, cin = w.shape[0], w.shape[1]
    mat = jnp.transpose(w[:, :, 0, 0], (1, 0))
    mat = jnp.pad(mat, ((0, cin_p - cin), (0, cout_p - cout)))
    return mat.astype(jnp.bfloat16)


def _w3x3_taps(w, cin_p, cout_p):
    # (Cout, Cin, 3, 3) -> (9, cin_p, cout_p) bf16, tap index = kh*3 + kw
    cout, cin = w.shape[0], w.shape[1]
    mat = jnp.transpose(w, (2, 3, 1, 0)).reshape(9, cin, cout)
    mat = jnp.pad(mat, ((0, 0), (0, cin_p - cin), (0, cout_p - cout)))
    return mat.astype(jnp.bfloat16)


# ----------------------------- kernels -----------------------------

def _stage1_kernel(x_ref, w1_ref, wsc_ref, y1_ref, ysc_ref,
                   s1_sum_ref, s1_sq_ref, ssc_sum_ref, ssc_sq_ref):
    """Fused: y1 = x @ W1, ysc = x @ Wsc (shared x DMA) + per-channel sum/sumsq.

    Outputs stored bf16; stats accumulated from the f32 matmul results."""
    i = pl.program_id(0)
    x = x_ref[...]                                                   # (tm, cin_p) bf16
    y1 = jnp.dot(x, w1_ref[...], preferred_element_type=jnp.float32)
    ysc = jnp.dot(x, wsc_ref[...], preferred_element_type=jnp.float32)
    y1_ref[...] = y1.astype(y1_ref.dtype)
    ysc_ref[...] = ysc.astype(ysc_ref.dtype)

    @pl.when(i == 0)
    def _():
        s1_sum_ref[...] = jnp.zeros_like(s1_sum_ref)
        s1_sq_ref[...] = jnp.zeros_like(s1_sq_ref)
        ssc_sum_ref[...] = jnp.zeros_like(ssc_sum_ref)
        ssc_sq_ref[...] = jnp.zeros_like(ssc_sq_ref)

    s1_sum_ref[...] += jnp.sum(y1, axis=0, keepdims=True)
    s1_sq_ref[...] += jnp.sum(y1 * y1, axis=0, keepdims=True)
    ssc_sum_ref[...] += jnp.sum(ysc, axis=0, keepdims=True)
    ssc_sq_ref[...] += jnp.sum(ysc * ysc, axis=0, keepdims=True)


def _conv3x3_bn_kernel(y1_ref, s1_sum_ref, s1_sq_ref, w_ref,
                       y2_ref, sum_ref, sq_ref, hbuf, acc_ref, *, ho, wo, count):
    """Fused BN1+ReLU + 3x3 conv + BN2 stats, one whole image per grid step.

    The spatially zero-padded, normalized image is built in a VMEM scratch; the 9
    taps are big (ho*wo, C) matmuls accumulated into a VMEM scratch accumulator."""
    b = pl.program_id(0)
    c_in = y1_ref.shape[-1]

    @pl.when(b == 0)
    def _():
        hbuf[...] = jnp.zeros_like(hbuf)          # border stays zero across images
        sum_ref[...] = jnp.zeros_like(sum_ref)
        sq_ref[...] = jnp.zeros_like(sq_ref)

    # BN1 + ReLU fused (stats are inputs, computed by stage1).
    inv_n = 1.0 / count
    mean = s1_sum_ref[...] * inv_n
    var = s1_sq_ref[...] * inv_n - mean * mean
    inv = jax.lax.rsqrt(var + EPS)
    h = jnp.maximum((y1_ref[...].astype(jnp.float32) - mean) * inv, 0.0)  # (ho*wo, C)
    hbuf[1:ho + 1, 1:wo + 1, :] = h.reshape(ho, wo, c_in)

    # 9 taps streamed as whole-image matmuls into the VMEM accumulator.
    acc_ref[...] = jnp.zeros_like(acc_ref)
    for kh in range(3):
        for kw in range(3):
            win = hbuf[kh:kh + ho, kw:kw + wo, :].reshape(ho * wo, c_in)
            acc_ref[...] += jnp.dot(win.astype(jnp.bfloat16), w_ref[kh * 3 + kw],
                                    preferred_element_type=jnp.float32)

    acc = acc_ref[...]
    y2_ref[...] = acc.astype(y2_ref.dtype)
    sum_ref[...] += jnp.sum(acc, axis=0, keepdims=True)
    sq_ref[...] += jnp.sum(acc * acc, axis=0, keepdims=True)


def _stage3_kernel(y2_ref, s2_sum_ref, s2_sq_ref, w3_ref,
                   y3_ref, s3_sum_ref, s3_sq_ref, *, count):
    """Fused: BN2 + ReLU on y2 (bf16 in), matmul with W3, BN3 stats accumulation."""
    i = pl.program_id(0)
    inv_n = 1.0 / count
    mean = s2_sum_ref[...] * inv_n
    var = s2_sq_ref[...] * inv_n - mean * mean
    inv = jax.lax.rsqrt(var + EPS)
    h2 = jnp.maximum((y2_ref[...].astype(jnp.float32) - mean) * inv, 0.0)
    y3 = jnp.dot(h2.astype(jnp.bfloat16), w3_ref[...],
                 preferred_element_type=jnp.float32)
    y3_ref[...] = y3.astype(y3_ref.dtype)

    @pl.when(i == 0)
    def _():
        s3_sum_ref[...] = jnp.zeros_like(s3_sum_ref)
        s3_sq_ref[...] = jnp.zeros_like(s3_sq_ref)

    s3_sum_ref[...] += jnp.sum(y3, axis=0, keepdims=True)
    s3_sq_ref[...] += jnp.sum(y3 * y3, axis=0, keepdims=True)


def _final_kernel(y3_ref, s3_sum_ref, s3_sq_ref, ysc_ref, ssc_sum_ref, ssc_sq_ref,
                  o_ref, *, count):
    """BN3(y3) + BN_sc(ysc), residual add, final ReLU — one lane-dense pass."""
    inv_n = 1.0 / count

    def norm(y, sm, sq):
        mean = sm * inv_n
        var = sq * inv_n - mean * mean
        return (y - mean) * jax.lax.rsqrt(var + EPS)

    h3 = norm(y3_ref[...].astype(jnp.float32), s3_sum_ref[...], s3_sq_ref[...])
    sc = norm(ysc_ref[...].astype(jnp.float32), ssc_sum_ref[...], ssc_sq_ref[...])
    o_ref[...] = jnp.maximum(h3 + sc, 0.0)


# ----------------------------- pallas_call wrappers -----------------------------

def _stage1(xs2, w1m, wscm, tm):
    m, cin_p = xs2.shape
    cm_p, co_p = w1m.shape[1], wscm.shape[1]
    return pl.pallas_call(
        _stage1_kernel,
        grid=(m // tm,),
        in_specs=[pl.BlockSpec((tm, cin_p), lambda i: (i, 0)),
                  pl.BlockSpec((cin_p, cm_p), lambda i: (0, 0)),
                  pl.BlockSpec((cin_p, co_p), lambda i: (0, 0))],
        out_specs=(pl.BlockSpec((tm, cm_p), lambda i: (i, 0)),
                   pl.BlockSpec((tm, co_p), lambda i: (i, 0)),
                   pl.BlockSpec((1, cm_p), lambda i: (0, 0)),
                   pl.BlockSpec((1, cm_p), lambda i: (0, 0)),
                   pl.BlockSpec((1, co_p), lambda i: (0, 0)),
                   pl.BlockSpec((1, co_p), lambda i: (0, 0))),
        out_shape=(jax.ShapeDtypeStruct((m, cm_p), jnp.bfloat16),
                   jax.ShapeDtypeStruct((m, co_p), jnp.bfloat16),
                   jax.ShapeDtypeStruct((1, cm_p), jnp.float32),
                   jax.ShapeDtypeStruct((1, cm_p), jnp.float32),
                   jax.ShapeDtypeStruct((1, co_p), jnp.float32),
                   jax.ShapeDtypeStruct((1, co_p), jnp.float32)),
        compiler_params=_compiler_params(("arbitrary",)),
        cost_estimate=pl.CostEstimate(
            flops=2 * m * cin_p * (cm_p + co_p), transcendentals=0,
            bytes_accessed=2 * m * (cin_p + cm_p + co_p)),
    )(xs2, w1m, wscm)


def _conv3x3(y1, s1_sum, s1_sq, w2t, n_img, ho, wo, count):
    m, c = y1.shape
    cout = w2t.shape[-1]
    mi = ho * wo
    return pl.pallas_call(
        functools.partial(_conv3x3_bn_kernel, ho=ho, wo=wo, count=count),
        grid=(n_img,),
        in_specs=[pl.BlockSpec((mi, c), lambda q: (q, 0)),
                  pl.BlockSpec((1, c), lambda q: (0, 0)),
                  pl.BlockSpec((1, c), lambda q: (0, 0)),
                  pl.BlockSpec((9, c, cout), lambda q: (0, 0, 0))],
        out_specs=(pl.BlockSpec((mi, cout), lambda q: (q, 0)),
                   pl.BlockSpec((1, cout), lambda q: (0, 0)),
                   pl.BlockSpec((1, cout), lambda q: (0, 0))),
        out_shape=(jax.ShapeDtypeStruct((m, cout), jnp.bfloat16),
                   jax.ShapeDtypeStruct((1, cout), jnp.float32),
                   jax.ShapeDtypeStruct((1, cout), jnp.float32)),
        scratch_shapes=[pltpu.VMEM((ho + 2, wo + 2, c), jnp.float32),
                        pltpu.VMEM((mi, cout), jnp.float32)],
        compiler_params=_compiler_params(("arbitrary",)),
        cost_estimate=pl.CostEstimate(
            flops=2 * m * 9 * c * cout, transcendentals=c,
            bytes_accessed=2 * m * (c + cout)),
    )(y1, s1_sum, s1_sq, w2t)


def _stage3(y2, s2_sum, s2_sq, w3m, count, tm):
    m, cm_p = y2.shape
    co_p = w3m.shape[1]
    return pl.pallas_call(
        functools.partial(_stage3_kernel, count=count),
        grid=(m // tm,),
        in_specs=[pl.BlockSpec((tm, cm_p), lambda i: (i, 0)),
                  pl.BlockSpec((1, cm_p), lambda i: (0, 0)),
                  pl.BlockSpec((1, cm_p), lambda i: (0, 0)),
                  pl.BlockSpec((cm_p, co_p), lambda i: (0, 0))],
        out_specs=(pl.BlockSpec((tm, co_p), lambda i: (i, 0)),
                   pl.BlockSpec((1, co_p), lambda i: (0, 0)),
                   pl.BlockSpec((1, co_p), lambda i: (0, 0))),
        out_shape=(jax.ShapeDtypeStruct((m, co_p), jnp.bfloat16),
                   jax.ShapeDtypeStruct((1, co_p), jnp.float32),
                   jax.ShapeDtypeStruct((1, co_p), jnp.float32)),
        compiler_params=_compiler_params(("arbitrary",)),
        cost_estimate=pl.CostEstimate(
            flops=2 * m * cm_p * co_p, transcendentals=cm_p,
            bytes_accessed=2 * m * (cm_p + co_p)),
    )(y2, s2_sum, s2_sq, w3m)


def _final(y3, s3_sum, s3_sq, ysc, ssc_sum, ssc_sq, count, tm):
    m, co_p = y3.shape
    return pl.pallas_call(
        functools.partial(_final_kernel, count=count),
        grid=(m // tm,),
        in_specs=[pl.BlockSpec((tm, co_p), lambda i: (i, 0)),
                  pl.BlockSpec((1, co_p), lambda i: (0, 0)),
                  pl.BlockSpec((1, co_p), lambda i: (0, 0)),
                  pl.BlockSpec((tm, co_p), lambda i: (i, 0)),
                  pl.BlockSpec((1, co_p), lambda i: (0, 0)),
                  pl.BlockSpec((1, co_p), lambda i: (0, 0))],
        out_specs=pl.BlockSpec((tm, co_p), lambda i: (i, 0)),
        out_shape=jax.ShapeDtypeStruct((m, co_p), jnp.float32),
        compiler_params=_compiler_params(("parallel",)),
    )(y3, s3_sum, s3_sq, ysc, ssc_sum, ssc_sq)


# ----------------------------- forward pass -----------------------------

@functools.partial(jax.jit, static_argnames=("s",))
def convolutional_block_forward(x_nchw, params, s=2):
    """params = (w1 (Cm,Ci,1,1), w2 (Cm,Cm,3,3), w3 (Co,Cm,1,1), w_sc (Co,Ci,1,1))."""
    w1, w2, w3, w_sc = params
    n, cin = x_nchw.shape[0], x_nchw.shape[1]
    cm, co = w1.shape[0], w3.shape[0]
    cin_p, cm_p, co_p = map(_pad_to_lane, (cin, cm, co))

    # TODO(synk): fold subsample/transpose/channel-pad into stage1's index_map.
    x = jnp.transpose(x_nchw, (0, 2, 3, 1)).astype(jnp.float32)[:, ::s, ::s, :]
    _, ho, wo, _ = x.shape
    assert wo % 8 == 0, "TODO(synk): 14x14 / 7x7 stages need a different tiling"
    m = n * ho * wo
    tm = _pick_tm(m, co_p)
    xs2 = jnp.pad(x, ((0, 0), (0, 0), (0, 0), (0, cin_p - cin)))
    xs2 = xs2.reshape(m, cin_p).astype(jnp.bfloat16)

    w1m = _w1x1(w1, cin_p, cm_p)
    wscm = _w1x1(w_sc, cin_p, co_p)
    w2t = _w3x3_taps(w2, cm_p, cm_p)
    w3m = _w1x1(w3, cm_p, co_p)

    # stage 1: fused main + shortcut 1x1 convs (shared x DMA) + BN stats (bf16 out)
    y1, ysc, s1_sum, s1_sq, ssc_sum, ssc_sq = _stage1(xs2, w1m, wscm, tm)

    # stage 2: fused BN1+ReLU + 3x3 conv (whole image per step) + BN2 stats
    y2, s2_sum, s2_sq = _conv3x3(y1, s1_sum, s1_sq, w2t, n, ho, wo, float(m))

    # stage 3: fused BN2+ReLU -> 1x1 conv -> BN3 stats
    y3, s3_sum, s3_sq = _stage3(y2, s2_sum, s2_sq, w3m, float(m), tm)

    # finalize: BN3 + BN_sc + residual add + ReLU in one lane-dense pass
    out = _final(y3, s3_sum, s3_sq, ysc, ssc_sum, ssc_sq, float(m), tm)

    out = out[:, :co].reshape(n, ho, wo, co)
    return jnp.transpose(out, (0, 3, 1, 2))                          # back to NCHW


# ----------------------------- reference (precision-matched) -----------------------------

def _round_bf16(a):
    return a.astype(jnp.bfloat16).astype(jnp.float32)


def _ref_forward(x, params, s=2):
    """Same math via lax.conv; conv operands bf16-rounded, f32 accumulation,
    one-pass f32 BN stats, normalization applied to the bf16-stored intermediates
    — mirroring the kernels, so the two agree to ~1e-3."""
    w1, w2, w3, w_sc = map(_round_bf16, params)
    xb = _round_bf16(x)

    def conv(xx, ww, stride, pad):
        return jax.lax.conv_general_dilated(
            xx, ww, (stride, stride), pad,
            dimension_numbers=('NCHW', 'OIHW', 'NCHW'),
            precision=jax.lax.Precision.HIGHEST)

    def bn_of_stored(y):
        mean = jnp.mean(y, axis=(0, 2, 3), keepdims=True)
        var = jnp.mean(y * y, axis=(0, 2, 3), keepdims=True) - mean * mean
        return (_round_bf16(y) - mean) * jax.lax.rsqrt(var + EPS)

    h = _round_bf16(jax.nn.relu(bn_of_stored(conv(xb, w1, s, 'VALID'))))
    h = _round_bf16(jax.nn.relu(bn_of_stored(conv(h, w2, 1, [(1, 1), (1, 1)]))))
    h = bn_of_stored(conv(h, w3, 1, 'VALID'))
    r = bn_of_stored(conv(xb, w_sc, s, 'VALID'))
    return jax.nn.relu(h + r)


# ----------------------------- main -----------------------------

if __name__ == "__main__":
    key = jax.random.PRNGKey(0)
    k_x, k1, k2, k3, k4 = jax.random.split(key, 5)

    # small shapes consistent with the module: N=2, cn_input=4, H=W=16
    cn_input, cn_middle, cn_output = 4, 8, 16
    x = jax.random.normal(k_x, (2, cn_input, 16, 16), dtype=jnp.float32)
    params = (
        0.1 * jax.random.normal(k1, (cn_middle, cn_input, 1, 1), dtype=jnp.float32),
        0.1 * jax.random.normal(k2, (cn_middle, cn_middle, 3, 3), dtype=jnp.float32),
        0.1 * jax.random.normal(k3, (cn_output, cn_middle, 1, 1), dtype=jnp.float32),
        0.1 * jax.random.normal(k4, (cn_output, cn_input, 1, 1), dtype=jnp.float32),
    )

    for s in (2, 1):   # s=2 (layer3/5/7-style) and s=1 (layer1-style c_block(64,64,256,1))
        out = jax.block_until_ready(convolutional_block_forward(x, params, s=s))
        ref = jax.block_until_ready(_ref_forward(x, params, s=s))
        assert out.shape == ref.shape == (2, cn_output, 16 // s, 16 // s), (s, out.shape)
        max_err = float(jnp.max(jnp.abs(out - ref)))
        assert jnp.allclose(out, ref, atol=1e-2, rtol=1e-2), (s, max_err)

    print("KERNEL_OK")
</pallas_src>

<mosaic_0001>
module attributes {stable_mosaic.version = 11 : i64} {
  func.func @_stage1_kernel(%arg0: i32, %arg1: memref<128x128xbf16, #tpu.memory_space<vmem>>, %arg2: memref<128x128xbf16, #tpu.memory_space<vmem>>, %arg3: memref<128x128xbf16, #tpu.memory_space<vmem>>, %arg4: memref<128x128xbf16, #tpu.memory_space<vmem>>, %arg5: memref<128x128xbf16, #tpu.memory_space<vmem>>, %arg6: memref<1x128xf32, #tpu.memory_space<vmem>>, %arg7: memref<1x128xf32, #tpu.memory_space<vmem>>, %arg8: memref<1x128xf32, #tpu.memory_space<vmem>>, %arg9: memref<1x128xf32, #tpu.memory_space<vmem>>) attributes {dimension_semantics = [#tpu.dimension_semantics<arbitrary>], iteration_bounds = array<i64: 1>, scalar_prefetch = 0 : i64, scratch_operands = 0 : i64, tpu.core_type = #tpu.core_type<tc>, window_params = [{transform_indices = @transform_0, window_bounds = array<i64: 128, 128>}, {pipeline_mode = #tpu.pipeline_mode<synchronous>, transform_indices = @transform_1, window_bounds = array<i64: 128, 128>}, {pipeline_mode = #tpu.pipeline_mode<synchronous>, transform_indices = @transform_2, window_bounds = array<i64: 128, 128>}, {transform_indices = @transform_3, window_bounds = array<i64: 128, 128>}, {transform_indices = @transform_4, window_bounds = array<i64: 128, 128>}, {pipeline_mode = #tpu.pipeline_mode<synchronous>, transform_indices = @transform_5, window_bounds = array<i64: 1, 128>}, {pipeline_mode = #tpu.pipeline_mode<synchronous>, transform_indices = @transform_6, window_bounds = array<i64: 1, 128>}, {pipeline_mode = #tpu.pipeline_mode<synchronous>, transform_indices = @transform_7, window_bounds = array<i64: 1, 128>}, {pipeline_mode = #tpu.pipeline_mode<synchronous>, transform_indices = @transform_8, window_bounds = array<i64: 1, 128>}]} {
    %c0 = arith.constant 0 : index
    %c0_0 = arith.constant 0 : index
    %0 = vector.load %arg1[%c0, %c0_0] : memref<128x128xbf16, #tpu.memory_space<vmem>>, vector<128x128xbf16>
    %c0_1 = arith.constant 0 : index
    %c0_2 = arith.constant 0 : index
    %1 = vector.load %arg2[%c0_1, %c0_2] : memref<128x128xbf16, #tpu.memory_space<vmem>>, vector<128x128xbf16>
    %cst = arith.constant dense<0.000000e+00> : vector<128x128xf32>
    %2 = tpu.matmul %0, %1, %cst {dimension_numbers = #tpu.dot_dimension_numbers<[1], [0], [0], [1], [0, 0, 1, 1], [], []>} : vector<128x128xbf16>, vector<128x128xbf16>, vector<128x128xf32> -> vector<128x128xf32>
    %c0_3 = arith.constant 0 : index
    %c0_4 = arith.constant 0 : index
    %3 = vector.load %arg3[%c0_3, %c0_4] : memref<128x128xbf16, #tpu.memory_space<vmem>>, vector<128x128xbf16>
    %cst_5 = arith.constant dense<0.000000e+00> : vector<128x128xf32>
    %4 = tpu.matmul %0, %3, %cst_5 {dimension_numbers = #tpu.dot_dimension_numbers<[1], [0], [0], [1], [0, 0, 1, 1], [], []>} : vector<128x128xbf16>, vector<128x128xbf16>, vector<128x128xf32> -> vector<128x128xf32>
    %5 = arith.truncf %2 : vector<128x128xf32> to vector<128x128xbf16>
    %c0_6 = arith.constant 0 : index
    %c0_7 = arith.constant 0 : index
    %6 = vector.load %arg4[%c0_6, %c0_7] : memref<128x128xbf16, #tpu.memory_space<vmem>>, vector<128x128xbf16>
    tpu.vector_store %arg4[%c0_6, %c0_7], %5 {strides = array<i32>} : memref<128x128xbf16, #tpu.memory_space<vmem>>, vector<128x128xbf16>,
    %7 = arith.truncf %4 : vector<128x128xf32> to vector<128x128xbf16>
    %c0_8 = arith.constant 0 : index
    %c0_9 = arith.constant 0 : index
    %8 = vector.load %arg5[%c0_8, %c0_9] : memref<128x128xbf16, #tpu.memory_space<vmem>>, vector<128x128xbf16>
    tpu.vector_store %arg5[%c0_8, %c0_9], %7 {strides = array<i32>} : memref<128x128xbf16, #tpu.memory_space<vmem>>, vector<128x128xbf16>,
    %c0_i32 = arith.constant 0 : i32
    %9 = arith.cmpi eq, %arg0, %c0_i32 : i32
    %10 = arith.extui %9 : i1 to i32
    %c0_i32_10 = arith.constant 0 : i32
    %11 = arith.cmpi ne, %10, %c0_i32_10 : i32
    scf.if %11 {
      %cst_31 = arith.constant 0.000000e+00 : f32
      %34 = vector.broadcast %cst_31 : f32 to vector<1x128xf32>
      %c0_32 = arith.constant 0 : index
      %c0_33 = arith.constant 0 : index
      %35 = vector.load %arg6[%c0_32, %c0_33] : memref<1x128xf32, #tpu.memory_space<vmem>>, vector<1x128xf32>
      tpu.vector_store %arg6[%c0_32, %c0_33], %34 {strides = array<i32>} : memref<1x128xf32, #tpu.memory_space<vmem>>, vector<1x128xf32>,
      %cst_34 = arith.constant 0.000000e+00 : f32
      %36 = vector.broadcast %cst_34 : f32 to vector<1x128xf32>
      %c0_35 = arith.constant 0 : index
      %c0_36 = arith.constant 0 : index
      %37 = vector.load %arg7[%c0_35, %c0_36] : memref<1x128xf32, #tpu.memory_space<vmem>>, vector<1x128xf32>
      tpu.vector_store %arg7[%c0_35, %c0_36], %36 {strides = array<i32>} : memref<1x128xf32, #tpu.memory_space<vmem>>, vector<1x128xf32>,
      %cst_37 = arith.constant 0.000000e+00 : f32
      %38 = vector.broadcast %cst_37 : f32 to vector<1x128xf32>
      %c0_38 = arith.constant 0 : index
      %c0_39 = arith.constant 0 : index
      %39 = vector.load %arg8[%c0_38, %c0_39] : memref<1x128xf32, #tpu.memory_space<vmem>>, vector<1x128xf32>
      tpu.vector_store %arg8[%c0_38, %c0_39], %38 {strides = array<i32>} : memref<1x128xf32, #tpu.memory_space<vmem>>, vector<1x128xf32>,
      %cst_40 = arith.constant 0.000000e+00 : f32
      %40 = vector.broadcast %cst_40 : f32 to vector<1x128xf32>
      %c0_41 = arith.constant 0 : index
      %c0_42 = arith.constant 0 : index
      %41 = vector.load %arg9[%c0_41, %c0_42] : memref<1x128xf32, #tpu.memory_space<vmem>>, vector<1x128xf32>
      tpu.vector_store %arg9[%c0_41, %c0_42], %40 {strides = array<i32>} : memref<1x128xf32, #tpu.memory_space<vmem>>, vector<1x128xf32>,
    } else {
    }
    %c0_11 = arith.constant 0 : index
    %c0_12 = arith.constant 0 : index
    %12 = vector.load %arg6[%c0_11, %c0_12] : memref<1x128xf32, #tpu.memory_space<vmem>>, vector<1x128xf32>
    %cst_13 = arith.constant dense<0.000000e+00> : vector<128xf32>
    %13 = vector.multi_reduction <add>, %2, %cst_13 [0] : vector<128x128xf32> to vector<128xf32>
    %14 = vector.shape_cast %13 : vector<128xf32> to vector<1x128xf32>
    %15 = arith.addf %12, %14 : vector<1x128xf32>
    %c0_14 = arith.constant 0 : index
    %c0_15 = arith.constant 0 : index
    %16 = vector.load %arg6[%c0_14, %c0_15] : memref<1x128xf32, #tpu.memory_space<vmem>>, vector<1x128xf32>
    tpu.vector_store %arg6[%c0_14, %c0_15], %15 {strides = array<i32>} : memref<1x128xf32, #tpu.memory_space<vmem>>, vector<1x128xf32>,
    %c0_16 = arith.constant 0 : index
    %c0_17 = arith.constant 0 : index
    %17 = vector.load %arg7[%c0_16, %c0_17] : memref<1x128xf32, #tpu.memory_space<vmem>>, vector<1x128xf32>
    %18 = arith.mulf %2, %2 : vector<128x128xf32>
    %cst_18 = arith.constant dense<0.000000e+00> : vector<128xf32>
    %19 = vector.multi_reduction <add>, %18, %cst_18 [0] : vector<128x128xf32> to vector<128xf32>
    %20 = vector.shape_cast %19 : vector<128xf32> to vector<1x128xf32>
    %21 = arith.addf %17, %20 : vector<1x128xf32>
    %c0_19 = arith.constant 0 : index
    %c0_20 = arith.constant 0 : index
    %22 = vector.load %arg7[%c0_19, %c0_20] : memref<1x128xf32, #tpu.memory_space<vmem>>, vector<1x128xf32>
    tpu.vector_store %arg7[%c0_19, %c0_20], %21 {strides = array<i32>} : memref<1x128xf32, #tpu.memory_space<vmem>>, vector<1x128xf32>,
    %c0_21 = arith.constant 0 : index
    %c0_22 = arith.constant 0 : index
    %23 = vector.load %arg8[%c0_21, %c0_22] : memref<1x128xf32, #tpu.memory_space<vmem>>, vector<1x128xf32>
    %cst_23 = arith.constant dense<0.000000e+00> : vector<128xf32>
    %24 = vector.multi_reduction <add>, %4, %cst_23 [0] : vector<128x128xf32> to vector<128xf32>
    %25 = vector.shape_cast %24 : vector<128xf32> to vector<1x128xf32>
    %26 = arith.addf %23, %25 : vector<1x128xf32>
    %c0_24 = arith.constant 0 : index
    %c0_25 = arith.constant 0 : index
    %27 = vector.load %arg8[%c0_24, %c0_25] : memref<1x128xf32, #tpu.memory_space<vmem>>, vector<1x128xf32>
    tpu.vector_store %arg8[%c0_24, %c0_25], %26 {strides = array<i32>} : memref<1x128xf32, #tpu.memory_space<vmem>>, vector<1x128xf32>,
    %c0_26 = arith.constant 0 : index
    %c0_27 = arith.constant 0 : index
    %28 = vector.load %arg9[%c0_26, %c0_27] : memref<1x128xf32, #tpu.memory_space<vmem>>, vector<1x128xf32>
    %29 = arith.mulf %4, %4 : vector<128x128xf32>
    %cst_28 = arith.constant dense<0.000000e+00> : vector<128xf32>
    %30 = vector.multi_reduction <add>, %29, %cst_28 [0] : vector<128x128xf32> to vector<128xf32>
    %31 = vector.shape_cast %30 : vector<128xf32> to vector<1x128xf32>
    %32 = arith.addf %28, %31 : vector<1x128xf32>
    %c0_29 = arith.constant 0 : index
    %c0_30 = arith.constant 0 : index
    %33 = vector.load %arg9[%c0_29, %c0_30] : memref<1x128xf32, #tpu.memory_space<vmem>>, vector<1x128xf32>
    tpu.vector_store %arg9[%c0_29, %c0_30], %32 {strides = array<i32>} : memref<1x128xf32, #tpu.memory_space<vmem>>, vector<1x128xf32>,
    return
  }
  func.func @transform_0(%arg0: i32) -> (i32, i32) {
    %c0_i32 = arith.constant 0 : i32
    %c0_i32_0 = arith.constant 0 : i32
    return %arg0, %c0_i32 : i32, i32
  }
  func.func @transform_1(%arg0: i32) -> (i32, i32) {
    %c0_i32 = arith.constant 0 : i32
    %c0_i32_0 = arith.constant 0 : i32
    %c0_i32_1 = arith.constant 0 : i32
    return %c0_i32, %c0_i32_0 : i32, i32
  }
  func.func @transform_2(%arg0: i32) -> (i32, i32) {
    %c0_i32 = arith.constant 0 : i32
    %c0_i32_0 = arith.constant 0 : i32
    %c0_i32_1 = arith.constant 0 : i32
    return %c0_i32, %c0_i32_0 : i32, i32
  }
  func.func @transform_3(%arg0: i32) -> (i32, i32) {
    %c0_i32 = arith.constant 0 : i32
    %c0_i32_0 = arith.constant 0 : i32
    return %arg0, %c0_i32 : i32, i32
  }
  func.func @transform_4(%arg0: i32) -> (i32, i32) {
    %c0_i32 = arith.constant 0 : i32
    %c0_i32_0 = arith.constant 0 : i32
    return %arg0, %c0_i32 : i32, i32
  }
  func.func @transform_5(%arg0: i32) -> (i32, i32) {
    %c0_i32 = arith.constant 0 : i32
    %c0_i32_0 = arith.constant 0 : i32
    %c0_i32_1 = arith.constant 0 : i32
    return %c0_i32, %c0_i32_0 : i32, i32
  }
  func.func @transform_6(%arg0: i32) -> (i32, i32) {
    %c0_i32 = arith.constant 0 : i32
    %c0_i32_0 = arith.constant 0 : i32
    %c0_i32_1 = arith.constant 0 : i32
    return %c0_i32, %c0_i32_0 : i32, i32
  }
  func.func @transform_7(%arg0: i32) -> (i32, i32) {
    %c0_i32 = arith.constant 0 : i32
    %c0_i32_0 = arith.constant 0 : i32
    %c0_i32_1 = arith.constant 0 : i32
    return %c0_i32, %c0_i32_0 : i32, i32
  }
  func.func @transform_8(%arg0: i32) -> (i32, i32) {
    %c0_i32 = arith.constant 0 : i32
    %c0_i32_0 = arith.constant 0 : i32
    %c0_i32_1 = arith.constant 0 : i32
    return %c0_i32, %c0_i32_0 : i32, i32
  }
}

module attributes {stable_mosaic.version = 11 : i64} {
  func.func @_stage3_kernel(%arg0: i32, %arg1: memref<128x128xbf16, #tpu.memory_space<vmem>>, %arg2: memref<1x128xf32, #tpu.memory_space<vmem>>, %arg3: memref<1x128xf32, #tpu.memory_space<vmem>>, %arg4: memref<128x128xbf16, #tpu.memory_space<vmem>>, %arg5: memref<128x128xbf16, #tpu.memory_space<vmem>>, %arg6: memref<1x128xf32, #tpu.memory_space<vmem>>, %arg7: memref<1x128xf32, #tpu.memory_space<vmem>>) attributes {dimension_semantics = [#tpu.dimension_semantics<arbitrary>], iteration_bounds = array<i64: 1>, scalar_prefetch = 0 : i64, scratch_operands = 0 : i64, tpu.core_type = #tpu.core_type<tc>, window_params = [{transform_indices = @transform_0, window_bounds = array<i64: 128, 128>}, {pipeline_mode = #tpu.pipeline_mode<synchronous>, transform_indices = @transform_1, window_bounds = array<i64: 1, 128>}, {pipeline_mode = #tpu.pipeline_mode<synchronous>, transform_indices = @transform_2, window_bounds = array<i64: 1, 128>}, {pipeline_mode = #tpu.pipeline_mode<synchronous>, transform_indices = @transform_3, window_bounds = array<i64: 128, 128>}, {transform_indices = @transform_4, window_bounds = array<i64: 128, 128>}, {pipeline_mode = #tpu.pipeline_mode<synchronous>, transform_indices = @transform_5, window_bounds = array<i64: 1, 128>}, {pipeline_mode = #tpu.pipeline_mode<synchronous>, transform_indices = @transform_6, window_bounds = array<i64: 1, 128>}]} {
    %c0 = arith.constant 0 : index
    %c0_0 = arith.constant 0 : index
    %0 = vector.load %arg2[%c0, %c0_0] : memref<1x128xf32, #tpu.memory_space<vmem>>, vector<1x128xf32>
    %cst = arith.constant 7.812500e-03 : f32
    %1 = vector.broadcast %cst : f32 to vector<1x128xf32>
    %2 = arith.mulf %0, %1 : vector<1x128xf32>
    %c0_1 = arith.constant 0 : index
    %c0_2 = arith.constant 0 : index
    %3 = vector.load %arg3[%c0_1, %c0_2] : memref<1x128xf32, #tpu.memory_space<vmem>>, vector<1x128xf32>
    %cst_3 = arith.constant 7.812500e-03 : f32
    %4 = vector.broadcast %cst_3 : f32 to vector<1x128xf32>
    %5 = arith.mulf %3, %4 : vector<1x128xf32>
    %6 = arith.mulf %2, %2 : vector<1x128xf32>
    %7 = arith.subf %5, %6 : vector<1x128xf32>
    %cst_4 = arith.constant 9.99999974E-6 : f32
    %8 = vector.broadcast %cst_4 : f32 to vector<1x128xf32>
    %9 = arith.addf %7, %8 : vector<1x128xf32>
    %10 = math.rsqrt %9 : vector<1x128xf32>
    %c0_5 = arith.constant 0 : index
    %c0_6 = arith.constant 0 : index
    %11 = vector.load %arg1[%c0_5, %c0_6] : memref<128x128xbf16, #tpu.memory_space<vmem>>, vector<128x128xbf16>
    %12 = arith.extf %11 : vector<128x128xbf16> to vector<128x128xf32>
    %13 = vector.broadcast %2 : vector<1x128xf32> to vector<128x128xf32>
    %14 = arith.subf %12, %13 : vector<128x128xf32>
    %15 = vector.broadcast %10 : vector<1x128xf32> to vector<128x128xf32>
    %16 = arith.mulf %14, %15 : vector<128x128xf32>
    %cst_7 = arith.constant 0.000000e+00 : f32
    %17 = vector.broadcast %cst_7 : f32 to vector<128x128xf32>
    %18 = arith.maximumf %16, %17 : vector<128x128xf32>
    %19 = arith.truncf %18 : vector<128x128xf32> to vector<128x128xbf16>
    %c0_8 = arith.constant 0 : index
    %c0_9 = arith.constant 0 : index
    %20 = vector.load %arg4[%c0_8, %c0_9] : memref<128x128xbf16, #tpu.memory_space<vmem>>, vector<128x128xbf16>
    %cst_10 = arith.constant dense<0.000000e+00> : vector<128x128xf32>
    %21 = tpu.matmul %19, %20, %cst_10 {dimension_numbers = #tpu.dot_dimension_numbers<[1], [0], [0], [1], [0, 0, 1, 1], [], []>} : vector<128x128xbf16>, vector<128x128xbf16>, vector<128x128xf32> -> vector<128x128xf32>
    %22 = arith.truncf %21 : vector<128x128xf32> to vector<128x128xbf16>
    %c0_11 = arith.constant 0 : index
    %c0_12 = arith.constant 0 : index
    %23 = vector.load %arg5[%c0_11, %c0_12] : memref<128x128xbf16, #tpu.memory_space<vmem>>, vector<128x128xbf16>
    tpu.vector_store %arg5[%c0_11, %c0_12], %22 {strides = array<i32>} : memref<128x128xbf16, #tpu.memory_space<vmem>>, vector<128x128xbf16>,
    %c0_i32 = arith.constant 0 : i32
    %24 = arith.cmpi eq, %arg0, %c0_i32 : i32
    %25 = arith.extui %24 : i1 to i32
    %c0_i32_13 = arith.constant 0 : i32
    %26 = arith.cmpi ne, %25, %c0_i32_13 : i32
    scf.if %26 {
      %cst_24 = arith.constant 0.000000e+00 : f32
      %38 = vector.broadcast %cst_24 : f32 to vector<1x128xf32>
      %c0_25 = arith.constant 0 : index
      %c0_26 = arith.constant 0 : index
      %39 = vector.load %arg6[%c0_25, %c0_26] : memref<1x128xf32, #tpu.memory_space<vmem>>, vector<1x128xf32>
      tpu.vector_store %arg6[%c0_25, %c0_26], %38 {strides = array<i32>} : memref<1x128xf32, #tpu.memory_space<vmem>>, vector<1x128xf32>,
      %cst_27 = arith.constant 0.000000e+00 : f32
      %40 = vector.broadcast %cst_27 : f32 to vector<1x128xf32>
      %c0_28 = arith.constant 0 : index
      %c0_29 = arith.constant 0 : index
      %41 = vector.load %arg7[%c0_28, %c0_29] : memref<1x128xf32, #tpu.memory_space<vmem>>, vector<1x128xf32>
      tpu.vector_store %arg7[%c0_28, %c0_29], %40 {strides = array<i32>} : memref<1x128xf32, #tpu.memory_space<vmem>>, vector<1x128xf32>,
    } else {
    }
    %c0_14 = arith.constant 0 : index
    %c0_15 = arith.constant 0 : index
    %27 = vector.load %arg6[%c0_14, %c0_15] : memref<1x128xf32, #tpu.memory_space<vmem>>, vector<1x128xf32>
    %cst_16 = arith.constant dense<0.000000e+00> : vector<128xf32>
    %28 = vector.multi_reduction <add>, %21, %cst_16 [0] : vector<128x128xf32> to vector<128xf32>
    %29 = vector.shape_cast %28 : vector<128xf32> to vector<1x128xf32>
    %30 = arith.addf %27, %29 : vector<1x128xf32>
    %c0_17 = arith.constant 0 : index
    %c0_18 = arith.constant 0 : index
    %31 = vector.load %arg6[%c0_17, %c0_18] : memref<1x128xf32, #tpu.memory_space<vmem>>, vector<1x128xf32>
    tpu.vector_store %arg6[%c0_17, %c0_18], %30 {strides = array<i32>} : memref<1x128xf32, #tpu.memory_space<vmem>>, vector<1x128xf32>,
    %c0_19 = arith.constant 0 : index
    %c0_20 = arith.constant 0 : index
    %32 = vector.load %arg7[%c0_19, %c0_20] : memref<1x128xf32, #tpu.memory_space<vmem>>, vector<1x128xf32>
    %33 = arith.mulf %21, %21 : vector<128x128xf32>
    %cst_21 = arith.constant dense<0.000000e+00> : vector<128xf32>
    %34 = vector.multi_reduction <add>, %33, %cst_21 [0] : vector<128x128xf32> to vector<128xf32>
    %35 = vector.shape_cast %34 : vector<128xf32> to vector<1x128xf32>
    %36 = arith.addf %32, %35 : vector<1x128xf32>
    %c0_22 = arith.constant 0 : index
    %c0_23 = arith.constant 0 : index
    %37 = vector.load %arg7[%c0_22, %c0_23] : memref<1x128xf32, #tpu.memory_space<vmem>>, vector<1x128xf32>
    tpu.vector_store %arg7[%c0_22, %c0_23], %36 {strides = array<i32>} : memref<1x128xf32, #tpu.memory_space<vmem>>, vector<1x128xf32>,
    return
  }
  func.func @transform_0(%arg0: i32) -> (i32, i32) {
    %c0_i32 = arith.constant 0 : i32
    %c0_i32_0 = arith.constant 0 : i32
    return %arg0, %c0_i32 : i32, i32
  }
  func.func @transform_1(%arg0: i32) -> (i32, i32) {
    %c0_i32 = arith.constant 0 : i32
    %c0_i32_0 = arith.constant 0 : i32
    %c0_i32_1 = arith.constant 0 : i32
    return %c0_i32, %c0_i32_0 : i32, i32
  }
  func.func @transform_2(%arg0: i32) -> (i32, i32) {
    %c0_i32 = arith.constant 0 : i32
    %c0_i32_0 = arith.constant 0 : i32
    %c0_i32_1 = arith.constant 0 : i32
    return %c0_i32, %c0_i32_0 : i32, i32
  }
  func.func @transform_3(%arg0: i32) -> (i32, i32) {
    %c0_i32 = arith.constant 0 : i32
    %c0_i32_0 = arith.constant 0 : i32
    %c0_i32_1 = arith.constant 0 : i32
    return %c0_i32, %c0_i32_0 : i32, i32
  }
  func.func @transform_4(%arg0: i32) -> (i32, i32) {
    %c0_i32 = arith.constant 0 : i32
    %c0_i32_0 = arith.constant 0 : i32
    return %arg0, %c0_i32 : i32, i32
  }
  func.func @transform_5(%arg0: i32) -> (i32, i32) {
    %c0_i32 = arith.constant 0 : i32
    %c0_i32_0 = arith.constant 0 : i32
    %c0_i32_1 = arith.constant 0 : i32
    return %c0_i32, %c0_i32_0 : i32, i32
  }
  func.func @transform_6(%arg0: i32) -> (i32, i32) {
    %c0_i32 = arith.constant 0 : i32
    %c0_i32_0 = arith.constant 0 : i32
    %c0_i32_1 = arith.constant 0 : i32
    return %c0_i32, %c0_i32_0 : i32, i32
  }
}

module attributes {stable_mosaic.version = 11 : i64} {
  func.func @_conv3x3_bn_kernel(%arg0: i32, %arg1: memref<64x128xbf16, #tpu.memory_space<vmem>>, %arg2: memref<1x128xf32, #tpu.memory_space<vmem>>, %arg3: memref<1x128xf32, #tpu.memory_space<vmem>>, %arg4: memref<9x128x128xbf16, #tpu.memory_space<vmem>>, %arg5: memref<64x128xbf16, #tpu.memory_space<vmem>>, %arg6: memref<1x128xf32, #tpu.memory_space<vmem>>, %arg7: memref<1x128xf32, #tpu.memory_space<vmem>>, %arg8: memref<10x10x128xf32, #tpu.memory_space<vmem>>, %arg9: memref<64x128xf32, #tpu.memory_space<vmem>>) attributes {dimension_semantics = [#tpu.dimension_semantics<arbitrary>], iteration_bounds = array<i64: 2>, scalar_prefetch = 0 : i64, scratch_operands = 2 : i64, tpu.core_type = #tpu.core_type<tc>, window_params = [{transform_indices = @transform_0, window_bounds = array<i64: 64, 128>}, {pipeline_mode = #tpu.pipeline_mode<synchronous>, transform_indices = @transform_1, window_bounds = array<i64: 1, 128>}, {pipeline_mode = #tpu.pipeline_mode<synchronous>, transform_indices = @transform_2, window_bounds = array<i64: 1, 128>}, {pipeline_mode = #tpu.pipeline_mode<synchronous>, transform_indices = @transform_3, window_bounds = array<i64: 9, 128, 128>}, {transform_indices = @transform_4, window_bounds = array<i64: 64, 128>}, {pipeline_mode = #tpu.pipeline_mode<synchronous>, transform_indices = @transform_5, window_bounds = array<i64: 1, 128>}, {pipeline_mode = #tpu.pipeline_mode<synchronous>, transform_indices = @transform_6, window_bounds = array<i64: 1, 128>}]} {
    %c0_i32 = arith.constant 0 : i32
    %0 = arith.cmpi eq, %arg0, %c0_i32 : i32
    %1 = arith.extui %0 : i1 to i32
    %c0_i32_0 = arith.constant 0 : i32
    %2 = arith.cmpi ne, %1, %c0_i32_0 : i32
    scf.if %2 {
      %cst_120 = arith.constant 0.000000e+00 : f32
      %121 = vector.broadcast %cst_120 : f32 to vector<10x10x128xf32>
      %c0_121 = arith.constant 0 : index
      %c0_122 = arith.constant 0 : index
      %c0_123 = arith.constant 0 : index
      %122 = vector.load %arg8[%c0_121, %c0_122, %c0_123] : memref<10x10x128xf32, #tpu.memory_space<vmem>>, vector<10x10x128xf32>
      tpu.vector_store %arg8[%c0_121, %c0_122, %c0_123], %121 {strides = array<i32>} : memref<10x10x128xf32, #tpu.memory_space<vmem>>, vector<10x10x128xf32>,
      %cst_124 = arith.constant 0.000000e+00 : f32
      %123 = vector.broadcast %cst_124 : f32 to vector<1x128xf32>
      %c0_125 = arith.constant 0 : index
      %c0_126 = arith.constant 0 : index
      %124 = vector.load %arg6[%c0_125, %c0_126] : memref<1x128xf32, #tpu.memory_space<vmem>>, vector<1x128xf32>
      tpu.vector_store %arg6[%c0_125, %c0_126], %123 {strides = array<i32>} : memref<1x128xf32, #tpu.memory_space<vmem>>, vector<1x128xf32>,
      %cst_127 = arith.constant 0.000000e+00 : f32
      %125 = vector.broadcast %cst_127 : f32 to vector<1x128xf32>
      %c0_128 = arith.constant 0 : index
      %c0_129 = arith.constant 0 : index
      %126 = vector.load %arg7[%c0_128, %c0_129] : memref<1x128xf32, #tpu.memory_space<vmem>>, vector<1x128xf32>
      tpu.vector_store %arg7[%c0_128, %c0_129], %125 {strides = array<i32>} : memref<1x128xf32, #tpu.memory_space<vmem>>, vector<1x128xf32>,
    } else {
    }
    %c0 = arith.constant 0 : index
    %c0_1 = arith.constant 0 : index
    %3 = vector.load %arg2[%c0, %c0_1] : memref<1x128xf32, #tpu.memory_space<vmem>>, vector<1x128xf32>
    %cst = arith.constant 7.812500e-03 : f32
    %4 = vector.broadcast %cst : f32 to vector<1x128xf32>
    %5 = arith.mulf %3, %4 : vector<1x128xf32>
    %c0_2 = arith.constant 0 : index
    %c0_3 = arith.constant 0 : index
    %6 = vector.load %arg3[%c0_2, %c0_3] : memref<1x128xf32, #tpu.memory_space<vmem>>, vector<1x128xf32>
    %cst_4 = arith.constant 7.812500e-03 : f32
    %7 = vector.broadcast %cst_4 : f32 to vector<1x128xf32>
    %8 = arith.mulf %6, %7 : vector<1x128xf32>
    %9 = arith.mulf %5, %5 : vector<1x128xf32>
    %10 = arith.subf %8, %9 : vector<1x128xf32>
    %cst_5 = arith.constant 9.99999974E-6 : f32
    %11 = vector.broadcast %cst_5 : f32 to vector<1x128xf32>
    %12 = arith.addf %10, %11 : vector<1x128xf32>
    %13 = math.rsqrt %12 : vector<1x128xf32>
    %c0_6 = arith.constant 0 : index
    %c0_7 = arith.constant 0 : index
    %14 = vector.load %arg1[%c0_6, %c0_7] : memref<64x128xbf16, #tpu.memory_space<vmem>>, vector<64x128xbf16>
    %15 = arith.extf %14 : vector<64x128xbf16> to vector<64x128xf32>
    %16 = vector.broadcast %5 : vector<1x128xf32> to vector<64x128xf32>
    %17 = arith.subf %15, %16 : vector<64x128xf32>
    %18 = vector.broadcast %13 : vector<1x128xf32> to vector<64x128xf32>
    %19 = arith.mulf %17, %18 : vector<64x128xf32>
    %cst_8 = arith.constant 0.000000e+00 : f32
    %20 = vector.broadcast %cst_8 : f32 to vector<64x128xf32>
    %21 = arith.maximumf %19, %20 : vector<64x128xf32>
    %22 = vector.shape_cast %21 : vector<64x128xf32> to vector<8x8x128xf32>
    %c1 = arith.constant 1 : index
    %c1_9 = arith.constant 1 : index
    %c0_10 = arith.constant 0 : index
    %23 = vector.load %arg8[%c1, %c1_9, %c0_10] : memref<10x10x128xf32, #tpu.memory_space<vmem>>, vector<8x8x128xf32>
    tpu.vector_store %arg8[%c1, %c1_9, %c0_10], %22 {strides = array<i32>} : memref<10x10x128xf32, #tpu.memory_space<vmem>>, vector<8x8x128xf32>,
    %cst_11 = arith.constant 0.000000e+00 : f32
    %24 = vector.broadcast %cst_11 : f32 to vector<64x128xf32>
    %c0_12 = arith.constant 0 : index
    %c0_13 = arith.constant 0 : index
    %25 = vector.load %arg9[%c0_12, %c0_13] : memref<64x128xf32, #tpu.memory_space<vmem>>, vector<64x128xf32>
    tpu.vector_store %arg9[%c0_12, %c0_13], %24 {strides = array<i32>} : memref<64x128xf32, #tpu.memory_space<vmem>>, vector<64x128xf32>,
    %c0_14 = arith.constant 0 : index
    %c0_15 = arith.constant 0 : index
    %c0_16 = arith.constant 0 : index
    %26 = vector.load %arg8[%c0_14, %c0_15, %c0_16] : memref<10x10x128xf32, #tpu.memory_space<vmem>>, vector<8x8x128xf32>
    %27 = vector.shape_cast %26 : vector<8x8x128xf32> to vector<64x128xf32>
    %c0_17 = arith.constant 0 : index
    %c0_18 = arith.constant 0 : index
    %28 = vector.load %arg9[%c0_17, %c0_18] : memref<64x128xf32, #tpu.memory_space<vmem>>, vector<64x128xf32>
    %29 = arith.truncf %27 : vector<64x128xf32> to vector<64x128xbf16>
    %c0_19 = arith.constant 0 : index
    %c0_20 = arith.constant 0 : index
    %c0_21 = arith.constant 0 : index
    %30 = vector.load %arg4[%c0_19, %c0_20, %c0_21] : memref<9x128x128xbf16, #tpu.memory_space<vmem>>, vector<1x128x128xbf16>
    %31 = vector.shape_cast %30 : vector<1x128x128xbf16> to vector<128x128xbf16>
    %cst_22 = arith.constant dense<0.000000e+00> : vector<64x128xf32>
    %32 = tpu.matmul %29, %31, %cst_22 {dimension_numbers = #tpu.dot_dimension_numbers<[1], [0], [0], [1], [0, 0, 1, 1], [], []>} : vector<64x128xbf16>, vector<128x128xbf16>, vector<64x128xf32> -> vector<64x128xf32>
    %33 = arith.addf %28, %32 : vector<64x128xf32>
    %c0_23 = arith.constant 0 : index
    %c0_24 = arith.constant 0 : index
    %34 = vector.load %arg9[%c0_23, %c0_24] : memref<64x128xf32, #tpu.memory_space<vmem>>, vector<64x128xf32>
    tpu.vector_store %arg9[%c0_23, %c0_24], %33 {strides = array<i32>} : memref<64x128xf32, #tpu.memory_space<vmem>>, vector<64x128xf32>,
    %c0_25 = arith.constant 0 : index
    %c1_26 = arith.constant 1 : index
    %c0_27 = arith.constant 0 : index
    %35 = vector.load %arg8[%c0_25, %c1_26, %c0_27] : memref<10x10x128xf32, #tpu.memory_space<vmem>>, vector<8x8x128xf32>
    %36 = vector.shape_cast %35 : vector<8x8x128xf32> to vector<64x128xf32>
    %c0_28 = arith.constant 0 : index
    %c0_29 = arith.constant 0 : index
    %37 = vector.load %arg9[%c0_28, %c0_29] : memref<64x128xf32, #tpu.memory_space<vmem>>, vector<64x128xf32>
    %38 = arith.truncf %36 : vector<64x128xf32> to vector<64x128xbf16>
    %c1_30 = arith.constant 1 : index
    %c0_31 = arith.constant 0 : index
    %c0_32 = arith.constant 0 : index
    %39 = vector.load %arg4[%c1_30, %c0_31, %c0_32] : memref<9x128x128xbf16, #tpu.memory_space<vmem>>, vector<1x128x128xbf16>
    %40 = vector.shape_cast %39 : vector<1x128x128xbf16> to vector<128x128xbf16>
    %cst_33 = arith.constant dense<0.000000e+00> : vector<64x128xf32>
    %41 = tpu.matmul %38, %40, %cst_33 {dimension_numbers = #tpu.dot_dimension_numbers<[1], [0], [0], [1], [0, 0, 1, 1], [], []>} : vector<64x128xbf16>, vector<128x128xbf16>, vector<64x128xf32> -> vector<64x128xf32>
    %42 = arith.addf %37, %41 : vector<64x128xf32>
    %c0_34 = arith.constant 0 : index
    %c0_35 = arith.constant 0 : index
    %43 = vector.load %arg9[%c0_34, %c0_35] : memref<64x128xf32, #tpu.memory_space<vmem>>, vector<64x128xf32>
    tpu.vector_store %arg9[%c0_34, %c0_35], %42 {strides = array<i32>} : memref<64x128xf32, #tpu.memory_space<vmem>>, vector<64x128xf32>,
    %c0_36 = arith.constant 0 : index
    %c2 = arith.constant 2 : index
    %c0_37 = arith.constant 0 : index
    %44 = vector.load %arg8[%c0_36, %c2, %c0_37] : memref<10x10x128xf32, #tpu.memory_space<vmem>>, vector<8x8x128xf32>
    %45 = vector.shape_cast %44 : vector<8x8x128xf32> to vector<64x128xf32>
    %c0_38 = arith.constant 0 : index
    %c0_39 = arith.constant 0 : index
    %46 = vector.load %arg9[%c0_38, %c0_39] : memref<64x128xf32, #tpu.memory_space<vmem>>, vector<64x128xf32>
    %47 = arith.truncf %45 : vector<64x128xf32> to vector<64x128xbf16>
    %c2_40 = arith.constant 2 : index
    %c0_41 = arith.constant 0 : index
    %c0_42 = arith.constant 0 : index
    %48 = vector.load %arg4[%c2_40, %c0_41, %c0_42] : memref<9x128x128xbf16, #tpu.memory_space<vmem>>, vector<1x128x128xbf16>
    %49 = vector.shape_cast %48 : vector<1x128x128xbf16> to vector<128x128xbf16>
    %cst_43 = arith.constant dense<0.000000e+00> : vector<64x128xf32>
    %50 = tpu.matmul %47, %49, %cst_43 {dimension_numbers = #tpu.dot_dimension_numbers<[1], [0], [0], [1], [0, 0, 1, 1], [], []>} : vector<64x128xbf16>, vector<128x128xbf16>, vector<64x128xf32> -> vector<64x128xf32>
    %51 = arith.addf %46, %50 : vector<64x128xf32>
    %c0_44 = arith.constant 0 : index
    %c0_45 = arith.constant 0 : index
    %52 = vector.load %arg9[%c0_44, %c0_45] : memref<64x128xf32, #tpu.memory_space<vmem>>, vector<64x128xf32>
    tpu.vector_store %arg9[%c0_44, %c0_45], %51 {strides = array<i32>} : memref<64x128xf32, #tpu.memory_space<vmem>>, vector<64x128xf32>,
    %c1_46 = arith.constant 1 : index
    %c0_47 = arith.constant 0 : index
    %c0_48 = arith.constant 0 : index
    %53 = vector.load %arg8[%c1_46, %c0_47, %c0_48] : memref<10x10x128xf32, #tpu.memory_space<vmem>>, vector<8x8x128xf32>
    %54 = vector.shape_cast %53 : vector<8x8x128xf32> to vector<64x128xf32>
    %c0_49 = arith.constant 0 : index
    %c0_50 = arith.constant 0 : index
    %55 = vector.load %arg9[%c0_49, %c0_50] : memref<64x128xf32, #tpu.memory_space<vmem>>, vector<64x128xf32>
    %56 = arith.truncf %54 : vector<64x128xf32> to vector<64x128xbf16>
    %c3 = arith.constant 3 : index
    %c0_51 = arith.constant 0 : index
    %c0_52 = arith.constant 0 : index
    %57 = vector.load %arg4[%c3, %c0_51, %c0_52] : memref<9x128x128xbf16, #tpu.memory_space<vmem>>, vector<1x128x128xbf16>
    %58 = vector.shape_cast %57 : vector<1x128x128xbf16> to vector<128x128xbf16>
    %cst_53 = arith.constant dense<0.000000e+00> : vector<64x128xf32>
    %59 = tpu.matmul %56, %58, %cst_53 {dimension_numbers = #tpu.dot_dimension_numbers<[1], [0], [0], [1], [0, 0, 1, 1], [], []>} : vector<64x128xbf16>, vector<128x128xbf16>, vector<64x128xf32> -> vector<64x128xf32>
    %60 = arith.addf %55, %59 : vector<64x128xf32>
    %c0_54 = arith.constant 0 : index
    %c0_55 = arith.constant 0 : index
    %61 = vector.load %arg9[%c0_54, %c0_55] : memref<64x128xf32, #tpu.memory_space<vmem>>, vector<64x128xf32>
    tpu.vector_store %arg9[%c0_54, %c0_55], %60 {strides = array<i32>} : memref<64x128xf32, #tpu.memory_space<vmem>>, vector<64x128xf32>,
    %c1_56 = arith.constant 1 : index
    %c1_57 = arith.constant 1 : index
    %c0_58 = arith.constant 0 : index
    %62 = vector.load %arg8[%c1_56, %c1_57, %c0_58] : memref<10x10x128xf32, #tpu.memory_space<vmem>>, vector<8x8x128xf32>
    %63 = vector.shape_cast %62 : vector<8x8x128xf32> to vector<64x128xf32>
    %c0_59 = arith.constant 0 : index
    %c0_60 = arith.constant 0 : index
    %64 = vector.load %arg9[%c0_59, %c0_60] : memref<64x128xf32, #tpu.memory_space<vmem>>, vector<64x128xf32>
    %65 = arith.truncf %63 : vector<64x128xf32> to vector<64x128xbf16>
    %c4 = arith.constant 4 : index
    %c0_61 = arith.constant 0 : index
    %c0_62 = arith.constant 0 : index
    %66 = vector.load %arg4[%c4, %c0_61, %c0_62] : memref<9x128x128xbf16, #tpu.memory_space<vmem>>, vector<1x128x128xbf16>
    %67 = vector.shape_cast %66 : vector<1x128x128xbf16> to vector<128x128xbf16>
    %cst_63 = arith.constant dense<0.000000e+00> : vector<64x128xf32>
    %68 = tpu.matmul %65, %67, %cst_63 {dimension_numbers = #tpu.dot_dimension_numbers<[1], [0], [0], [1], [0, 0, 1, 1], [], []>} : vector<64x128xbf16>, vector<128x128xbf16>, vector<64x128xf32> -> vector<64x128xf32>
    %69 = arith.addf %64, %68 : vector<64x128xf32>
    %c0_64 = arith.constant 0 : index
    %c0_65 = arith.constant 0 : index
    %70 = vector.load %arg9[%c0_64, %c0_65] : memref<64x128xf32, #tpu.memory_space<vmem>>, vector<64x128xf32>
    tpu.vector_store %arg9[%c0_64, %c0_65], %69 {strides = array<i32>} : memref<64x128xf32, #tpu.memory_space<vmem>>, vector<64x128xf32>,
    %c1_66 = arith.constant 1 : index
    %c2_67 = arith.constant 2 : index
    %c0_68 = arith.constant 0 : index
    %71 = vector.load %arg8[%c1_66, %c2_67, %c0_68] : memref<10x10x128xf32, #tpu.memory_space<vmem>>, vector<8x8x128xf32>
    %72 = vector.shape_cast %71 : vector<8x8x128xf32> to vector<64x128xf32>
    %c0_69 = arith.constant 0 : index
    %c0_70 = arith.constant 0 : index
    %73 = vector.load %arg9[%c0_69, %c0_70] : memref<64x128xf32, #tpu.memory_space<vmem>>, vector<64x128xf32>
    %74 = arith.truncf %72 : vector<64x128xf32> to vector<64x128xbf16>
    %c5 = arith.constant 5 : index
    %c0_71 = arith.constant 0 : index
    %c0_72 = arith.constant 0 : index
    %75 = vector.load %arg4[%c5, %c0_71, %c0_72] : memref<9x128x128xbf16, #tpu.memory_space<vmem>>, vector<1x128x128xbf16>
    %76 = vector.shape_cast %75 : vector<1x128x128xbf16> to vector<128x128xbf16>
    %cst_73 = arith.constant dense<0.000000e+00> : vector<64x128xf32>
    %77 = tpu.matmul %74, %76, %cst_73 {dimension_numbers = #tpu.dot_dimension_numbers<[1], [0], [0], [1], [0, 0, 1, 1], [], []>} : vector<64x128xbf16>, vector<128x128xbf16>, vector<64x128xf32> -> vector<64x128xf32>
    %78 = arith.addf %73, %77 : vector<64x128xf32>
    %c0_74 = arith.constant 0 : index
    %c0_75 = arith.constant 0 : index
    %79 = vector.load %arg9[%c0_74, %c0_75] : memref<64x128xf32, #tpu.memory_space<vmem>>, vector<64x128xf32>
    tpu.vector_store %arg9[%c0_74, %c0_75], %78 {strides = array<i32>} : memref<64x128xf32, #tpu.memory_space<vmem>>, vector<64x128xf32>,
    %c2_76 = arith.constant 2 : index
    %c0_77 = arith.constant 0 : index
    %c0_78 = arith.constant 0 : index
    %80 = vector.load %arg8[%c2_76, %c0_77, %c0_78] : memref<10x10x128xf32, #tpu.memory_space<vmem>>, vector<8x8x128xf32>
    %81 = vector.shape_cast %80 : vector<8x8x128xf32> to vector<64x128xf32>
    %c0_79 = arith.constant 0 : index
    %c0_80 = arith.constant 0 : index
    %82 = vector.load %arg9[%c0_79, %c0_80] : memref<64x128xf32, #tpu.memory_space<vmem>>, vector<64x128xf32>
    %83 = arith.truncf %81 : vector<64x128xf32> to vector<64x128xbf16>
    %c6 = arith.constant 6 : index
    %c0_81 = arith.constant 0 : index
    %c0_82 = arith.constant 0 : index
    %84 = vector.load %arg4[%c6, %c0_81, %c0_82] : memref<9x128x128xbf16, #tpu.memory_space<vmem>>, vector<1x128x128xbf16>
    %85 = vector.shape_cast %84 : vector<1x128x128xbf16> to vector<128x128xbf16>
    %cst_83 = arith.constant dense<0.000000e+00> : vector<64x128xf32>
    %86 = tpu.matmul %83, %85, %cst_83 {dimension_numbers = #tpu.dot_dimension_numbers<[1], [0], [0], [1], [0, 0, 1, 1], [], []>} : vector<64x128xbf16>, vector<128x128xbf16>, vector<64x128xf32> -> vector<64x128xf32>
    %87 = arith.addf %82, %86 : vector<64x128xf32>
    %c0_84 = arith.constant 0 : index
    %c0_85 = arith.constant 0 : index
    %88 = vector.load %arg9[%c0_84, %c0_85] : memref<64x128xf32, #tpu.memory_space<vmem>>, vector<64x128xf32>
    tpu.vector_store %arg9[%c0_84, %c0_85], %87 {strides = array<i32>} : memref<64x128xf32, #tpu.memory_space<vmem>>, vector<64x128xf32>,
    %c2_86 = arith.constant 2 : index
    %c1_87 = arith.constant 1 : index
    %c0_88 = arith.constant 0 : index
    %89 = vector.load %arg8[%c2_86, %c1_87, %c0_88] : memref<10x10x128xf32, #tpu.memory_space<vmem>>, vector<8x8x128xf32>
    %90 = vector.shape_cast %89 : vector<8x8x128xf32> to vector<64x128xf32>
    %c0_89 = arith.constant 0 : index
    %c0_90 = arith.constant 0 : index
    %91 = vector.load %arg9[%c0_89, %c0_90] : memref<64x128xf32, #tpu.memory_space<vmem>>, vector<64x128xf32>
    %92 = arith.truncf %90 : vector<64x128xf32> to vector<64x128xbf16>
    %c7 = arith.constant 7 : index
    %c0_91 = arith.constant 0 : index
    %c0_92 = arith.constant 0 : index
    %93 = vector.load %arg4[%c7, %c0_91, %c0_92] : memref<9x128x128xbf16, #tpu.memory_space<vmem>>, vector<1x128x128xbf16>
    %94 = vector.shape_cast %93 : vector<1x128x128xbf16> to vector<128x128xbf16>
    %cst_93 = arith.constant dense<0.000000e+00> : vector<64x128xf32>
    %95 = tpu.matmul %92, %94, %cst_93 {dimension_numbers = #tpu.dot_dimension_numbers<[1], [0], [0], [1], [0, 0, 1, 1], [], []>} : vector<64x128xbf16>, vector<128x128xbf16>, vector<64x128xf32> -> vector<64x128xf32>
    %96 = arith.addf %91, %95 : vector<64x128xf32>
    %c0_94 = arith.constant 0 : index
    %c0_95 = arith.constant 0 : index
    %97 = vector.load %arg9[%c0_94, %c0_95] : memref<64x128xf32, #tpu.memory_space<vmem>>, vector<64x128xf32>
    tpu.vector_store %arg9[%c0_94, %c0_95], %96 {strides = array<i32>} : memref<64x128xf32, #tpu.memory_space<vmem>>, vector<64x128xf32>,
    %c2_96 = arith.constant 2 : index
    %c2_97 = arith.constant 2 : index
    %c0_98 = arith.constant 0 : index
    %98 = vector.load %arg8[%c2_96, %c2_97, %c0_98] : memref<10x10x128xf32, #tpu.memory_space<vmem>>, vector<8x8x128xf32>
    %99 = vector.shape_cast %98 : vector<8x8x128xf32> to vector<64x128xf32>
    %c0_99 = arith.constant 0 : index
    %c0_100 = arith.constant 0 : index
    %100 = vector.load %arg9[%c0_99, %c0_100] : memref<64x128xf32, #tpu.memory_space<vmem>>, vector<64x128xf32>
    %101 = arith.truncf %99 : vector<64x128xf32> to vector<64x128xbf16>
    %c8 = arith.constant 8 : index
    %c0_101 = arith.constant 0 : index
    %c0_102 = arith.constant 0 : index
    %102 = vector.load %arg4[%c8, %c0_101, %c0_102] : memref<9x128x128xbf16, #tpu.memory_space<vmem>>, vector<1x128x128xbf16>
    %103 = vector.shape_cast %102 : vector<1x128x128xbf16> to vector<128x128xbf16>
    %cst_103 = arith.constant dense<0.000000e+00> : vector<64x128xf32>
    %104 = tpu.matmul %101, %103, %cst_103 {dimension_numbers = #tpu.dot_dimension_numbers<[1], [0], [0], [1], [0, 0, 1, 1], [], []>} : vector<64x128xbf16>, vector<128x128xbf16>, vector<64x128xf32> -> vector<64x128xf32>
    %105 = arith.addf %100, %104 : vector<64x128xf32>
    %c0_104 = arith.constant 0 : index
    %c0_105 = arith.constant 0 : index
    %106 = vector.load %arg9[%c0_104, %c0_105] : memref<64x128xf32, #tpu.memory_space<vmem>>, vector<64x128xf32>
    tpu.vector_store %arg9[%c0_104, %c0_105], %105 {strides = array<i32>} : memref<64x128xf32, #tpu.memory_space<vmem>>, vector<64x128xf32>,
    %c0_106 = arith.constant 0 : index
    %c0_107 = arith.constant 0 : index
    %107 = vector.load %arg9[%c0_106, %c0_107] : memref<64x128xf32, #tpu.memory_space<vmem>>, vector<64x128xf32>
    %108 = arith.truncf %107 : vector<64x128xf32> to vector<64x128xbf16>
    %c0_108 = arith.constant 0 : index
    %c0_109 = arith.constant 0 : index
    %109 = vector.load %arg5[%c0_108, %c0_109] : memref<64x128xbf16, #tpu.memory_space<vmem>>, vector<64x128xbf16>
    tpu.vector_store %arg5[%c0_108, %c0_109], %108 {strides = array<i32>} : memref<64x128xbf16, #tpu.memory_space<vmem>>, vector<64x128xbf16>,
    %c0_110 = arith.constant 0 : index
    %c0_111 = arith.constant 0 : index
    %110 = vector.load %arg6[%c0_110, %c0_111] : memref<1x128xf32, #tpu.memory_space<vmem>>, vector<1x128xf32>
    %cst_112 = arith.constant dense<0.000000e+00> : vector<128xf32>
    %111 = vector.multi_reduction <add>, %107, %cst_112 [0] : vector<64x128xf32> to vector<128xf32>
    %112 = vector.shape_cast %111 : vector<128xf32> to vector<1x128xf32>
    %113 = arith.addf %110, %112 : vector<1x128xf32>
    %c0_113 = arith.constant 0 : index
    %c0_114 = arith.constant 0 : index
    %114 = vector.load %arg6[%c0_113, %c0_114] : memref<1x128xf32, #tpu.memory_space<vmem>>, vector<1x128xf32>
    tpu.vector_store %arg6[%c0_113, %c0_114], %113 {strides = array<i32>} : memref<1x128xf32, #tpu.memory_space<vmem>>, vector<1x128xf32>,
    %c0_115 = arith.constant 0 : index
    %c0_116 = arith.constant 0 : index
    %115 = vector.load %arg7[%c0_115, %c0_116] : memref<1x128xf32, #tpu.memory_space<vmem>>, vector<1x128xf32>
    %116 = arith.mulf %107, %107 : vector<64x128xf32>
    %cst_117 = arith.constant dense<0.000000e+00> : vector<128xf32>
    %117 = vector.multi_reduction <add>, %116, %cst_117 [0] : vector<64x128xf32> to vector<128xf32>
    %118 = vector.shape_cast %117 : vector<128xf32> to vector<1x128xf32>
    %119 = arith.addf %115, %118 : vector<1x128xf32>
    %c0_118 = arith.constant 0 : index
    %c0_119 = arith.constant 0 : index
    %120 = vector.load %arg7[%c0_118, %c0_119] : memref<1x128xf32, #tpu.memory_space<vmem>>, vector<1x128xf32>
    tpu.vector_store %arg7[%c0_118, %c0_119], %119 {strides = array<i32>} : memref<1x128xf32, #tpu.memory_space<vmem>>, vector<1x128xf32>,
    return
  }
  func.func @transform_0(%arg0: i32) -> (i32, i32) {
    %c0_i32 = arith.constant 0 : i32
    %c0_i32_0 = arith.constant 0 : i32
    return %arg0, %c0_i32 : i32, i32
  }
  func.func @transform_1(%arg0: i32) -> (i32, i32) {
    %c0_i32 = arith.constant 0 : i32
    %c0_i32_0 = arith.constant 0 : i32
    %c0_i32_1 = arith.constant 0 : i32
    return %c0_i32, %c0_i32_0 : i32, i32
  }
  func.func @transform_2(%arg0: i32) -> (i32, i32) {
    %c0_i32 = arith.constant 0 : i32
    %c0_i32_0 = arith.constant 0 : i32
    %c0_i32_1 = arith.constant 0 : i32
    return %c0_i32, %c0_i32_0 : i32, i32
  }
  func.func @transform_3(%arg0: i32) -> (i32, i32, i32) {
    %c0_i32 = arith.constant 0 : i32
    %c0_i32_0 = arith.constant 0 : i32
    %c0_i32_1 = arith.constant 0 : i32
    %c0_i32_2 = arith.constant 0 : i32
    return %c0_i32, %c0_i32_0, %c0_i32_1 : i32, i32, i32
  }
  func.func @transform_4(%arg0: i32) -> (i32, i32) {
    %c0_i32 = arith.constant 0 : i32
    %c0_i32_0 = arith.constant 0 : i32
    return %arg0, %c0_i32 : i32, i32
  }
  func.func @transform_5(%arg0: i32) -> (i32, i32) {
    %c0_i32 = arith.constant 0 : i32
    %c0_i32_0 = arith.constant 0 : i32
    %c0_i32_1 = arith.constant 0 : i32
    return %c0_i32, %c0_i32_0 : i32, i32
  }
  func.func @transform_6(%arg0: i32) -> (i32, i32) {
    %c0_i32 = arith.constant 0 : i32
    %c0_i32_0 = arith.constant 0 : i32
    %c0_i32_1 = arith.constant 0 : i32
    return %c0_i32, %c0_i32_0 : i32, i32
  }
}

module attributes {stable_mosaic.version = 11 : i64} {
  func.func @_final_kernel(%arg0: i32, %arg1: memref<128x128xbf16, #tpu.memory_space<vmem>>, %arg2: memref<1x128xf32, #tpu.memory_space<vmem>>, %arg3: memref<1x128xf32, #tpu.memory_space<vmem>>, %arg4: memref<128x128xbf16, #tpu.memory_space<vmem>>, %arg5: memref<1x128xf32, #tpu.memory_space<vmem>>, %arg6: memref<1x128xf32, #tpu.memory_space<vmem>>, %arg7: memref<128x128xf32, #tpu.memory_space<vmem>>) attributes {dimension_semantics = [#tpu.dimension_semantics<parallel>], iteration_bounds = array<i64: 1>, scalar_prefetch = 0 : i64, scratch_operands = 0 : i64, tpu.core_type = #tpu.core_type<tc>, window_params = [{transform_indices = @transform_0, window_bounds = array<i64: 128, 128>}, {pipeline_mode = #tpu.pipeline_mode<synchronous>, transform_indices = @transform_1, window_bounds = array<i64: 1, 128>}, {pipeline_mode = #tpu.pipeline_mode<synchronous>, transform_indices = @transform_2, window_bounds = array<i64: 1, 128>}, {transform_indices = @transform_3, window_bounds = array<i64: 128, 128>}, {pipeline_mode = #tpu.pipeline_mode<synchronous>, transform_indices = @transform_4, window_bounds = array<i64: 1, 128>}, {pipeline_mode = #tpu.pipeline_mode<synchronous>, transform_indices = @transform_5, window_bounds = array<i64: 1, 128>}, {transform_indices = @transform_6, window_bounds = array<i64: 128, 128>}]} {
    %c0 = arith.constant 0 : index
    %c0_0 = arith.constant 0 : index
    %0 = vector.load %arg1[%c0, %c0_0] : memref<128x128xbf16, #tpu.memory_space<vmem>>, vector<128x128xbf16>
    %1 = arith.extf %0 : vector<128x128xbf16> to vector<128x128xf32>
    %c0_1 = arith.constant 0 : index
    %c0_2 = arith.constant 0 : index
    %2 = vector.load %arg2[%c0_1, %c0_2] : memref<1x128xf32, #tpu.memory_space<vmem>>, vector<1x128xf32>
    %c0_3 = arith.constant 0 : index
    %c0_4 = arith.constant 0 : index
    %3 = vector.load %arg3[%c0_3, %c0_4] : memref<1x128xf32, #tpu.memory_space<vmem>>, vector<1x128xf32>
    %cst = arith.constant 7.812500e-03 : f32
    %4 = vector.broadcast %cst : f32 to vector<1x128xf32>
    %5 = arith.mulf %2, %4 : vector<1x128xf32>
    %cst_5 = arith.constant 7.812500e-03 : f32
    %6 = vector.broadcast %cst_5 : f32 to vector<1x128xf32>
    %7 = arith.mulf %3, %6 : vector<1x128xf32>
    %8 = arith.mulf %5, %5 : vector<1x128xf32>
    %9 = arith.subf %7, %8 : vector<1x128xf32>
    %10 = vector.broadcast %5 : vector<1x128xf32> to vector<128x128xf32>
    %11 = arith.subf %1, %10 : vector<128x128xf32>
    %cst_6 = arith.constant 9.99999974E-6 : f32
    %12 = vector.broadcast %cst_6 : f32 to vector<1x128xf32>
    %13 = arith.addf %9, %12 : vector<1x128xf32>
    %14 = math.rsqrt %13 : vector<1x128xf32>
    %15 = vector.broadcast %14 : vector<1x128xf32> to vector<128x128xf32>
    %16 = arith.mulf %11, %15 : vector<128x128xf32>
    %c0_7 = arith.constant 0 : index
    %c0_8 = arith.constant 0 : index
    %17 = vector.load %arg4[%c0_7, %c0_8] : memref<128x128xbf16, #tpu.memory_space<vmem>>, vector<128x128xbf16>
    %18 = arith.extf %17 : vector<128x128xbf16> to vector<128x128xf32>
    %c0_9 = arith.constant 0 : index
    %c0_10 = arith.constant 0 : index
    %19 = vector.load %arg5[%c0_9, %c0_10] : memref<1x128xf32, #tpu.memory_space<vmem>>, vector<1x128xf32>
    %c0_11 = arith.constant 0 : index
    %c0_12 = arith.constant 0 : index
    %20 = vector.load %arg6[%c0_11, %c0_12] : memref<1x128xf32, #tpu.memory_space<vmem>>, vector<1x128xf32>
    %cst_13 = arith.constant 7.812500e-03 : f32
    %21 = vector.broadcast %cst_13 : f32 to vector<1x128xf32>
    %22 = arith.mulf %19, %21 : vector<1x128xf32>
    %cst_14 = arith.constant 7.812500e-03 : f32
    %23 = vector.broadcast %cst_14 : f32 to vector<1x128xf32>
    %24 = arith.mulf %20, %23 : vector<1x128xf32>
    %25 = arith.mulf %22, %22 : vector<1x128xf32>
    %26 = arith.subf %24, %25 : vector<1x128xf32>
    %27 = vector.broadcast %22 : vector<1x128xf32> to vector<128x128xf32>
    %28 = arith.subf %18, %27 : vector<128x128xf32>
    %cst_15 = arith.constant 9.99999974E-6 : f32
    %29 = vector.broadcast %cst_15 : f32 to vector<1x128xf32>
    %30 = arith.addf %26, %29 : vector<1x128xf32>
    %31 = math.rsqrt %30 : vector<1x128xf32>
    %32 = vector.broadcast %31 : vector<1x128xf32> to vector<128x128xf32>
    %33 = arith.mulf %28, %32 : vector<128x128xf32>
    %34 = arith.addf %16, %33 : vector<128x128xf32>
    %cst_16 = arith.constant 0.000000e+00 : f32
    %35 = vector.broadcast %cst_16 : f32 to vector<128x128xf32>
    %36 = arith.maximumf %34, %35 : vector<128x128xf32>
    %c0_17 = arith.constant 0 : index
    %c0_18 = arith.constant 0 : index
    %37 = vector.load %arg7[%c0_17, %c0_18] : memref<128x128xf32, #tpu.memory_space<vmem>>, vector<128x128xf32>
    tpu.vector_store %arg7[%c0_17, %c0_18], %36 {strides = array<i32>} : memref<128x128xf32, #tpu.memory_space<vmem>>, vector<128x128xf32>,
    return
  }
  func.func @transform_0(%arg0: i32) -> (i32, i32) {
    %c0_i32 = arith.constant 0 : i32
    %c0_i32_0 = arith.constant 0 : i32
    return %arg0, %c0_i32 : i32, i32
  }
  func.func @transform_1(%arg0: i32) -> (i32, i32) {
    %c0_i32 = arith.constant 0 : i32
    %c0_i32_0 = arith.constant 0 : i32
    %c0_i32_1 = arith.constant 0 : i32
    return %c0_i32, %c0_i32_0 : i32, i32
  }
  func.func @transform_2(%arg0: i32) -> (i32, i32) {
    %c0_i32 = arith.constant 0 : i32
    %c0_i32_0 = arith.constant 0 : i32
    %c0_i32_1 = arith.constant 0 : i32
    return %c0_i32, %c0_i32_0 : i32, i32
  }
  func.func @transform_3(%arg0: i32) -> (i32, i32) {
    %c0_i32 = arith.constant 0 : i32
    %c0_i32_0 = arith.constant 0 : i32
    return %arg0, %c0_i32 : i32, i32
  }
  func.func @transform_4(%arg0: i32) -> (i32, i32) {
    %c0_i32 = arith.constant 0 : i32
    %c0_i32_0 = arith.constant 0 : i32
    %c0_i32_1 = arith.constant 0 : i32
    return %c0_i32, %c0_i32_0 : i32, i32
  }
  func.func @transform_5(%arg0: i32) -> (i32, i32) {
    %c0_i32 = arith.constant 0 : i32
    %c0_i32_0 = arith.constant 0 : i32
    %c0_i32_1 = arith.constant 0 : i32
    return %c0_i32, %c0_i32_0 : i32, i32
  }
  func.func @transform_6(%arg0: i32) -> (i32, i32) {
    %c0_i32 = arith.constant 0 : i32
    %c0_i32_0 = arith.constant 0 : i32
    return %arg0, %c0_i32 : i32, i32
  }
}

</mosaic_0001>

<bundles_post_ra>
// kernel: convolutional_block_forward.7
= control target key start
LH: loop header
LB: loop body
LE: loop exit
PB: predicated region body
PF: predicated region fallthrough
CT: control target
= control target key end

     0   :  { %v63_v2 = vlaneseq  ;;  %s566_s0 = inlined_call_operand.vmem [shape: bf16[128,128], index: 0, kind: input, shape index: {}]   ;;  %s567_s1 = inlined_call_operand.vmem [shape: f32[1,128], index: 1, kind: input, shape index: {}]   ;;  %s568_s2 = inlined_call_operand.vmem [shape: f32[1,128], index: 2, kind: input, shape index: {}]   ;;  %s569_s3 = inlined_call_operand.vmem [shape: bf16[128,128], index: 3, kind: input, shape index: {}]   ;;  %s570_s4 = inlined_call_operand.vmem [shape: f32[1,128], index: 4, kind: input, shape index: {}]   ;;  %s571_s5 = inlined_call_operand.vmem [shape: f32[1,128], index: 5, kind: input, shape index: {}]   ;;  %s572_s6 = inlined_call_operand.hbm [shape: f32[128,128], index: 6, kind: output, shape index: {}]  }
   0x1   :  { %v56_v0 = vld [vmem:[%s567_s1] sm:$0x1]  ;;  %v320_v17 = vld [vmem:[%s566_s0 + $0x8] sm:$0xff]  }
   0x2   :  { %v57_v1 = vld [vmem:[%s568_s2] sm:$0x1]  ;;  %v58_v3 = vmul.f32 0.0078125, %v56_v0  ;;  %v64_v6 = vshrl.u32 %v63_v2, 7  ;;  %v327_v18 = vld [vmem:[%s569_s3 + $0x8] sm:$0xff]  }
   0x3   :  { %v59_v4 = vmul.f32 0.0078125, %v57_v1  ;;  %v140_v5 = vld [vmem:[%s570_s4] sm:$0x1] }
   0x4   :  { %v141_v7 = vld [vmem:[%s571_s5] sm:$0x1]  ;;  %v142_v8 = vmul.f32 0.0078125, %v140_v5  ;;  %v60_v9 = vmul.f32 %v58_v3, %v58_v3  ;;  %v416_v12 = vsub.s32 0, %v64_v6 }
   0x5   :  { %v143_v10 = vmul.f32 0.0078125, %v141_v7  ;;  %v257_v11 = vld [vmem:[%s566_s0] sm:$0xff]  }
   0x6   :  { %v289_v13 = vld [vmem:[%s569_s3] sm:$0xff]   ;;  %v144_v14 = vmul.f32 %v142_v8, %v142_v8  ;;  %v61_v15 = vsub.f32 %v59_v4, %v60_v9 }
   0x8   :  { %v145_v16 = vsub.f32 %v143_v10, %v144_v14 }
   0x9   :  { %11 = vsyncpa [#allocation3], 0  ;;  %v258_v19 = vunpack.c.l.bf16 %v257_v11  ;;  %v84_v20 = vadd.f32 1e-05, %v61_v15  ;;  %v290_v21 = vunpack.c.l.bf16 %v289_v13  ;;  %v259_v22 = vunpack.c.h.bf16 %v257_v11  ;;  %v321_v23 = vld [vmem:[%s566_s0 + $0x10] sm:$0xff]   ;;  %v322_v29 = vld [vmem:[%s566_s0 + $0x18] sm:$0xff]  }
   0xa   :  { %v328_v24 = vld [vmem:[%s569_s3 + $0x10] sm:$0xff]   ;;  %v434_v25 = vrot.slane %v58_v3, %v416_v12  ;;  %v437_v26 = vrot.slane %v142_v8, %v416_v12  ;;  %v168_v27 = vadd.f32 1e-05, %v145_v16  ;;  %v291_v28 = vunpack.c.h.bf16 %v289_v13  ;;  %v329_v30 = vld [vmem:[%s569_s3 + $0x18] sm:$0xff]   ;;  %v323_v45 = vld [vmem:[%s566_s0 + $0x20] sm:$0xff]  }
   0xb   :  { %337 = vrsqrt.f32 %v84_v20  ;;  %v262_v31 = vunpack.c.l.bf16 %v320_v17  ;;  %v294_v32 = vunpack.c.l.bf16 %v327_v18  ;;  %v263_v33 = vunpack.c.h.bf16 %v320_v17  ;;  %v330_v50 = vld [vmem:[%s569_s3 + $0x20] sm:$0xff]   ;;  %v324_v55 = vld [vmem:[%s566_s0 + $0x28] sm:$0xff]   ;;  %v325_v61 = vld [vmem:[%s566_s0 + $0x30] sm:$0xff]  }
   0xc   :  { %339 = vrsqrt.f32 %v168_v27  ;;  %v295_v34 = vunpack.c.h.bf16 %v327_v18  ;;  %v266_v35 = vunpack.c.l.bf16 %v321_v23  ;;  %v298_v36 = vunpack.c.l.bf16 %v328_v24  ;;  %v331_v56 = vld [vmem:[%s569_s3 + $0x28] sm:$0xff]   ;;  %v332_v62 = vld [vmem:[%s569_s3 + $0x30] sm:$0xff]   ;;  %v326_v3 = vld [vmem:[%s566_s0 + $0x38] sm:$0xff]   ;;  %s363_s0 = smov [#allocation2]  }
   0xd   :  { %v267_v37 = vunpack.c.h.bf16 %v321_v23  ;;  %v299_v38 = vunpack.c.h.bf16 %v328_v24  ;;  %v270_v39 = vunpack.c.l.bf16 %v322_v29  ;;  %v302_v40 = vunpack.c.l.bf16 %v329_v30  ;;  %v333_v8 = vld [vmem:[%s569_s3 + $0x38] sm:$0xff]   ;;  %s245_s3 = sshll.u32 %s363_s0, 4  ;;  %s246_s3 = int_to_ptr.vmem [resolvable:$true] %s245_s3 }
   0xe   :  { %v68_v41 = vsub.f32 %v258_v19, %v434_v25  ;;  %v447_v42 = vsub.f32 %v290_v21, %v437_v26  ;;  %v69_v43 = vsub.f32 %v259_v22, %v434_v25  ;;  %v271_v44 = vunpack.c.h.bf16 %v322_v29  ;;  %s341_s4 = scalar_lea.vmem %s246_s3, 2048  ;;  %p346_p1 = scmp.lt.s32.totalorder %s246_s3, %s246_s3 }
   0xf   :  { %v153_v46 = vsub.f32 %v291_v28, %v437_v26  ;;  %v70_v47 = vsub.f32 %v262_v31, %v434_v25  ;;  %v154_v48 = vsub.f32 %v294_v32, %v437_v26  ;;  %v303_v49 = vunpack.c.h.bf16 %v329_v30  ;;  %p342_p0 = scmp.ne.s32.totalorder %s246_s3, %s341_s4  ;;  %p347_p2 = scmp.lt.s32.totalorder %s341_s4, %s341_s4 }
  0x10   :  { %v71_v51 = vsub.f32 %v263_v33, %v434_v25  ;;  %v155_v52 = vsub.f32 %v295_v34, %v437_v26  ;;  %v72_v53 = vsub.f32 %v266_v35, %v434_v25  ;;  %v156_v54 = vsub.f32 %v298_v36, %v437_v26 }
  0x11   :  { %v73_v57 = vsub.f32 %v267_v37, %v434_v25  ;;  %v157_v58 = vsub.f32 %v299_v38, %v437_v26  ;;  %v74_v59 = vsub.f32 %v270_v39, %v434_v25  ;;  %v274_v60 = vunpack.c.l.bf16 %v323_v45  ;;  %p348_p3 = por %p347_p2, %p346_p1 }
  0x12   :  { %v158_v63 = vsub.f32 %v302_v40, %v437_v26  ;;  %v480_v0 = vsub.f32 %v271_v44, %v434_v25  ;;  %v306_v1 = vunpack.c.l.bf16 %v330_v50  ;;  %v275_v2 = vunpack.c.h.bf16 %v323_v45 }
  0x13   :  { %v486_v4 = vsub.f32 %v303_v49, %v437_v26  ;;  %v307_v5 = vunpack.c.h.bf16 %v330_v50  ;;  %v278_v6 = vunpack.c.l.bf16 %v324_v55  ;;  %v310_v7 = vunpack.c.l.bf16 %v331_v56  ;;  %p349_p4 = pnand %p348_p3, %p342_p0 }
  0x14   :  { %v279_v9 = vunpack.c.h.bf16 %v324_v55  ;;  %v311_v10 = vunpack.c.h.bf16 %v331_v56  ;;  %v282_v11 = vunpack.c.l.bf16 %v325_v61  ;;  %v314_v13 = vunpack.c.l.bf16 %v332_v62 }
  0x15   :  { %v76_v14 = vsub.f32 %v274_v60, %v434_v25  ;;  %v283_v15 = vunpack.c.h.bf16 %v325_v61  ;;  %v315_v16 = vunpack.c.h.bf16 %v332_v62  ;;  %v286_v17 = vunpack.c.l.bf16 %v326_v3 }
  0x16   :  { %v160_v18 = vsub.f32 %v306_v1, %v437_v26  ;;  %v318_v19 = vunpack.c.l.bf16 %v333_v8  ;;  %v287_v20 = vunpack.c.h.bf16 %v326_v3  ;;  %v319_v21 = vunpack.c.h.bf16 %v333_v8 }
  0x17   :  { %v77_v22 = vsub.f32 %v275_v2, %v434_v25  ;;  %v161_v23 = vsub.f32 %v307_v5, %v437_v26  ;;  %v78_v24 = vsub.f32 %v278_v6, %v434_v25  ;;  %v162_v27 = vsub.f32 %v310_v7, %v437_v26 }
  0x18   :  { %v338_v28 = vpop.eup %337  ;;  %v79_v29 = vsub.f32 %v279_v9, %v434_v25  ;;  %v163_v30 = vsub.f32 %v311_v10, %v437_v26  ;;  %v80_v31 = vsub.f32 %v282_v11, %v434_v25  ;;  %v164_v32 = vsub.f32 %v314_v13, %v437_v26 }
  0x19   :  { %v340_v33 = vpop.eup %339  ;;  %v502_v34 = vrot.slane %v338_v28, %v416_v12  ;;  %v81_v35 = vsub.f32 %v283_v15, %v434_v25  ;;  %v506_v36 = vsub.f32 %v315_v16, %v437_v26  ;;  %v509_v37 = vsub.f32 %v286_v17, %v434_v25 }
  0x1a   :  { %v512_v38 = vrot.slane %v340_v33, %v416_v12  ;;  %v515_v39 = vsub.f32 %v318_v19, %v437_v26  ;;  %v518_v40 = vsub.f32 %v287_v20, %v434_v25  ;;  %v521_v44 = vsub.f32 %v319_v21, %v437_v26 }
  0x1b   :  { %v92_v45 = vmul.f32 %v502_v34, %v68_v41  ;;  %v93_v49 = vmul.f32 %v502_v34, %v69_v43  ;;  %v94_v50 = vmul.f32 %v502_v34, %v70_v47  ;;  %v95_v55 = vmul.f32 %v502_v34, %v71_v51 }
  0x1c   :  { %v176_v12 = vmul.f32 %v512_v38, %v447_v42  ;;  %v177_v56 = vmul.f32 %v512_v38, %v153_v46  ;;  %v178_v60 = vmul.f32 %v512_v38, %v154_v48  ;;  %v179_v25 = vmul.f32 %v512_v38, %v155_v52 }
  0x1d   :  { %v96_v26 = vmul.f32 %v502_v34, %v72_v53  ;;  %v180_v61 = vmul.f32 %v512_v38, %v156_v54  ;;  %v97_v41 = vmul.f32 %v502_v34, %v73_v57  ;;  %v181_v43 = vmul.f32 %v512_v38, %v157_v58 }
  0x1e   :  { %v192_v47 = vadd.f32 %v176_v12, %v92_v45  ;;  %v193_v62 = vadd.f32 %v177_v56, %v93_v49  ;;  %v194_v51 = vadd.f32 %v178_v60, %v94_v50  ;;  %v195_v1 = vadd.f32 %v179_v25, %v95_v55 }
  0x1f   :  { %v196_v2 = vadd.f32 %v180_v61, %v96_v26  ;;  %v197_v42 = vadd.f32 %v181_v43, %v97_v41  ;;  %v98_v46 = vmul.f32 %v502_v34, %v74_v59  ;;  %v182_v48 = vmul.f32 %v512_v38, %v158_v63 }
  0x20   :  { %v208_v3 = vmax.f32 %v192_v47, 0.0  ;;  %v209_v52 = vmax.f32 %v193_v62, 0.0  ;;  %v210_v5 = vmax.f32 %v194_v51, 0.0  ;;  %v211_v53 = vmax.f32 %v195_v1, 0.0 }
  0x21   :  { %v212_v6 = vmax.f32 %v196_v2, 0.0  ;;  %v213_v54 = vmax.f32 %v197_v42, 0.0  ;;  %v198_v7 = vadd.f32 %v182_v48, %v98_v46  ;;  %v99_v57 = vmul.f32 %v502_v34, %v480_v0 }
  0x22   :  { %224 = vst [vmem:[#allocation2] sm:$0xff] %v208_v3  ;;  %225 = vst [vmem:[#allocation2 + $0x8] sm:$0xff] %v209_v52  ;;  %v183_v58 = vmul.f32 %v512_v38, %v486_v4  ;;  %v100_v59 = vmul.f32 %v502_v34, %v76_v14  ;;  %v184_v63 = vmul.f32 %v512_v38, %v160_v18 }
  0x23   :  { %226 = vst [vmem:[#allocation2 + $0x10] sm:$0xff] %v210_v5  ;;  %227 = vst [vmem:[#allocation2 + $0x18] sm:$0xff] %v211_v53  ;;  %v101_v8 = vmul.f32 %v502_v34, %v77_v22  ;;  %v214_v9 = vmax.f32 %v198_v7, 0.0  ;;  %v185_v10 = vmul.f32 %v512_v38, %v161_v23  ;;  %v102_v0 = vmul.f32 %v502_v34, %v78_v24 }
  0x24   :  { %228 = vst [vmem:[#allocation2 + $0x20] sm:$0xff] %v212_v6  ;;  %229 = vst [vmem:[#allocation2 + $0x28] sm:$0xff] %v213_v54  ;;  %v186_v11 = vmul.f32 %v512_v38, %v162_v27  ;;  %v199_v13 = vadd.f32 %v183_v58, %v99_v57  ;;  %v200_v15 = vadd.f32 %v184_v63, %v100_v59 }
  0x25   :  { %v103_v16 = vmul.f32 %v502_v34, %v79_v29  ;;  %v187_v4 = vmul.f32 %v512_v38, %v163_v30  ;;  %230 = vst [vmem:[#allocation2 + $0x30] sm:$0xff] %v214_v9  ;;  %v201_v14 = vadd.f32 %v185_v10, %v101_v8  ;;  %v104_v18 = vmul.f32 %v502_v34, %v80_v31 }
  0x26   :  { %v202_v17 = vadd.f32 %v186_v11, %v102_v0  ;;  %v188_v19 = vmul.f32 %v512_v38, %v164_v32  ;;  %v215_v20 = vmax.f32 %v199_v13, 0.0  ;;  %v216_v21 = vmax.f32 %v200_v15, 0.0 }
  0x27   :  { %v203_v22 = vadd.f32 %v187_v4, %v103_v16  ;;  %v105_v23 = vmul.f32 %v502_v34, %v81_v35  ;;  %v217_v24 = vmax.f32 %v201_v14, 0.0  ;;  %v189_v29 = vmul.f32 %v512_v38, %v506_v36 }
  0x28   :  { %v218_v27 = vmax.f32 %v202_v17, 0.0  ;;  %v204_v28 = vadd.f32 %v188_v19, %v104_v18  ;;  %231 = vst [vmem:[#allocation2 + $0x38] sm:$0xff] %v215_v20  ;;  %232 = vst [vmem:[#allocation2 + $0x40] sm:$0xff] %v216_v21  ;;  %v106_v33 = vmul.f32 %v502_v34, %v509_v37  ;;  %v190_v31 = vmul.f32 %v512_v38, %v515_v39 }
  0x29   :  { %v219_v30 = vmax.f32 %v203_v22, 0.0  ;;  %v107_v32 = vmul.f32 %v502_v34, %v518_v40  ;;  %233 = vst [vmem:[#allocation2 + $0x48] sm:$0xff] %v217_v24  ;;  %v205_v45 = vadd.f32 %v189_v29, %v105_v23  ;;  %v191_v49 = vmul.f32 %v512_v38, %v521_v44 }
  0x2a   :  { %234 = vst [vmem:[#allocation2 + $0x50] sm:$0xff] %v218_v27  ;;  %v220_v35 = vmax.f32 %v204_v28, 0.0  ;;  %v206_v36 = vadd.f32 %v190_v31, %v106_v33 }
  0x2b   :  { %235 = vst [vmem:[#allocation2 + $0x58] sm:$0xff] %v219_v30  ;;  %v221_v50 = vmax.f32 %v205_v45, 0.0  ;;  %v207_v37 = vadd.f32 %v191_v49, %v107_v32 }
  0x2c   :  { %236 = vst [vmem:[#allocation2 + $0x60] sm:$0xff] %v220_v35  ;;  %v222_v55 = vmax.f32 %v206_v36, 0.0 }
  0x2d   :  { %237 = vst [vmem:[#allocation2 + $0x68] sm:$0xff] %v221_v50  ;;  %v223_v39 = vmax.f32 %v207_v37, 0.0 }
  0x2e   :  { %238 = vst [vmem:[#allocation2 + $0x70] sm:$0xff] %v222_v55 }
  0x2f   :  { %239 = vst [vmem:[#allocation2 + $0x78] sm:$0xff] %v223_v39 }
  0x30   :  { %352 = shalt.err (!%p349_p4)
}
  0x31   :  { %s364_s7 = smov 128   ;;  %s365_s5 = smov 8  }
  0x32   :  { %251 = dma.vmem_to_hbm [thread:$0]  %s246_s3, 2048, %s572_s6, [#allocation3], %s364_s7, %s364_s7, %s365_s5  }
  0x33   :  { %361 = dma.done.wait [#allocation3], 2048  }
  0x34   :  { %362 = vsyncadd [#allocation3], 4294965248 }
  0x35   :  { %255 = vsyncpa [#allocation3], 1 }

// kernel: convolutional_block_forward.6
= control target key start
LH: loop header
LB: loop body
LE: loop exit
PB: predicated region body
PF: predicated region fallthrough
CT: control target
= control target key end

     0   :  { %v62_v9 = vlaneseq  ;;  %s785_s3 = inlined_call_operand.vmem [shape: bf16[128,128], index: 3, kind: input, shape index: {}]   ;;  %s786_s1 = inlined_call_operand.vmem [shape: f32[1,128], index: 1, kind: input, shape index: {}]   ;;  %s787_s2 = inlined_call_operand.vmem [shape: f32[1,128], index: 2, kind: input, shape index: {}]   ;;  %s788_s0 = inlined_call_operand.vmem [shape: bf16[128,128], index: 0, kind: input, shape index: {}]   ;;  %s789_s5 = inlined_call_operand.vmem [shape: f32[1,128], index: 5, kind: output, shape index: {1}]   ;;  %s790_s6 = inlined_call_operand.vmem [shape: f32[1,128], index: 6, kind: output, shape index: {2}]   ;;  %s791_s4 = inlined_call_operand.vmem [shape: bf16[128,128], index: 4, kind: output, shape index: {0}]  }
   0x1   :  { %v643_v0 = vld [vmem:[%s785_s3 + $0x38] sm:$0xff]   ;;  %v644_v1 = vld [vmem:[%s785_s3 + $0x30] sm:$0xff]   ;;  %v645_v2 = vld [vmem:[%s785_s3 + $0x28] sm:$0xff]  }
   0x2   :  { %594 = vmatprep.subr.bf16.mxu0 %v643_v0  ;;  %626 = vmatprep.subr.bf16.mxu1 %v643_v0  ;;  %v646_v3 = vld [vmem:[%s785_s3 + $0x20] sm:$0xff]   ;;  %v647_v10 = vld [vmem:[%s785_s3 + $0x18] sm:$0xff]   ;;  %v63_v13 = vshrl.u32 %v62_v9, 7  ;;  %v648_v14 = vld [vmem:[%s785_s3 + $0x10] sm:$0xff]  }
   0x3   :  { %595 = vmatpush3.bf16.msra.mxu0 %v643_v0  ;;  %634 = vmatpush3.bf16.msra.mxu1 %v643_v0  ;;  %v21_v4 = vld [vmem:[%s786_s1] sm:$0x1]  ;;  %v649_v16 = vld [vmem:[%s785_s3 + $0x8] sm:$0xff]   ;;  %v565_v19 = vld [vmem:[%s788_s0 + $0x10] sm:$0xff]  }
   0x4   :  { %596 = vmatprep.subr.bf16.mxu0 %v644_v1  ;;  %627 = vmatprep.subr.bf16.mxu1 %v644_v1  ;;  %v23_v5 = vld [vmem:[%s787_s2] sm:$0x1]  ;;  %v22_v6 = vmul.f32 0.0078125, %v21_v4  ;;  %v64_v15 = vsub.s32 0, %v63_v13  ;;  %v564_v18 = vld [vmem:[%s788_s0 + $0x8] sm:$0xff]   ;;  %v566_v22 = vld [vmem:[%s788_s0 + $0x18] sm:$0xff]   ;;  %v502_v29 = vunpack.c.l.bf16 %v565_v19  ;;  %v503_v30 = vunpack.c.h.bf16 %v565_v19 }
   0x5   :  { %v24_v7 = vmul.f32 0.0078125, %v23_v5  ;;  %v493_v17 = vld [vmem:[%s788_s0] sm:$0xff]   ;;  %v568_v26 = vld [vmem:[%s788_s0 + $0x28] sm:$0xff]   ;;  %v498_v27 = vunpack.c.l.bf16 %v564_v18  ;;  %v499_v28 = vunpack.c.h.bf16 %v564_v18  ;;  %v569_v31 = vld [vmem:[%s788_s0 + $0x30] sm:$0xff]   ;;  %v506_v33 = vunpack.c.l.bf16 %v566_v22 }
   0x6   :  { %v25_v8 = vmul.f32 %v22_v6, %v22_v6  ;;  %v494_v20 = vunpack.c.l.bf16 %v493_v17  ;;  %v65_v21 = vrot.slane %v22_v6, %v64_v15  ;;  %v567_v23 = vld [vmem:[%s788_s0 + $0x20] sm:$0xff]   ;;  %v495_v25 = vunpack.c.h.bf16 %v493_v17  ;;  %v570_v32 = vld [vmem:[%s788_s0 + $0x38] sm:$0xff]  }
   0x7   :  { %597 = vmatpush3.bf16.msra.mxu0 %v644_v1  ;;  %635 = vmatpush3.bf16.msra.mxu1 %v644_v1  ;;  %v650_v24 = vld [vmem:[%s785_s3] sm:$0xff]   ;;  %v507_v34 = vunpack.c.h.bf16 %v566_v22  ;;  %v510_v35 = vunpack.c.l.bf16 %v567_v23  ;;  %v511_v36 = vunpack.c.h.bf16 %v567_v23  ;;  %v514_v38 = vunpack.c.l.bf16 %v568_v26 }
   0x8   :  { %598 = vmatprep.subr.bf16.mxu0 %v645_v2  ;;  %628 = vmatprep.subr.bf16.mxu1 %v645_v2  ;;  %v26_v11 = vsub.f32 %v24_v7, %v25_v8  ;;  %v67_v37 = vsub.f32 %v494_v20, %v65_v21  ;;  %v515_v39 = vunpack.c.h.bf16 %v568_v26  ;;  %v68_v40 = vsub.f32 %v495_v25, %v65_v21 }
   0x9   :  { %v518_v41 = vunpack.c.l.bf16 %v569_v31  ;;  %v519_v42 = vunpack.c.h.bf16 %v569_v31  ;;  %v522_v43 = vunpack.c.l.bf16 %v570_v32  ;;  %v69_v44 = vsub.f32 %v498_v27, %v65_v21 }
   0xa   :  { %v27_v12 = vadd.f32 1e-05, %v26_v11  ;;  %v70_v45 = vsub.f32 %v499_v28, %v65_v21  ;;  %v71_v46 = vsub.f32 %v502_v29, %v65_v21  ;;  %v72_v47 = vsub.f32 %v503_v30, %v65_v21 }
   0xb   :  { %599 = vmatpush3.bf16.msra.mxu0 %v645_v2  ;;  %636 = vmatpush3.bf16.msra.mxu1 %v645_v2  ;;  %v73_v49 = vsub.f32 %v506_v33, %v65_v21  ;;  %v74_v50 = vsub.f32 %v507_v34, %v65_v21  ;;  %v75_v51 = vsub.f32 %v510_v35, %v65_v21  ;;  %v523_v58 = vunpack.c.h.bf16 %v570_v32 }
   0xc   :  { %600 = vmatprep.subr.bf16.mxu0 %v646_v3  ;;  %629 = vmatprep.subr.bf16.mxu1 %v646_v3  ;;  %651 = vrsqrt.f32 %v27_v12  ;;  %v76_v52 = vsub.f32 %v511_v36, %v65_v21  ;;  %v77_v54 = vsub.f32 %v514_v38, %v65_v21  ;;  %v78_v55 = vsub.f32 %v515_v39, %v65_v21 }
   0xd   :  { %v79_v56 = vsub.f32 %v518_v41, %v65_v21  ;;  %v80_v57 = vsub.f32 %v519_v42, %v65_v21  ;;  %v81_v59 = vsub.f32 %v522_v43, %v65_v21  ;;  %v82_v11 = vsub.f32 %v523_v58, %v65_v21 }
   0xf   :  { %601 = vmatpush3.bf16.msra.mxu0 %v646_v3  ;;  %637 = vmatpush3.bf16.msra.mxu1 %v646_v3 }
  0x10   :  { %602 = vmatprep.subr.bf16.mxu0 %v647_v10  ;;  %630 = vmatprep.subr.bf16.mxu1 %v647_v10 }
  0x13   :  { %603 = vmatpush3.bf16.msra.mxu0 %v647_v10  ;;  %638 = vmatpush3.bf16.msra.mxu1 %v647_v10 }
  0x14   :  { %604 = vmatprep.subr.bf16.mxu0 %v648_v14  ;;  %631 = vmatprep.subr.bf16.mxu1 %v648_v14 }
  0x17   :  { %605 = vmatpush3.bf16.msra.mxu0 %v648_v14  ;;  %639 = vmatpush3.bf16.msra.mxu1 %v648_v14 }
  0x18   :  { %606 = vmatprep.subr.bf16.mxu0 %v649_v16  ;;  %632 = vmatprep.subr.bf16.mxu1 %v649_v16 }
  0x19   :  { %v652_v48 = vpop.eup %651 }
  0x1a   :  { %v87_v53 = vrot.slane %v652_v48, %v64_v15 }
  0x1b   :  { %607 = vmatpush3.bf16.msra.mxu0 %v649_v16  ;;  %640 = vmatpush3.bf16.msra.mxu1 %v649_v16 }
  0x1c   :  { %608 = vmatprep.subr.bf16.mxu0 %v650_v24  ;;  %633 = vmatprep.subr.bf16.mxu1 %v650_v24  ;;  %v89_v60 = vmul.f32 %v87_v53, %v67_v37  ;;  %v90_v61 = vmul.f32 %v87_v53, %v68_v40  ;;  %v91_v62 = vmul.f32 %v87_v53, %v69_v44  ;;  %v653_v37 = vmov 0.0  }
  0x1d   :  { %v92_v63 = vmul.f32 %v87_v53, %v70_v45  ;;  %v93_v0 = vmul.f32 %v87_v53, %v71_v46  ;;  %v94_v1 = vmul.f32 %v87_v53, %v72_v47  ;;  %v95_v2 = vmul.f32 %v87_v53, %v73_v49  ;;  %374 = vst [vmem:[%s789_s5] sm:$0x1] %v653_v37 }
  0x1e   :  { %v96_v3 = vmul.f32 %v87_v53, %v74_v50  ;;  %v105_v4 = vmax.f32 %v89_v60, 0.0  ;;  %v106_v5 = vmax.f32 %v90_v61, 0.0  ;;  %v107_v6 = vmax.f32 %v91_v62, 0.0  ;;  %375 = vst [vmem:[%s790_s6] sm:$0x1] %v653_v37 }
  0x1f   :  { %609 = vmatpush3.bf16.msra.mxu0 %v650_v24  ;;  %641 = vmatpush3.bf16.msra.mxu1 %v650_v24  ;;  %v108_v7 = vmax.f32 %v92_v63, 0.0  ;;  %v109_v8 = vmax.f32 %v93_v0, 0.0  ;;  %v110_v9 = vmax.f32 %v94_v1, 0.0  ;;  %v111_v10 = vmax.f32 %v95_v2, 0.0 }
  0x20   :  { %v121_v12 = vpack.c.bf16 %v106_v5, %v105_v4  ;;  %v97_v14 = vmul.f32 %v87_v53, %v75_v51  ;;  %v98_v15 = vmul.f32 %v87_v53, %v76_v52  ;;  %v112_v17 = vmax.f32 %v96_v3, 0.0 }
  0x21   :  { %v122_v13 = vpack.c.bf16 %v108_v7, %v107_v6  ;;  %v123_v16 = vpack.c.bf16 %v110_v9, %v109_v8  ;;  %v99_v18 = vmul.f32 %v87_v53, %v77_v54  ;;  %v100_v19 = vmul.f32 %v87_v53, %v78_v55 }
  0x22   :  { %610 = vmatprep.mubr.bf16.mxu0 %v121_v12  ;;  %v113_v20 = vmax.f32 %v97_v14, 0.0  ;;  %v114_v22 = vmax.f32 %v98_v15, 0.0  ;;  %v101_v23 = vmul.f32 %v87_v53, %v79_v56  ;;  %v102_v24 = vmul.f32 %v87_v53, %v80_v57 }
  0x23   :  { %611 = vmatmul.mubr.bf16.vlgmr.msra.gmra.mxu0 %v122_v13  ;;  %v115_v25 = vmax.f32 %v99_v18, 0.0  ;;  %v116_v26 = vmax.f32 %v100_v19, 0.0  ;;  %v103_v27 = vmul.f32 %v87_v53, %v81_v59  ;;  %v104_v28 = vmul.f32 %v87_v53, %v82_v11 }
  0x24   :  { %614 = vmatprep.mubr.bf16.mxu0 %v123_v16  ;;  %v125_v21 = vpack.c.bf16 %v114_v22, %v113_v20  ;;  %v117_v29 = vmax.f32 %v101_v23, 0.0  ;;  %v118_v30 = vmax.f32 %v102_v24, 0.0  ;;  %v124_v33 = vpack.c.bf16 %v112_v17, %v111_v10 }
  0x25   :  { %v126_v31 = vpack.c.bf16 %v116_v26, %v115_v25  ;;  %v119_v34 = vmax.f32 %v103_v27, 0.0  ;;  %v120_v35 = vmax.f32 %v104_v28, 0.0 }
  0x26   :  { %618 = vmatprep.mubr.bf16.mxu1 %v125_v21  ;;  %v127_v32 = vpack.c.bf16 %v118_v30, %v117_v29 }
  0x27   :  { %619 = vmatmul.mubr.bf16.vlgmr.msra.gmra.mxu1 %v126_v31  ;;  %v128_v36 = vpack.c.bf16 %v120_v35, %v119_v34 }
  0x28   :  { %622 = vmatprep.mubr.bf16.mxu1 %v127_v32 }
  0x2b   :  { %615 = vmatmul.mubr.bf16.gmra.mxu0 %v124_v33 }
  0x2f   :  { %623 = vmatmul.mubr.bf16.gmra.mxu1 %v128_v36 }
  0xe3   :  { %v612_v38 = vpop.f32.mrf.mxu0 }
  0xe4   :  { %v403_v51 = vmul.f32 %v612_v38, %v612_v38 }
  0xe5   :  { %v227_v39 = vpop.f32.mrf.mxu0 }
  0xe6   :  { %v401_v45 = vmul.f32 %v227_v39, %v227_v39 }
  0xe7   :  { %v613_v40 = vpop.f32.mrf.mxu0  ;;  %v620_v41 = vpop.f32.mrf.mxu1 }
  0xe8   :  { %v532_v42 = vpack.c.bf16 %v613_v40, %v612_v38  ;;  %v404_v57 = vmul.f32 %v613_v40, %v613_v40  ;;  %v411_v26 = vmul.f32 %v620_v41, %v620_v41 }
  0xe9   :  { %v230_v43 = vpop.f32.mrf.mxu0  ;;  %v259_v44 = vpop.f32.mrf.mxu1 }
  0xea   :  { %571 = vst [vmem:[%s791_s4 + $0x8] sm:$0xff] %v532_v42   ;;  %v527_v46 = vpack.c.bf16 %v230_v43, %v227_v39  ;;  %v377_v47 = vadd.f32 %v230_v43, %v227_v39  ;;  %v402_v48 = vmul.f32 %v230_v43, %v230_v43  ;;  %v409_v19 = vmul.f32 %v259_v44, %v259_v44 }
  0xeb   :  { %v616_v49 = vpop.f32.mrf.mxu0  ;;  %v621_v50 = vpop.f32.mrf.mxu1 }
  0xec   :  { %528 = vst [vmem:[%s791_s4] sm:$0xff] %v527_v46   ;;  %v378_v52 = vadd.f32 %v612_v38, %v377_v47  ;;  %v417_v53 = vadd.f32 %v402_v48, %v401_v45  ;;  %v552_v54 = vpack.c.bf16 %v621_v50, %v620_v41  ;;  %v407_v10 = vmul.f32 %v616_v49, %v616_v49 }
  0xed   :  { %v243_v55 = vpop.f32.mrf.mxu0  ;;  %v262_v56 = vpop.f32.mrf.mxu1  ;;  %v412_v21 = vmul.f32 %v621_v50, %v621_v50 }
  0xee   :  { %v418_v58 = vadd.f32 %v417_v53, %v403_v51  ;;  %v379_v59 = vadd.f32 %v613_v40, %v378_v52  ;;  %575 = vst [vmem:[%s791_s4 + $0x28] sm:$0xff] %v552_v54   ;;  %v547_v60 = vpack.c.bf16 %v262_v56, %v259_v44  ;;  %v405_v0 = vmul.f32 %v243_v55, %v243_v55  ;;  %v376_v53 = vld [vmem:[%s789_s5] sm:$0x1] }
  0xef   :  { %v617_v61 = vpop.f32.mrf.mxu0  ;;  %v624_v62 = vpop.f32.mrf.mxu1  ;;  %v410_v24 = vmul.f32 %v262_v56, %v262_v56 }
  0xf0   :  { %v380_v63 = vadd.f32 %v379_v59, %v243_v55  ;;  %v419_v1 = vadd.f32 %v418_v58, %v404_v57  ;;  %v542_v2 = vpack.c.bf16 %v617_v61, %v616_v49  ;;  %574 = vst [vmem:[%s791_s4 + $0x20] sm:$0xff] %v547_v60   ;;  %v408_v15 = vmul.f32 %v617_v61, %v617_v61 }
  0xf1   :  { %v246_v3 = vpop.f32.mrf.mxu0  ;;  %v275_v4 = vpop.f32.mrf.mxu1  ;;  %v415_v37 = vmul.f32 %v624_v62, %v624_v62 }
  0xf2   :  { %v420_v5 = vadd.f32 %v419_v1, %v405_v0  ;;  %573 = vst [vmem:[%s791_s4 + $0x18] sm:$0xff] %v542_v2   ;;  %v537_v6 = vpack.c.bf16 %v246_v3, %v243_v55  ;;  %v381_v7 = vadd.f32 %v380_v63, %v246_v3  ;;  %v406_v8 = vmul.f32 %v246_v3, %v246_v3 }
  0xf3   :  { %v625_v9 = vpop.f32.mrf.mxu1  ;;  %v413_v32 = vmul.f32 %v275_v4, %v275_v4 }
  0xf4   :  { %572 = vst [vmem:[%s791_s4 + $0x10] sm:$0xff] %v537_v6   ;;  %v382_v11 = vadd.f32 %v616_v49, %v381_v7  ;;  %v421_v12 = vadd.f32 %v420_v5, %v406_v8  ;;  %v562_v13 = vpack.c.bf16 %v625_v9, %v624_v62  ;;  %v416_v40 = vmul.f32 %v625_v9, %v625_v9 }
  0xf5   :  { %v278_v14 = vpop.f32.mrf.mxu1 }
  0xf6   :  { %v383_v16 = vadd.f32 %v617_v61, %v382_v11  ;;  %v422_v17 = vadd.f32 %v421_v12, %v407_v10  ;;  %577 = vst [vmem:[%s791_s4 + $0x38] sm:$0xff] %v562_v13   ;;  %v557_v18 = vpack.c.bf16 %v278_v14, %v275_v4  ;;  %v414_v36 = vmul.f32 %v278_v14, %v278_v14 }
  0xf8   :  { %v423_v20 = vadd.f32 %v422_v17, %v408_v15  ;;  %v384_v22 = vadd.f32 %v383_v16, %v259_v44  ;;  %576 = vst [vmem:[%s791_s4 + $0x30] sm:$0xff] %v557_v18  }
  0xfa   :  { %v385_v23 = vadd.f32 %v384_v22, %v262_v56  ;;  %v424_v25 = vadd.f32 %v423_v20, %v409_v19  ;;  %v400_v56 = vld [vmem:[%s790_s6] sm:$0x1] }
  0xfc   :  { %v386_v27 = vadd.f32 %v620_v41, %v385_v23  ;;  %v425_v28 = vadd.f32 %v424_v25, %v410_v24 }
  0xfe   :  { %v426_v29 = vadd.f32 %v425_v28, %v411_v26  ;;  %v387_v30 = vadd.f32 %v621_v50, %v386_v27 }
 0x100   :  { %v388_v31 = vadd.f32 %v387_v30, %v275_v4  ;;  %v427_v33 = vadd.f32 %v426_v29, %v412_v21 }
 0x102   :  { %v428_v34 = vadd.f32 %v427_v33, %v413_v32  ;;  %v389_v35 = vadd.f32 %v388_v31, %v278_v14 }
 0x104   :  { %v390_v38 = vadd.f32 %v624_v62, %v389_v35  ;;  %v429_v39 = vadd.f32 %v428_v34, %v414_v36 }
 0x106   :  { %v391_v42 = vadd.f32 %v625_v9, %v390_v38  ;;  %v430_v43 = vadd.f32 %v429_v39, %v415_v37 }
 0x108   :  { %v392_v44 = vrot.slane %v391_v42, 4  ;;  %v431_v45 = vadd.f32 %v430_v43, %v416_v40 }
 0x10a   :  { %v393_v46 = vadd.f32 %v392_v44, %v391_v42  ;;  %v432_v41 = vrot.slane %v431_v45, 4 }
 0x10c   :  { %v394_v47 = vrot.slane %v393_v46, 2  ;;  %v433_v48 = vadd.f32 %v432_v41, %v431_v45 }
 0x10e   :  { %v395_v49 = vadd.f32 %v394_v47, %v393_v46  ;;  %v434_v50 = vrot.slane %v433_v48, 2 }
 0x110   :  { %v396_v51 = vrot.slane %v395_v49, 1  ;;  %v435_v52 = vadd.f32 %v434_v50, %v433_v48 }
 0x112   :  { %v397_v54 = vadd.f32 %v396_v51, %v395_v49  ;;  %v436_v55 = vrot.slane %v435_v52, 1 }
 0x114   :  { %v398_v57 = vadd.f32 %v397_v54, %v376_v53  ;;  %v437_v58 = vadd.f32 %v436_v55, %v435_v52 }
 0x116   :  { %399 = vst [vmem:[%s789_s5] sm:$0x1] %v398_v57  ;;  %v438_v59 = vadd.f32 %v437_v58, %v400_v56 }
 0x118   :  { %439 = vst [vmem:[%s790_s6] sm:$0x1] %v438_v59 }

// kernel: convolutional_block_forward.4
= control target key start
LH: loop header
LB: loop body
LE: loop exit
PB: predicated region body
PF: predicated region fallthrough
CT: control target
= control target key end

     0   :  { %v1030_v24 = vmov 0.0   ;;  %s1232_s1 = inlined_call_operand.vmem [shape: bf16[128,128], index: 1, kind: input, shape index: {}]   ;;  %s1233_s2 = inlined_call_operand.vmem [shape: bf16[128,128], index: 2, kind: input, shape index: {}]   ;;  %s1234_s0 = inlined_call_operand.vmem [shape: bf16[128,128], index: 0, kind: input, shape index: {}]   ;;  %s1235_s5 = inlined_call_operand.vmem [shape: f32[1,128], index: 5, kind: output, shape index: {2}]   ;;  %s1236_s6 = inlined_call_operand.vmem [shape: f32[1,128], index: 6, kind: output, shape index: {3}]   ;;  %s1237_s7 = inlined_call_operand.vmem [shape: f32[1,128], index: 7, kind: output, shape index: {4}]   ;;  %s1238_s8 = inlined_call_operand.vmem [shape: f32[1,128], index: 8, kind: output, shape index: {5}]   ;;  %s1239_s3 = inlined_call_operand.vmem [shape: bf16[128,128], index: 3, kind: output, shape index: {0}]   ;;  %s1240_s4 = inlined_call_operand.vmem [shape: bf16[128,128], index: 4, kind: output, shape index: {1}]  }
   0x1   :  { %v1006_v0 = vld [vmem:[%s1232_s1 + $0x38] sm:$0xff]   ;;  %v1008_v2 = vld [vmem:[%s1232_s1 + $0x30] sm:$0xff]   ;;  %v1010_v4 = vld [vmem:[%s1232_s1 + $0x28] sm:$0xff]   ;;  %571 = vst [vmem:[%s1235_s5] sm:$0x1] %v1030_v24 }
   0x2   :  { %v1007_v1 = vld [vmem:[%s1233_s2 + $0x38] sm:$0xff]   ;;  %941 = vmatprep.subr.bf16.mxu0 %v1006_v0  ;;  %v1009_v3 = vld [vmem:[%s1233_s2 + $0x30] sm:$0xff]   ;;  %v1011_v5 = vld [vmem:[%s1233_s2 + $0x28] sm:$0xff]   ;;  %572 = vst [vmem:[%s1236_s6] sm:$0x1] %v1030_v24 }
   0x3   :  { %973 = vmatprep.subr.bf16.mxu1 %v1007_v1  ;;  %942 = vmatpush3.bf16.msra.mxu0 %v1006_v0  ;;  %v1012_v6 = vld [vmem:[%s1232_s1 + $0x20] sm:$0xff]   ;;  %v1014_v8 = vld [vmem:[%s1232_s1 + $0x18] sm:$0xff]   ;;  %v1016_v10 = vld [vmem:[%s1232_s1 + $0x10] sm:$0xff]   ;;  %573 = vst [vmem:[%s1237_s7] sm:$0x1] %v1030_v24 }
   0x4   :  { %974 = vmatpush3.bf16.msra.mxu1 %v1007_v1  ;;  %943 = vmatprep.subr.bf16.mxu0 %v1008_v2  ;;  %v1013_v7 = vld [vmem:[%s1233_s2 + $0x20] sm:$0xff]   ;;  %v1015_v9 = vld [vmem:[%s1233_s2 + $0x18] sm:$0xff]   ;;  %v1017_v12 = vld [vmem:[%s1233_s2 + $0x10] sm:$0xff]   ;;  %574 = vst [vmem:[%s1238_s8] sm:$0x1] %v1030_v24 }
   0x5   :  { %975 = vmatprep.subr.bf16.mxu1 %v1009_v3  ;;  %v1022_v11 = vld [vmem:[%s1234_s0] sm:$0xff]   ;;  %v1018_v13 = vld [vmem:[%s1232_s1 + $0x8] sm:$0xff]   ;;  %v1024_v18 = vld [vmem:[%s1234_s0 + $0x10] sm:$0xff]  }
   0x6   :  { %957 = vmatprep.mubr.bf16.mxu0 %v1022_v11  ;;  %989 = vmatprep.mubr.bf16.mxu1 %v1022_v11  ;;  %v1019_v14 = vld [vmem:[%s1233_s2 + $0x8] sm:$0xff]   ;;  %v1020_v15 = vld [vmem:[%s1232_s1] sm:$0xff]   ;;  %v1025_v19 = vld [vmem:[%s1234_s0 + $0x18] sm:$0xff]  }
   0x7   :  { %944 = vmatpush3.bf16.msra.mxu0 %v1008_v2  ;;  %v1021_v16 = vld [vmem:[%s1233_s2] sm:$0xff]   ;;  %v1023_v17 = vld [vmem:[%s1234_s0 + $0x8] sm:$0xff]   ;;  %v1028_v22 = vld [vmem:[%s1234_s0 + $0x30] sm:$0xff]  }
   0x8   :  { %976 = vmatpush3.bf16.msra.mxu1 %v1009_v3  ;;  %945 = vmatprep.subr.bf16.mxu0 %v1010_v4  ;;  %v1026_v20 = vld [vmem:[%s1234_s0 + $0x20] sm:$0xff]   ;;  %v1027_v21 = vld [vmem:[%s1234_s0 + $0x28] sm:$0xff]   ;;  %v1029_v23 = vld [vmem:[%s1234_s0 + $0x38] sm:$0xff]  }
   0x9   :  { %977 = vmatprep.subr.bf16.mxu1 %v1011_v5 }
   0xb   :  { %946 = vmatpush3.bf16.msra.mxu0 %v1010_v4 }
   0xc   :  { %978 = vmatpush3.bf16.msra.mxu1 %v1011_v5  ;;  %947 = vmatprep.subr.bf16.mxu0 %v1012_v6 }
   0xd   :  { %979 = vmatprep.subr.bf16.mxu1 %v1013_v7 }
   0xf   :  { %948 = vmatpush3.bf16.msra.mxu0 %v1012_v6 }
  0x10   :  { %980 = vmatpush3.bf16.msra.mxu1 %v1013_v7  ;;  %949 = vmatprep.subr.bf16.mxu0 %v1014_v8 }
  0x11   :  { %981 = vmatprep.subr.bf16.mxu1 %v1015_v9 }
  0x13   :  { %950 = vmatpush3.bf16.msra.mxu0 %v1014_v8 }
  0x14   :  { %982 = vmatpush3.bf16.msra.mxu1 %v1015_v9  ;;  %951 = vmatprep.subr.bf16.mxu0 %v1016_v10 }
  0x15   :  { %983 = vmatprep.subr.bf16.mxu1 %v1017_v12 }
  0x17   :  { %952 = vmatpush3.bf16.msra.mxu0 %v1016_v10 }
  0x18   :  { %984 = vmatpush3.bf16.msra.mxu1 %v1017_v12  ;;  %953 = vmatprep.subr.bf16.mxu0 %v1018_v13 }
  0x19   :  { %985 = vmatprep.subr.bf16.mxu1 %v1019_v14 }
  0x1b   :  { %954 = vmatpush3.bf16.msra.mxu0 %v1018_v13 }
  0x1c   :  { %986 = vmatpush3.bf16.msra.mxu1 %v1019_v14  ;;  %955 = vmatprep.subr.bf16.mxu0 %v1020_v15 }
  0x1d   :  { %987 = vmatprep.subr.bf16.mxu1 %v1021_v16 }
  0x1f   :  { %956 = vmatpush3.bf16.msra.mxu0 %v1020_v15 }
  0x20   :  { %988 = vmatpush3.bf16.msra.mxu1 %v1021_v16 }
  0x22   :  { %958 = vmatmul.mubr.bf16.vlgmr.msra.gmra.mxu0 %v1023_v17 }
  0x23   :  { %990 = vmatmul.mubr.bf16.vlgmr.msra.gmra.mxu1 %v1023_v17  ;;  %961 = vmatprep.mubr.bf16.mxu0 %v1024_v18 }
  0x24   :  { %993 = vmatprep.mubr.bf16.mxu1 %v1024_v18 }
  0x2a   :  { %962 = vmatmul.mubr.bf16.gmra.mxu0 %v1025_v19 }
  0x2b   :  { %994 = vmatmul.mubr.bf16.gmra.mxu1 %v1025_v19  ;;  %965 = vmatprep.mubr.bf16.mxu0 %v1026_v20 }
  0x2c   :  { %997 = vmatprep.mubr.bf16.mxu1 %v1026_v20 }
  0x32   :  { %966 = vmatmul.mubr.bf16.gmra.mxu0 %v1027_v21 }
  0x33   :  { %998 = vmatmul.mubr.bf16.gmra.mxu1 %v1027_v21  ;;  %969 = vmatprep.mubr.bf16.mxu0 %v1028_v22 }
  0x34   :  { %1001 = vmatprep.mubr.bf16.mxu1 %v1028_v22 }
  0x3a   :  { %970 = vmatmul.mubr.bf16.gmra.mxu0 %v1029_v23 }
  0x3b   :  { %1002 = vmatmul.mubr.bf16.gmra.mxu1 %v1029_v23 }
  0xe2   :  { %v959_v25 = vpop.f32.mrf.mxu0 }
  0xe3   :  { %v991_v26 = vpop.f32.mrf.mxu1  ;;  %v602_v44 = vmul.f32 %v959_v25, %v959_v25 }
  0xe4   :  { %v183_v27 = vpop.f32.mrf.mxu0  ;;  %v666_v48 = vmul.f32 %v991_v26, %v991_v26 }
  0xe5   :  { %v344_v28 = vpop.f32.mrf.mxu1  ;;  %v600_v34 = vmul.f32 %v183_v27, %v183_v27 }
  0xe6   :  { %v960_v29 = vpop.f32.mrf.mxu0  ;;  %v664_v39 = vmul.f32 %v344_v28, %v344_v28 }
  0xe7   :  { %v823_v30 = vpack.c.bf16 %v960_v29, %v959_v25  ;;  %v992_v31 = vpop.f32.mrf.mxu1  ;;  %v603_v52 = vmul.f32 %v960_v29, %v960_v29 }
  0xe8   :  { %v863_v32 = vpack.c.bf16 %v992_v31, %v991_v26  ;;  %v186_v33 = vpop.f32.mrf.mxu0  ;;  %v667_v56 = vmul.f32 %v992_v31, %v992_v31 }
  0xe9   :  { %895 = vst [vmem:[%s1239_s3 + $0x8] sm:$0xff] %v823_v30   ;;  %v818_v35 = vpack.c.bf16 %v186_v33, %v183_v27  ;;  %v576_v36 = vadd.f32 %v186_v33, %v183_v27  ;;  %v601_v37 = vmul.f32 %v186_v33, %v186_v33  ;;  %v347_v38 = vpop.f32.mrf.mxu1 }
  0xea   :  { %902 = vst [vmem:[%s1240_s4 + $0x8] sm:$0xff] %v863_v32   ;;  %v858_v40 = vpack.c.bf16 %v347_v38, %v344_v28  ;;  %v640_v41 = vadd.f32 %v347_v38, %v344_v28  ;;  %v665_v42 = vmul.f32 %v347_v38, %v347_v38  ;;  %v963_v43 = vpop.f32.mrf.mxu0 }
  0xeb   :  { %819 = vst [vmem:[%s1239_s3] sm:$0xff] %v818_v35   ;;  %v577_v45 = vadd.f32 %v959_v25, %v576_v36  ;;  %v616_v46 = vadd.f32 %v601_v37, %v600_v34  ;;  %v995_v47 = vpop.f32.mrf.mxu1  ;;  %v606_v16 = vmul.f32 %v963_v43, %v963_v43 }
  0xec   :  { %859 = vst [vmem:[%s1240_s4] sm:$0xff] %v858_v40   ;;  %v641_v49 = vadd.f32 %v991_v26, %v640_v41  ;;  %v680_v50 = vadd.f32 %v665_v42, %v664_v39  ;;  %v199_v51 = vpop.f32.mrf.mxu0  ;;  %v670_v20 = vmul.f32 %v995_v47, %v995_v47 }
  0xed   :  { %v617_v53 = vadd.f32 %v616_v46, %v602_v44  ;;  %v578_v54 = vadd.f32 %v960_v29, %v577_v45  ;;  %v360_v55 = vpop.f32.mrf.mxu1  ;;  %v604_v61 = vmul.f32 %v199_v51, %v199_v51 }
  0xee   :  { %v681_v57 = vadd.f32 %v680_v50, %v666_v48  ;;  %v642_v58 = vadd.f32 %v992_v31, %v641_v49  ;;  %v964_v59 = vpop.f32.mrf.mxu0  ;;  %v668_v2 = vmul.f32 %v360_v55, %v360_v55 }
  0xef   :  { %v579_v60 = vadd.f32 %v578_v54, %v199_v51  ;;  %v618_v62 = vadd.f32 %v617_v53, %v603_v52  ;;  %v833_v63 = vpack.c.bf16 %v964_v59, %v963_v43  ;;  %v996_v0 = vpop.f32.mrf.mxu1  ;;  %v607_v24 = vmul.f32 %v964_v59, %v964_v59 }
  0xf0   :  { %v643_v1 = vadd.f32 %v642_v58, %v360_v55  ;;  %v682_v3 = vadd.f32 %v681_v57, %v667_v56  ;;  %v873_v4 = vpack.c.bf16 %v996_v0, %v995_v47  ;;  %v202_v5 = vpop.f32.mrf.mxu0  ;;  %v671_v28 = vmul.f32 %v996_v0, %v996_v0 }
  0xf1   :  { %v619_v6 = vadd.f32 %v618_v62, %v604_v61  ;;  %897 = vst [vmem:[%s1239_s3 + $0x18] sm:$0xff] %v833_v63   ;;  %v828_v7 = vpack.c.bf16 %v202_v5, %v199_v51  ;;  %v580_v8 = vadd.f32 %v579_v60, %v202_v5  ;;  %v605_v9 = vmul.f32 %v202_v5, %v202_v5  ;;  %v363_v10 = vpop.f32.mrf.mxu1 }
  0xf2   :  { %v683_v11 = vadd.f32 %v682_v3, %v668_v2  ;;  %904 = vst [vmem:[%s1240_s4 + $0x18] sm:$0xff] %v873_v4   ;;  %v868_v12 = vpack.c.bf16 %v363_v10, %v360_v55  ;;  %v644_v13 = vadd.f32 %v643_v1, %v363_v10  ;;  %v669_v14 = vmul.f32 %v363_v10, %v363_v10  ;;  %v967_v15 = vpop.f32.mrf.mxu0 }
  0xf3   :  { %896 = vst [vmem:[%s1239_s3 + $0x10] sm:$0xff] %v828_v7   ;;  %v581_v17 = vadd.f32 %v963_v43, %v580_v8  ;;  %v620_v18 = vadd.f32 %v619_v6, %v605_v9  ;;  %v999_v19 = vpop.f32.mrf.mxu1  ;;  %v610_v52 = vmul.f32 %v967_v15, %v967_v15 }
  0xf4   :  { %903 = vst [vmem:[%s1240_s4 + $0x10] sm:$0xff] %v868_v12   ;;  %v645_v21 = vadd.f32 %v995_v47, %v644_v13  ;;  %v684_v22 = vadd.f32 %v683_v11, %v669_v14  ;;  %v215_v23 = vpop.f32.mrf.mxu0  ;;  %v674_v56 = vmul.f32 %v999_v19, %v999_v19 }
  0xf5   :  { %v621_v25 = vadd.f32 %v620_v18, %v606_v16  ;;  %v582_v26 = vadd.f32 %v964_v59, %v581_v17  ;;  %v376_v27 = vpop.f32.mrf.mxu1  ;;  %v608_v33 = vmul.f32 %v215_v23, %v215_v23 }
  0xf6   :  { %v685_v29 = vadd.f32 %v684_v22, %v670_v20  ;;  %v646_v30 = vadd.f32 %v996_v0, %v645_v21  ;;  %v968_v31 = vpop.f32.mrf.mxu0  ;;  %v672_v38 = vmul.f32 %v376_v27, %v376_v27 }
  0xf7   :  { %v583_v32 = vadd.f32 %v582_v26, %v215_v23  ;;  %v622_v34 = vadd.f32 %v621_v25, %v607_v24  ;;  %v843_v35 = vpack.c.bf16 %v968_v31, %v967_v15  ;;  %v1000_v36 = vpop.f32.mrf.mxu1  ;;  %v611_v60 = vmul.f32 %v968_v31, %v968_v31 }
  0xf8   :  { %v647_v37 = vadd.f32 %v646_v30, %v376_v27  ;;  %v686_v39 = vadd.f32 %v685_v29, %v671_v28  ;;  %v883_v40 = vpack.c.bf16 %v1000_v36, %v999_v19  ;;  %v218_v41 = vpop.f32.mrf.mxu0  ;;  %v675_v0 = vmul.f32 %v1000_v36, %v1000_v36 }
  0xf9   :  { %v623_v42 = vadd.f32 %v622_v34, %v608_v33  ;;  %899 = vst [vmem:[%s1239_s3 + $0x28] sm:$0xff] %v843_v35   ;;  %v838_v43 = vpack.c.bf16 %v218_v41, %v215_v23  ;;  %v584_v44 = vadd.f32 %v583_v32, %v218_v41  ;;  %v609_v45 = vmul.f32 %v218_v41, %v218_v41  ;;  %v379_v46 = vpop.f32.mrf.mxu1 }
  0xfa   :  { %v687_v47 = vadd.f32 %v686_v39, %v672_v38  ;;  %906 = vst [vmem:[%s1240_s4 + $0x28] sm:$0xff] %v883_v40   ;;  %v878_v48 = vpack.c.bf16 %v379_v46, %v376_v27  ;;  %v648_v49 = vadd.f32 %v647_v37, %v379_v46  ;;  %v673_v50 = vmul.f32 %v379_v46, %v379_v46  ;;  %v971_v51 = vpop.f32.mrf.mxu0 }
  0xfb   :  { %898 = vst [vmem:[%s1239_s3 + $0x20] sm:$0xff] %v838_v43   ;;  %v585_v53 = vadd.f32 %v967_v15, %v584_v44  ;;  %v624_v54 = vadd.f32 %v623_v42, %v609_v45  ;;  %v1003_v55 = vpop.f32.mrf.mxu1  ;;  %v614_v23 = vmul.f32 %v971_v51, %v971_v51 }
  0xfc   :  { %905 = vst [vmem:[%s1240_s4 + $0x20] sm:$0xff] %v878_v48   ;;  %v649_v57 = vadd.f32 %v999_v19, %v648_v49  ;;  %v688_v58 = vadd.f32 %v687_v47, %v673_v50  ;;  %v231_v59 = vpop.f32.mrf.mxu0  ;;  %v678_v26 = vmul.f32 %v1003_v55, %v1003_v55 }
  0xfd   :  { %v625_v61 = vadd.f32 %v624_v54, %v610_v52  ;;  %v586_v62 = vadd.f32 %v968_v31, %v585_v53  ;;  %v392_v63 = vpop.f32.mrf.mxu1  ;;  %v612_v5 = vmul.f32 %v231_v59, %v231_v59  ;;  %v575_v53 = vld [vmem:[%s1235_s5] sm:$0x1] }
  0xfe   :  { %v689_v1 = vadd.f32 %v688_v58, %v674_v56  ;;  %v650_v2 = vadd.f32 %v1000_v36, %v649_v57  ;;  %v972_v3 = vpop.f32.mrf.mxu0  ;;  %v676_v10 = vmul.f32 %v392_v63, %v392_v63  ;;  %v639_v58 = vld [vmem:[%s1237_s7] sm:$0x1] }
  0xff   :  { %v587_v4 = vadd.f32 %v586_v62, %v231_v59  ;;  %v626_v6 = vadd.f32 %v625_v61, %v611_v60  ;;  %v853_v7 = vpack.c.bf16 %v972_v3, %v971_v51  ;;  %v1004_v8 = vpop.f32.mrf.mxu1  ;;  %v615_v29 = vmul.f32 %v972_v3, %v972_v3 }
 0x100   :  { %v651_v9 = vadd.f32 %v650_v2, %v392_v63  ;;  %v690_v11 = vadd.f32 %v689_v1, %v675_v0  ;;  %v893_v12 = vpack.c.bf16 %v1004_v8, %v1003_v55  ;;  %v234_v13 = vpop.f32.mrf.mxu0  ;;  %v679_v32 = vmul.f32 %v1004_v8, %v1004_v8  ;;  %v663_v0 = vld [vmem:[%s1238_s8] sm:$0x1] }
 0x101   :  { %v627_v14 = vadd.f32 %v626_v6, %v612_v5  ;;  %901 = vst [vmem:[%s1239_s3 + $0x38] sm:$0xff] %v853_v7   ;;  %v848_v15 = vpack.c.bf16 %v234_v13, %v231_v59  ;;  %v588_v16 = vadd.f32 %v587_v4, %v234_v13  ;;  %v613_v17 = vmul.f32 %v234_v13, %v234_v13  ;;  %v395_v18 = vpop.f32.mrf.mxu1  ;;  %v599_v59 = vld [vmem:[%s1236_s6] sm:$0x1] }
 0x102   :  { %v691_v19 = vadd.f32 %v690_v11, %v676_v10  ;;  %908 = vst [vmem:[%s1240_s4 + $0x38] sm:$0xff] %v893_v12   ;;  %v888_v20 = vpack.c.bf16 %v395_v18, %v392_v63  ;;  %v652_v21 = vadd.f32 %v651_v9, %v395_v18  ;;  %v677_v22 = vmul.f32 %v395_v18, %v395_v18 }
 0x103   :  { %900 = vst [vmem:[%s1239_s3 + $0x30] sm:$0xff] %v848_v15   ;;  %v589_v24 = vadd.f32 %v971_v51, %v588_v16  ;;  %v628_v25 = vadd.f32 %v627_v14, %v613_v17 }
 0x104   :  { %907 = vst [vmem:[%s1240_s4 + $0x30] sm:$0xff] %v888_v20   ;;  %v653_v27 = vadd.f32 %v1003_v55, %v652_v21  ;;  %v692_v28 = vadd.f32 %v691_v19, %v677_v22 }
 0x105   :  { %v590_v30 = vadd.f32 %v972_v3, %v589_v24  ;;  %v629_v31 = vadd.f32 %v628_v25, %v614_v23 }
 0x106   :  { %v654_v33 = vadd.f32 %v1004_v8, %v653_v27  ;;  %v693_v34 = vadd.f32 %v692_v28, %v678_v26 }
 0x107   :  { %v591_v35 = vrot.slane %v590_v30, 4  ;;  %v630_v36 = vadd.f32 %v629_v31, %v615_v29 }
 0x108   :  { %v655_v37 = vrot.slane %v654_v33, 4  ;;  %v694_v38 = vadd.f32 %v693_v34, %v679_v32 }
 0x109   :  { %v592_v39 = vadd.f32 %v591_v35, %v590_v30  ;;  %v631_v40 = vrot.slane %v630_v36, 4 }
 0x10a   :  { %v656_v41 = vadd.f32 %v655_v37, %v654_v33  ;;  %v695_v42 = vrot.slane %v694_v38, 4 }
 0x10b   :  { %v593_v43 = vrot.slane %v592_v39, 2  ;;  %v632_v44 = vadd.f32 %v631_v40, %v630_v36 }
 0x10c   :  { %v657_v45 = vrot.slane %v656_v41, 2  ;;  %v696_v46 = vadd.f32 %v695_v42, %v694_v38 }
 0x10d   :  { %v594_v47 = vadd.f32 %v593_v43, %v592_v39  ;;  %v633_v48 = vrot.slane %v632_v44, 2 }
 0x10e   :  { %v658_v49 = vadd.f32 %v657_v45, %v656_v41  ;;  %v697_v50 = vrot.slane %v696_v46, 2 }
 0x10f   :  { %v595_v51 = vrot.slane %v594_v47, 1  ;;  %v634_v52 = vadd.f32 %v633_v48, %v632_v44 }
 0x110   :  { %v659_v54 = vrot.slane %v658_v49, 1  ;;  %v698_v55 = vadd.f32 %v697_v50, %v696_v46 }
 0x111   :  { %v596_v56 = vadd.f32 %v595_v51, %v594_v47  ;;  %v635_v57 = vrot.slane %v634_v52, 1 }
 0x112   :  { %v660_v60 = vadd.f32 %v659_v54, %v658_v49  ;;  %v699_v61 = vrot.slane %v698_v55, 1 }
 0x113   :  { %v597_v62 = vadd.f32 %v596_v56, %v575_v53  ;;  %v636_v63 = vadd.f32 %v635_v57, %v634_v52 }
 0x114   :  { %v661_v1 = vadd.f32 %v660_v60, %v639_v58  ;;  %v700_v2 = vadd.f32 %v699_v61, %v698_v55 }
 0x115   :  { %598 = vst [vmem:[%s1235_s5] sm:$0x1] %v597_v62  ;;  %v637_v3 = vadd.f32 %v636_v63, %v599_v59 }
 0x116   :  { %662 = vst [vmem:[%s1237_s7] sm:$0x1] %v661_v1  ;;  %v701_v4 = vadd.f32 %v700_v2, %v663_v0 }
 0x117   :  { %638 = vst [vmem:[%s1236_s6] sm:$0x1] %v637_v3 }
 0x118   :  { %702 = vst [vmem:[%s1238_s8] sm:$0x1] %v701_v4 }

// kernel: convolutional_block_forward.5
= control target key start
LH: loop header
LB: loop body
LE: loop exit
PB: predicated region body
PF: predicated region fallthrough
CT: control target
= control target key end

     0   :  { %s2741_s21 = smov 0   ;;  %s3224_s0 = inlined_call_operand.vmem [shape: bf16[128,128], index: 0, kind: input, shape index: {}]   ;;  %s3225_s1 = inlined_call_operand.vmem [shape: f32[1,128], index: 1, kind: input, shape index: {}]   ;;  %s3226_s2 = inlined_call_operand.vmem [shape: f32[1,128], index: 2, kind: input, shape index: {}]   ;;  %s3227_s3 = inlined_call_operand.vmem [shape: bf16[9,128,128], index: 3, kind: input, shape index: {}]   ;;  %s3228_s4 = inlined_call_operand.vmem [shape: bf16[128,128], index: 4, kind: output, shape index: {0}]   ;;  %s3229_s5 = inlined_call_operand.vmem [shape: f32[1,128], index: 5, kind: output, shape index: {1}]   ;;  %s3230_s6 = inlined_call_operand.vmem [shape: f32[1,128], index: 6, kind: output, shape index: {2}]  }
   0x1 LB: > { %s2004_s22 = sadd.s32 4294967295, %s2703_s21   ;;  %p2008_p0 = scmp.ge.s32.totalorder %s2703_s21, 1  ;;  %s2703_s21 = sphi %s2741_s21, %s17_s21  }
   0x2   : > { %p208_p1 = scmp.lt.s32.totalorder %s2703_s21, 3 }
   0x4   : > { %p209_p2 = pnand %p2008_p0, %p208_p1 }
   0x6   : > { %212 = sbr.rel (%p209_p2) target bundleno = 434 (0x1b2), region = 36 }
   0xb   : > { %s2009_s23 = sshll.u32 %s2004_s22, 3  ;;  %p2013_p4 = scmp.ne.s32.totalorder %s2004_s22, 0 }
   0xc   : > { %p239_p3 = scmp.lt.s32.totalorder %s2009_s23, 15 }
   0xd   : > { %254 = sbr.rel (%p2013_p4) target bundleno = 30 (0x1e), region = 40 }
   0xe   : > { %s3248_s23 = smov (!%p239_p3, %s2009_s23), 15 }
   0xf   : > { %s2010_s24 = sshll.u32 %s3248_s23, 2 }
  0x10   : > { %s2752_s27 = scalar_lea.vmem %s3224_s0, %s2010_s24  ;;  %s2757_s30 = scalar_lea.vmem %s3228_s4, %s2010_s24 }
  0x12   : > { %v2705_v0 = vmov 0.0  }
  0x13   : > { %255 = vst [vmem:[#allocation2] sm:$0xff] %v2705_v0  ;;  %256 = vst [vmem:[#allocation2 + $0x8] sm:$0x3] %v2705_v0 }
  0x14   : > { %257 = vst [vmem:[#allocation2 + $0x10] sm:$0xff] %v2705_v0  ;;  %258 = vst [vmem:[#allocation2 + $0x18] sm:$0x3] %v2705_v0 }
  0x15   : > { %259 = vst [vmem:[#allocation2 + $0x20] sm:$0xff] %v2705_v0  ;;  %260 = vst [vmem:[#allocation2 + $0x28] sm:$0x3] %v2705_v0 }
  0x16   : > { %261 = vst [vmem:[#allocation2 + $0x30] sm:$0xff] %v2705_v0  ;;  %262 = vst [vmem:[#allocation2 + $0x38] sm:$0x3] %v2705_v0 }
  0x17   : > { %263 = vst [vmem:[#allocation2 + $0x40] sm:$0xff] %v2705_v0  ;;  %264 = vst [vmem:[#allocation2 + $0x48] sm:$0x3] %v2705_v0 }
  0x18   : > { %265 = vst [vmem:[#allocation2 + $0x50] sm:$0xff] %v2705_v0  ;;  %266 = vst [vmem:[#allocation2 + $0x58] sm:$0x3] %v2705_v0 }
  0x19   : > { %267 = vst [vmem:[#allocation2 + $0x60] sm:$0xff] %v2705_v0  ;;  %268 = vst [vmem:[#allocation2 + $0x68] sm:$0x3] %v2705_v0 }
  0x1a   : > { %269 = vst [vmem:[#allocation2 + $0x70] sm:$0xff] %v2705_v0  ;;  %270 = vst [vmem:[#allocation2 + $0x78] sm:$0x3] %v2705_v0 }
  0x1b   : > { %271 = vst [vmem:[#allocation2 + $0x80] sm:$0xff] %v2705_v0  ;;  %272 = vst [vmem:[#allocation2 + $0x88] sm:$0x3] %v2705_v0 }
  0x1c   : > { %273 = vst [vmem:[#allocation2 + $0x90] sm:$0xff] %v2705_v0  ;;  %274 = vst [vmem:[#allocation2 + $0x98] sm:$0x3] %v2705_v0 }
  0x1d   : > { %275 = vst [vmem:[%s3229_s5] sm:$0x1] %v2705_v0  ;;  %276 = vst [vmem:[%s3230_s6] sm:$0x1] %v2705_v0 }
  0x1e PF: > { %v2623_v1 = vld [vmem:[%s3227_s3 + $0x38] sm:$0xff]   ;;  %v2625_v3 = vld [vmem:[%s3227_s3 + $0x30] sm:$0xff]   ;;  %v2627_v5 = vld [vmem:[%s3227_s3 + $0x28] sm:$0xff]   ;;  %v302_v21 = vlaneseq }
  0x1f   : > { %v2624_v2 = vld [vmem:[%s3227_s3 + $0x78] sm:$0xff]   ;;  %2382 = vmatprep.subr.bf16.mxu0 %v2623_v1  ;;  %v2626_v4 = vld [vmem:[%s3227_s3 + $0x70] sm:$0xff]   ;;  %v2628_v6 = vld [vmem:[%s3227_s3 + $0x68] sm:$0xff]  }
  0x20   : > { %2406 = vmatprep.subr.bf16.mxu1 %v2624_v2  ;;  %2383 = vmatpush3.bf16.msra.mxu0 %v2623_v1  ;;  %v2629_v7 = vld [vmem:[%s3227_s3 + $0x20] sm:$0xff]   ;;  %v2631_v9 = vld [vmem:[%s3227_s3 + $0x18] sm:$0xff]   ;;  %v2633_v11 = vld [vmem:[%s3227_s3 + $0x10] sm:$0xff]   ;;  %v303_v25 = vshrl.u32 %v302_v21, 7 }
  0x21   : > { %2407 = vmatpush3.bf16.msra.mxu1 %v2624_v2  ;;  %2384 = vmatprep.subr.bf16.mxu0 %v2625_v3  ;;  %v2630_v8 = vld [vmem:[%s3227_s3 + $0x60] sm:$0xff]   ;;  %v2632_v10 = vld [vmem:[%s3227_s3 + $0x58] sm:$0xff]   ;;  %v2634_v14 = vld [vmem:[%s3227_s3 + $0x50] sm:$0xff]  }
  0x22   : > { %2408 = vmatprep.subr.bf16.mxu1 %v2626_v4  ;;  %v277_v12 = vld [vmem:[%s3225_s1] sm:$0x1]  ;;  %v2635_v18 = vld [vmem:[%s3227_s3 + $0x8] sm:$0xff]   ;;  %v2823_v27 = vld [vmem:[%s3227_s3 + $0xb8] sm:$0xff]   ;;  %v304_v29 = vsub.s32 0, %v303_v25 }
  0x23   : > { %v279_v13 = vld [vmem:[%s3226_s2] sm:$0x1]  ;;  %v278_v15 = vmul.f32 0.0078125, %v277_v12  ;;  %v2636_v19 = vld [vmem:[%s3227_s3 + $0x48] sm:$0xff]   ;;  %v2828_v28 = vld [vmem:[%s3227_s3 + $0xf8] sm:$0xff]  }
  0x24   : > { %2385 = vmatpush3.bf16.msra.mxu0 %v2625_v3  ;;  %v280_v16 = vmul.f32 0.0078125, %v279_v13  ;;  %v2637_v23 = vld [vmem:[%s3227_s3] sm:$0xff]   ;;  %v2268_v30 = vld [vmem:[%s2752_s27 + $0x8] sm:$0xff]   ;;  %v2269_v31 = vld [vmem:[%s2752_s27 + $0x10] sm:$0xff]  }
  0x25   : > { %2409 = vmatpush3.bf16.msra.mxu1 %v2626_v4  ;;  %2386 = vmatprep.subr.bf16.mxu0 %v2627_v5  ;;  %v281_v17 = vmul.f32 %v278_v15, %v278_v15  ;;  %v2638_v24 = vld [vmem:[%s3227_s3 + $0x40] sm:$0xff]   ;;  %v2270_v32 = vld [vmem:[%s2752_s27 + $0x18] sm:$0xff]   ;;  %v305_v35 = vrot.slane %v278_v15, %v304_v29  ;;  %v2238_v36 = vunpack.c.l.bf16 %v2268_v30  ;;  %v2239_v37 = vunpack.c.h.bf16 %v2268_v30  ;;  %v2644_v13 = vld [vmem:[%s3227_s3 + $0xe8] sm:$0xff]  }
  0x26   : > { %2410 = vmatprep.subr.bf16.mxu1 %v2628_v6  ;;  %v2233_v26 = vld [vmem:[%s2752_s27] sm:$0xff]   ;;  %v2242_v38 = vunpack.c.l.bf16 %v2269_v31  ;;  %v2243_v39 = vunpack.c.h.bf16 %v2269_v31  ;;  %v2246_v40 = vunpack.c.l.bf16 %v2270_v32  ;;  %v2247_v41 = vunpack.c.h.bf16 %v2270_v32  ;;  %v2648_v30 = vld [vmem:[%s3227_s3 + $0xd8] sm:$0xff]  }
  0x27   : > { %v282_v20 = vsub.f32 %v280_v16, %v281_v17  ;;  %v2234_v33 = vunpack.c.l.bf16 %v2233_v26  ;;  %v2235_v34 = vunpack.c.h.bf16 %v2233_v26  ;;  %v309_v44 = vsub.f32 %v2238_v36, %v305_v35  ;;  %v519_v56 = vld [vmem:[#allocation2 + $0x1] sm:$0xff]  ;;  %v2647_v36 = vld [vmem:[%s3227_s3 + $0x98] sm:$0xff]  }
  0x28   : > { %2387 = vmatpush3.bf16.msra.mxu0 %v2627_v5  ;;  %v310_v45 = vsub.f32 %v2239_v37, %v305_v35  ;;  %v311_v47 = vsub.f32 %v2242_v38, %v305_v35  ;;  %v312_v48 = vsub.f32 %v2243_v39, %v305_v35  ;;  %v313_v49 = vsub.f32 %v2246_v40, %v305_v35  ;;  %v354_v12 = vld [vmem:[#allocation2] sm:$0xff]  ;;  %v2643_v26 = vld [vmem:[%s3227_s3 + $0xa8] sm:$0xff]   ;;  %v2649_v38 = vld [vmem:[%s3227_s3 + $0x90] sm:$0xff]  }
  0x29   : > { %2411 = vmatpush3.bf16.msra.mxu1 %v2628_v6  ;;  %2388 = vmatprep.subr.bf16.mxu0 %v2629_v7  ;;  %v283_v22 = vadd.f32 1e-05, %v282_v20  ;;  %v307_v42 = vsub.f32 %v2234_v33, %v305_v35  ;;  %v308_v43 = vsub.f32 %v2235_v34, %v305_v35  ;;  %v314_v50 = vsub.f32 %v2247_v41, %v305_v35  ;;  %v685_v31 = vld [vmem:[#allocation2 + $0x2] sm:$0xff]  ;;  %v2650_v34 = vld [vmem:[%s3227_s3 + $0xd0] sm:$0xff]   ;;  %v2656_v41 = vld [vmem:[%s3227_s3 + $0x178] sm:$0xff]  }
  0x2a   : > { %2412 = vmatprep.subr.bf16.mxu1 %v2630_v8  ;;  %v2652_v37 = vld [vmem:[%s3227_s3 + $0xc8] sm:$0xff]   ;;  %v2654_v39 = vld [vmem:[%s3227_s3 + $0xc0] sm:$0xff]  }
  0x2b   : > { %2695 = vrsqrt.f32 %v283_v22  ;;  %v2641_v22 = vld [vmem:[%s3227_s3 + $0xb0] sm:$0xff]   ;;  %v2651_v40 = vld [vmem:[%s3227_s3 + $0x88] sm:$0xff]  }
  0x2c   : > { %2389 = vmatpush3.bf16.msra.mxu0 %v2629_v7 }
  0x2d   : > { %2413 = vmatpush3.bf16.msra.mxu1 %v2630_v8  ;;  %2390 = vmatprep.subr.bf16.mxu0 %v2631_v9  ;;  %v2642_v8 = vld [vmem:[%s3227_s3 + $0xf0] sm:$0xff]  }
  0x2e   : > { %2414 = vmatprep.subr.bf16.mxu1 %v2632_v10 }
  0x30   : > { %2391 = vmatpush3.bf16.msra.mxu0 %v2631_v9 }
  0x31   : > { %2415 = vmatpush3.bf16.msra.mxu1 %v2632_v10  ;;  %2392 = vmatprep.subr.bf16.mxu0 %v2633_v11 }
  0x32   : > { %2416 = vmatprep.subr.bf16.mxu1 %v2634_v14 }
  0x34   : > { %2393 = vmatpush3.bf16.msra.mxu0 %v2633_v11 }
  0x35   : > { %2417 = vmatpush3.bf16.msra.mxu1 %v2634_v14  ;;  %2394 = vmatprep.subr.bf16.mxu0 %v2635_v18 }
  0x36   : > { %2418 = vmatprep.subr.bf16.mxu1 %v2636_v19 }
  0x38   : > { %2395 = vmatpush3.bf16.msra.mxu0 %v2635_v18  ;;  %v2696_v46 = vpop.eup %2695 }
  0x39   : > { %2419 = vmatpush3.bf16.msra.mxu1 %v2636_v19  ;;  %2396 = vmatprep.subr.bf16.mxu0 %v2637_v23  ;;  %v319_v51 = vrot.slane %v2696_v46, %v304_v29 }
  0x3a   : > { %2420 = vmatprep.subr.bf16.mxu1 %v2638_v24 }
  0x3b   : > { %v321_v52 = vmul.f32 %v319_v51, %v307_v42  ;;  %v322_v53 = vmul.f32 %v319_v51, %v308_v43  ;;  %v323_v54 = vmul.f32 %v319_v51, %v309_v44  ;;  %v324_v55 = vmul.f32 %v319_v51, %v310_v45  ;;  %v2653_v43 = vld [vmem:[%s3227_s3 + $0x80] sm:$0xff]   ;;  %v2658_v44 = vld [vmem:[%s3227_s3 + $0x170] sm:$0xff]  }
  0x3c   : > { %2397 = vmatpush3.bf16.msra.mxu0 %v2637_v23  ;;  %v325_v57 = vmul.f32 %v319_v51, %v311_v47  ;;  %v326_v58 = vmul.f32 %v319_v51, %v312_v48  ;;  %v327_v59 = vmul.f32 %v319_v51, %v313_v49  ;;  %v328_v60 = vmul.f32 %v319_v51, %v314_v50  ;;  %v2646_v23 = vld [vmem:[%s3227_s3 + $0xe0] sm:$0xff]   ;;  %v2655_v48 = vld [vmem:[%s3227_s3 + $0x138] sm:$0xff]  }
  0x3d   : > { %2421 = vmatpush3.bf16.msra.mxu1 %v2638_v24  ;;  %2430 = vmatprep.subr.bf16.mxu0 %v2823_v27  ;;  %v2835_v61 = vmax.f32 %v321_v52, 0.0  ;;  %v2837_v62 = vmax.f32 %v322_v53, 0.0  ;;  %v2839_v63 = vmax.f32 %v323_v54, 0.0  ;;  %v2841_v0 = vmax.f32 %v324_v55, 0.0  ;;  %v2660_v52 = vld [vmem:[%s3227_s3 + $0x168] sm:$0xff]  }
  0x3e   : > { %2454 = vmatprep.subr.bf16.mxu1 %v2828_v28  ;;  %v2843_v1 = vmax.f32 %v325_v57, 0.0  ;;  %v2845_v2 = vmax.f32 %v326_v58, 0.0  ;;  %v2847_v3 = vmax.f32 %v327_v59, 0.0  ;;  %v2849_v4 = vmax.f32 %v328_v60, 0.0  ;;  %v2662_v57 = vld [vmem:[%s3227_s3 + $0x160] sm:$0xff]  }
  0x3f   : > { %338 = vst [vmem:[#allocation2 + $0x11] sm:$0xff] %v2835_v61  ;;  %v535_v5 = vpack.c.bf16 %v2835_v61, %v519_v56  ;;  %339 = vst [vmem:[#allocation2 + $0x21] sm:$0xff] %v2837_v62  ;;  %v2857_v6 = vpack.c.bf16 %v2839_v63, %v2837_v62  ;;  %v1034_v7 = vpack.c.bf16 %v2841_v0, %v2839_v63  ;;  %v2657_v56 = vld [vmem:[%s3227_s3 + $0x130] sm:$0xff]  }
  0x40   : > { %340 = vst [vmem:[#allocation2 + $0x31] sm:$0xff] %v2839_v63  ;;  %341 = vst [vmem:[#allocation2 + $0x41] sm:$0xff] %v2841_v0  ;;  %v2868_v9 = vpack.c.bf16 %v2843_v1, %v2841_v0  ;;  %v1035_v10 = vpack.c.bf16 %v2845_v2, %v2843_v1  ;;  %v1036_v11 = vpack.c.bf16 %v2849_v4, %v2847_v3  ;;  %v2677_v63 = vld [vmem:[%s3227_s3 + $0x1a0] sm:$0xff]   ;;  %v2682_v0 = vld [vmem:[%s3227_s3 + $0x1d0] sm:$0xff]  }
  0x41   : > { %342 = vst [vmem:[#allocation2 + $0x51] sm:$0xff] %v2843_v1  ;;  %343 = vst [vmem:[#allocation2 + $0x61] sm:$0xff] %v2845_v2  ;;  %2422 = vmatprep.mubr.bf16.mxu1 %v535_v5  ;;  %v2887_v17 = vpack.c.bf16 %v2847_v3, %v2845_v2  ;;  %v2659_v5 = vld [vmem:[%s3227_s3 + $0x128] sm:$0xff]   ;;  %v2679_v1 = vld [vmem:[%s3227_s3 + $0x198] sm:$0xff]  }
  0x42   : > { %344 = vst [vmem:[#allocation2 + $0x71] sm:$0xff] %v2847_v3  ;;  %345 = vst [vmem:[#allocation2 + $0x81] sm:$0xff] %v2849_v4  ;;  %2423 = vmatmul.mubr.bf16.vlgmr.msra.gmra.mxu1 %v2857_v6  ;;  %v2684_v2 = vld [vmem:[%s3227_s3 + $0x1c8] sm:$0xff]   ;;  %v2681_v3 = vld [vmem:[%s3227_s3 + $0x190] sm:$0xff]  }
  0x43   : > { %2455 = vmatpush3.bf16.msra.mxu1 %v2828_v28  ;;  %2426 = vmatprep.mubr.bf16.mxu1 %v2868_v9 }
  0x44   : > { %2456 = vmatprep.subr.bf16.mxu1 %v2642_v8 }
  0x46   : > { %v355_v14 = vld [vmem:[#allocation2 + $0x10] sm:$0xff]  ;;  %v356_v15 = vld [vmem:[#allocation2 + $0x20] sm:$0xff] }
  0x47   : > { %v2883_v16 = vld [vmem:[#allocation2 + $0x30] sm:$0xff]  ;;  %v370_v18 = vpack.c.bf16 %v355_v14, %v354_v12  ;;  %2457 = vmatpush3.bf16.msra.mxu1 %v2642_v8  ;;  %v358_v20 = vld [vmem:[#allocation2 + $0x40] sm:$0xff]  ;;  %v867_v25 = vpack.c.bf16 %v356_v15, %v355_v14  ;;  %v2664_v8 = vld [vmem:[%s3227_s3 + $0x158] sm:$0xff]  }
  0x48   : > { %v2890_v19 = vpack.c.bf16 %v2883_v16, %v356_v15  ;;  %v2892_v21 = vld [vmem:[#allocation2 + $0x50] sm:$0xff]  ;;  %2458 = vmatprep.subr.bf16.mxu1 %v2644_v13  ;;  %v360_v28 = vld [vmem:[#allocation2 + $0x60] sm:$0xff]  ;;  %v868_v42 = vpack.c.bf16 %v358_v20, %v2883_v16 }
  0x49   : > { %2398 = vmatprep.mubr.bf16.mxu0 %v370_v18  ;;  %v2901_v24 = vpack.c.bf16 %v2892_v21, %v358_v20  ;;  %v2909_v29 = vld [vmem:[#allocation2 + $0x70] sm:$0xff]  ;;  %v687_v45 = vld [vmem:[#allocation2 + $0x22] sm:$0xff]  ;;  %v869_v46 = vpack.c.bf16 %v360_v28, %v2892_v21  ;;  %v2672_v21 = vld [vmem:[%s3227_s3 + $0x1f8] sm:$0xff]  }
  0x4a   : > { %2399 = vmatmul.mubr.bf16.vlgmr.msra.gmra.mxu0 %v2890_v19  ;;  %2427 = vmatmul.mubr.bf16.gmra.mxu1 %v2887_v17  ;;  %v2916_v32 = vpack.c.bf16 %v2909_v29, %v360_v28  ;;  %v2918_v33 = vld [vmem:[#allocation2 + $0x12] sm:$0xff]  ;;  %v2959_v49 = vld [vmem:[#allocation2 + $0x80] sm:$0xff]  ;;  %v2667_v20 = vld [vmem:[%s3227_s3 + $0x108] sm:$0xff]  }
  0x4b   : > { %2431 = vmatpush3.bf16.msra.mxu0 %v2823_v27  ;;  %2459 = vmatpush3.bf16.msra.mxu1 %v2644_v13  ;;  %v2645_v27 = vld [vmem:[%s3227_s3 + $0xa0] sm:$0xff]   ;;  %v701_v35 = vpack.c.bf16 %v2918_v33, %v685_v31  ;;  %v2954_v47 = vld [vmem:[#allocation2 + $0x32] sm:$0xff]  ;;  %v870_v54 = vpack.c.bf16 %v2959_v49, %v2909_v29  ;;  %v1199_v58 = vpack.c.bf16 %v687_v45, %v2918_v33  ;;  %v2676_v29 = vld [vmem:[%s3227_s3 + $0x1e8] sm:$0xff]  }
  0x4c   : > { %2432 = vmatprep.subr.bf16.mxu0 %v2641_v22  ;;  %2460 = vmatprep.subr.bf16.mxu1 %v2646_v23  ;;  %v2961_v50 = vld [vmem:[#allocation2 + $0x42] sm:$0xff]  ;;  %v2963_v51 = vld [vmem:[#allocation2 + $0x52] sm:$0xff]  ;;  %v2969_v53 = vpack.c.bf16 %v2954_v47, %v687_v45  ;;  %v1033_v13 = vpack.c.bf16 %v2837_v62, %v2835_v61 }
  0x4d   : > { %2402 = vmatprep.mubr.bf16.mxu0 %v2901_v24  ;;  %2470 = vmatprep.mubr.bf16.mxu1 %v867_v25  ;;  %v2975_v55 = vpack.c.bf16 %v2963_v51, %v2961_v50  ;;  %v691_v59 = vld [vmem:[#allocation2 + $0x62] sm:$0xff]  ;;  %v2986_v60 = vld [vmem:[#allocation2 + $0x72] sm:$0xff] }
  0x4e   : > { %v2995_v12 = vpack.c.bf16 %v2986_v60, %v691_v59  ;;  %v2661_v14 = vld [vmem:[%s3227_s3 + $0x120] sm:$0xff]   ;;  %v2666_v15 = vld [vmem:[%s3227_s3 + $0x150] sm:$0xff]   ;;  %v2663_v61 = vld [vmem:[%s3227_s3 + $0x118] sm:$0xff]  }
  0x4f   : > { %2433 = vmatpush3.bf16.msra.mxu0 %v2641_v22  ;;  %2461 = vmatpush3.bf16.msra.mxu1 %v2646_v23  ;;  %v2668_v62 = vld [vmem:[%s3227_s3 + $0x148] sm:$0xff]   ;;  %v2665_v16 = vld [vmem:[%s3227_s3 + $0x110] sm:$0xff]   ;;  %v2670_v18 = vld [vmem:[%s3227_s3 + $0x140] sm:$0xff]   ;;  %v1200_v22 = vpack.c.bf16 %v2961_v50, %v2954_v47 }
  0x50   : > { %2434 = vmatprep.subr.bf16.mxu0 %v2643_v26  ;;  %2462 = vmatprep.subr.bf16.mxu1 %v2648_v30  ;;  %v2669_v23 = vld [vmem:[%s3227_s3 + $0x100] sm:$0xff]   ;;  %v2674_v25 = vld [vmem:[%s3227_s3 + $0x1f0] sm:$0xff]   ;;  %v2671_v28 = vld [vmem:[%s3227_s3 + $0x1b8] sm:$0xff]  }
  0x51   : > { %v2673_v31 = vld [vmem:[%s3227_s3 + $0x1b0] sm:$0xff]  }
  0x52   : > { %2403 = vmatmul.mubr.bf16.gmra.mxu0 %v2916_v32 }
  0x53   : > { %2435 = vmatpush3.bf16.msra.mxu0 %v2643_v26  ;;  %2463 = vmatpush3.bf16.msra.mxu1 %v2648_v30  ;;  %v1201_v26 = vpack.c.bf16 %v691_v59, %v2963_v51  ;;  %v3039_v30 = vld [vmem:[#allocation2 + $0x82] sm:$0xff] }
  0x54   : > { %2436 = vmatprep.subr.bf16.mxu0 %v2645_v27  ;;  %2464 = vmatprep.subr.bf16.mxu1 %v2650_v34  ;;  %v1202_v33 = vpack.c.bf16 %v3039_v30, %v2986_v60 }
  0x55   : > { %2446 = vmatprep.mubr.bf16.mxu0 %v701_v35  ;;  %v2680_v35 = vld [vmem:[%s3227_s3 + $0x1d8] sm:$0xff]  }
  0x57   : > { %2437 = vmatpush3.bf16.msra.mxu0 %v2645_v27  ;;  %2465 = vmatpush3.bf16.msra.mxu1 %v2650_v34  ;;  %v2678_v27 = vld [vmem:[%s3227_s3 + $0x1e0] sm:$0xff]   ;;  %v2675_v34 = vld [vmem:[%s3227_s3 + $0x1a8] sm:$0xff]  }
  0x58   : > { %2438 = vmatprep.subr.bf16.mxu0 %v2647_v36  ;;  %2466 = vmatprep.subr.bf16.mxu1 %v2652_v37 }
  0x5b   : > { %2439 = vmatpush3.bf16.msra.mxu0 %v2647_v36  ;;  %2467 = vmatpush3.bf16.msra.mxu1 %v2652_v37  ;;  %v2689_v36 = vld [vmem:[%s3227_s3 + $0x228] sm:$0xff]   ;;  %v1523_v37 = vld [vmem:[#allocation2 + $0x91] sm:$0xff] }
  0x5c   : > { %2440 = vmatprep.subr.bf16.mxu0 %v2649_v38  ;;  %2468 = vmatprep.subr.bf16.mxu1 %v2654_v39 }
  0x5f   : > { %2441 = vmatpush3.bf16.msra.mxu0 %v2649_v38  ;;  %2469 = vmatpush3.bf16.msra.mxu1 %v2654_v39  ;;  %v1535_v38 = vpack.c.bf16 %v1523_v37, %v2849_v4  ;;  %v1357_v39 = vld [vmem:[#allocation2 + $0x90] sm:$0xff] }
  0x60   : > { %2442 = vmatprep.subr.bf16.mxu0 %v2651_v40  ;;  %2502 = vmatprep.subr.bf16.mxu1 %v2656_v41  ;;  %v1369_v4 = vpack.c.bf16 %v1357_v39, %v2959_v49 }
  0x62   : > { %2471 = vmatmul.mubr.bf16.vlgmr.msra.gmra.mxu1 %v868_v42 }
  0x63   : > { %2443 = vmatpush3.bf16.msra.mxu0 %v2651_v40  ;;  %2503 = vmatpush3.bf16.msra.mxu1 %v2656_v41  ;;  %v2694_v40 = vld [vmem:[%s3227_s3 + $0x200] sm:$0xff]   ;;  %v1689_v41 = vld [vmem:[#allocation2 + $0x92] sm:$0xff] }
  0x64   : > { %2444 = vmatprep.subr.bf16.mxu0 %v2653_v43  ;;  %2504 = vmatprep.subr.bf16.mxu1 %v2658_v44  ;;  %v1701_v42 = vpack.c.bf16 %v1689_v41, %v3039_v30 }
  0x65   : > { %2474 = vmatprep.mubr.bf16.mxu1 %v869_v46 }
  0x67   : > { %2445 = vmatpush3.bf16.msra.mxu0 %v2653_v43  ;;  %2505 = vmatpush3.bf16.msra.mxu1 %v2658_v44 }
  0x68   : > { %2478 = vmatprep.subr.bf16.mxu0 %v2655_v48  ;;  %2506 = vmatprep.subr.bf16.mxu1 %v2660_v52 }
  0x6a   : > { %2447 = vmatmul.mubr.bf16.vlgmr.msra.gmra.mxu0 %v2969_v53  ;;  %2475 = vmatmul.mubr.bf16.gmra.mxu1 %v870_v54 }
  0x6b   : > { %2479 = vmatpush3.bf16.msra.mxu0 %v2655_v48  ;;  %2450 = vmatprep.mubr.bf16.mxu0 %v2975_v55 }
  0x6c   : > { %2480 = vmatprep.subr.bf16.mxu0 %v2657_v56  ;;  %2507 = vmatpush3.bf16.msra.mxu1 %v2660_v52 }
  0x6d   : > { %2508 = vmatprep.subr.bf16.mxu1 %v2662_v57  ;;  %2518 = vmatprep.mubr.bf16.mxu1 %v1199_v58 }
  0x6f   : > { %2481 = vmatpush3.bf16.msra.mxu0 %v2657_v56 }
  0x70   : > { %2482 = vmatprep.subr.bf16.mxu0 %v2659_v5  ;;  %2509 = vmatpush3.bf16.msra.mxu1 %v2662_v57 }
  0x71   : > { %2510 = vmatprep.subr.bf16.mxu1 %v2664_v8 }
  0x72   : > { %2451 = vmatmul.mubr.bf16.gmra.mxu0 %v2995_v12 }
  0x73   : > { %2483 = vmatpush3.bf16.msra.mxu0 %v2659_v5  ;;  %2494 = vmatprep.mubr.bf16.mxu0 %v1033_v13 }
  0x74   : > { %2484 = vmatprep.subr.bf16.mxu0 %v2661_v14  ;;  %2511 = vmatpush3.bf16.msra.mxu1 %v2664_v8 }
  0x75   : > { %2512 = vmatprep.subr.bf16.mxu1 %v2666_v15 }
  0x77   : > { %2485 = vmatpush3.bf16.msra.mxu0 %v2661_v14 }
  0x78   : > { %2486 = vmatprep.subr.bf16.mxu0 %v2663_v61  ;;  %2513 = vmatpush3.bf16.msra.mxu1 %v2666_v15 }
  0x79   : > { %2514 = vmatprep.subr.bf16.mxu1 %v2668_v62 }
  0x7b   : > { %2487 = vmatpush3.bf16.msra.mxu0 %v2663_v61 }
  0x7c   : > { %2488 = vmatprep.subr.bf16.mxu0 %v2665_v16  ;;  %2515 = vmatpush3.bf16.msra.mxu1 %v2668_v62 }
  0x7d   : > { %2516 = vmatprep.subr.bf16.mxu1 %v2670_v18 }
  0x7f   : > { %2489 = vmatpush3.bf16.msra.mxu0 %v2665_v16 }
  0x80   : > { %2490 = vmatprep.subr.bf16.mxu0 %v2667_v20  ;;  %2517 = vmatpush3.bf16.msra.mxu1 %v2670_v18 }
  0x81   : > { %2550 = vmatprep.subr.bf16.mxu1 %v2672_v21 }
  0x83   : > { %2491 = vmatpush3.bf16.msra.mxu0 %v2667_v20  ;;  %2519 = vmatmul.mubr.bf16.vlgmr.msra.gmra.mxu1 %v1200_v22 }
  0x84   : > { %2492 = vmatprep.subr.bf16.mxu0 %v2669_v23  ;;  %2551 = vmatpush3.bf16.msra.mxu1 %v2672_v21 }
  0x85   : > { %2552 = vmatprep.subr.bf16.mxu1 %v2674_v25  ;;  %2522 = vmatprep.mubr.bf16.mxu1 %v1201_v26 }
  0x87   : > { %2493 = vmatpush3.bf16.msra.mxu0 %v2669_v23 }
  0x88   : > { %2526 = vmatprep.subr.bf16.mxu0 %v2671_v28  ;;  %2553 = vmatpush3.bf16.msra.mxu1 %v2674_v25 }
  0x89   : > { %2554 = vmatprep.subr.bf16.mxu1 %v2676_v29 }
  0x8a   : > { %2495 = vmatmul.mubr.bf16.vlgmr.msra.gmra.mxu0 %v1034_v7  ;;  %v2683_v7 = vld [vmem:[%s3227_s3 + $0x188] sm:$0xff]  }
  0x8b   : > { %2527 = vmatpush3.bf16.msra.mxu0 %v2671_v28  ;;  %2498 = vmatprep.mubr.bf16.mxu0 %v1035_v10  ;;  %v2687_v10 = vld [vmem:[%s3227_s3 + $0x238] sm:$0xff]  }
  0x8c   : > { %2528 = vmatprep.subr.bf16.mxu0 %v2673_v31  ;;  %2555 = vmatpush3.bf16.msra.mxu1 %v2676_v29 }
  0x8d   : > { %2523 = vmatmul.mubr.bf16.gmra.mxu1 %v1202_v33  ;;  %2556 = vmatprep.subr.bf16.mxu1 %v2678_v27 }
  0x8e   : > { %2566 = vmatprep.mubr.bf16.mxu1 %v2857_v6  ;;  %v2686_v6 = vld [vmem:[%s3227_s3 + $0x1c0] sm:$0xff]  }
  0x8f   : > { %2529 = vmatpush3.bf16.msra.mxu0 %v2673_v31 }
  0x90   : > { %2530 = vmatprep.subr.bf16.mxu0 %v2675_v34  ;;  %2557 = vmatpush3.bf16.msra.mxu1 %v2678_v27 }
  0x91   : > { %2558 = vmatprep.subr.bf16.mxu1 %v2680_v35 }
  0x92   : > { %2499 = vmatmul.mubr.bf16.gmra.mxu0 %v1036_v11  ;;  %v2685_v11 = vld [vmem:[%s3227_s3 + $0x180] sm:$0xff]  }
  0x93   : > { %2531 = vmatpush3.bf16.msra.mxu0 %v2675_v34  ;;  %2542 = vmatprep.mubr.bf16.mxu0 %v2890_v19  ;;  %v2688_v19 = vld [vmem:[%s3227_s3 + $0x230] sm:$0xff]  }
  0x94   : > { %2532 = vmatprep.subr.bf16.mxu0 %v2677_v63  ;;  %2559 = vmatpush3.bf16.msra.mxu1 %v2680_v35 }
  0x95   : > { %2560 = vmatprep.subr.bf16.mxu1 %v2682_v0 }
  0x97   : > { %2533 = vmatpush3.bf16.msra.mxu0 %v2677_v63 }
  0x98   : > { %2534 = vmatprep.subr.bf16.mxu0 %v2679_v1  ;;  %2561 = vmatpush3.bf16.msra.mxu1 %v2682_v0 }
  0x99   : > { %2562 = vmatprep.subr.bf16.mxu1 %v2684_v2 }
  0x9b   : > { %2535 = vmatpush3.bf16.msra.mxu0 %v2679_v1 }
  0x9c   : > { %2536 = vmatprep.subr.bf16.mxu0 %v2681_v3  ;;  %2563 = vmatpush3.bf16.msra.mxu1 %v2684_v2 }
  0x9d   : > { %2564 = vmatprep.subr.bf16.mxu1 %v2686_v6 }
  0x9f   : > { %2537 = vmatpush3.bf16.msra.mxu0 %v2681_v3 }
  0xa0   : > { %2538 = vmatprep.subr.bf16.mxu0 %v2683_v7  ;;  %2565 = vmatpush3.bf16.msra.mxu1 %v2686_v6 }
  0xa1   : > { %2598 = vmatprep.subr.bf16.mxu1 %v2687_v10 }
  0xa3   : > { %2539 = vmatpush3.bf16.msra.mxu0 %v2683_v7  ;;  %2567 = vmatmul.mubr.bf16.vlgmr.msra.gmra.mxu1 %v2868_v9  ;;  %v2690_v9 = vld [vmem:[%s3227_s3 + $0x220] sm:$0xff]  }
  0xa4   : > { %2540 = vmatprep.subr.bf16.mxu0 %v2685_v11  ;;  %2606 = vmatpush3.bf16.msra.mxu1 %v2687_v10 }
  0xa5   : > { %2599 = vmatprep.subr.bf16.mxu1 %v2688_v19  ;;  %2570 = vmatprep.mubr.bf16.mxu1 %v2887_v17  ;;  %v2691_v17 = vld [vmem:[%s3227_s3 + $0x218] sm:$0xff]  }
  0xa7   : > { %2541 = vmatpush3.bf16.msra.mxu0 %v2685_v11 }
  0xa8   : > { %2574 = vmatprep.subr.bf16.mxu0 %v2687_v10  ;;  %2607 = vmatpush3.bf16.msra.mxu1 %v2688_v19 }
  0xa9   : > { %2600 = vmatprep.subr.bf16.mxu1 %v2689_v36 }
  0xaa   : > { %2543 = vmatmul.mubr.bf16.vlgmr.msra.gmra.mxu0 %v2901_v24  ;;  %v2692_v24 = vld [vmem:[%s3227_s3 + $0x210] sm:$0xff]  }
  0xab   : > { %2575 = vmatpush3.bf16.msra.mxu0 %v2687_v10  ;;  %2546 = vmatprep.mubr.bf16.mxu0 %v2916_v32  ;;  %v2693_v32 = vld [vmem:[%s3227_s3 + $0x208] sm:$0xff]  }
  0xac   : > { %2576 = vmatprep.subr.bf16.mxu0 %v2688_v19  ;;  %2608 = vmatpush3.bf16.msra.mxu1 %v2689_v36 }
  0xad   : > { %2571 = vmatmul.mubr.bf16.gmra.mxu1 %v1535_v38  ;;  %2601 = vmatprep.subr.bf16.mxu1 %v2690_v9 }
  0xae   : > { %2594 = vmatprep.mubr.bf16.mxu1 %v2995_v12 }
  0xaf   : > { %2577 = vmatpush3.bf16.msra.mxu0 %v2688_v19 }
  0xb0   : > { %2578 = vmatprep.subr.bf16.mxu0 %v2689_v36  ;;  %2609 = vmatpush3.bf16.msra.mxu1 %v2690_v9 }
  0xb1   : > { %2602 = vmatprep.subr.bf16.mxu1 %v2691_v17 }
  0xb2   : > { %2547 = vmatmul.mubr.bf16.gmra.mxu0 %v1369_v4 }
  0xb3   : > { %2579 = vmatpush3.bf16.msra.mxu0 %v2689_v36  ;;  %2590 = vmatprep.mubr.bf16.mxu0 %v2969_v53 }
  0xb4   : > { %2580 = vmatprep.subr.bf16.mxu0 %v2690_v9  ;;  %2610 = vmatpush3.bf16.msra.mxu1 %v2691_v17 }
  0xb5   : > { %2603 = vmatprep.subr.bf16.mxu1 %v2692_v24 }
  0xb7   : > { %2581 = vmatpush3.bf16.msra.mxu0 %v2690_v9 }
  0xb8   : > { %2582 = vmatprep.subr.bf16.mxu0 %v2691_v17  ;;  %2611 = vmatpush3.bf16.msra.mxu1 %v2692_v24 }
  0xb9   : > { %2604 = vmatprep.subr.bf16.mxu1 %v2693_v32 }
  0xbb   : > { %2583 = vmatpush3.bf16.msra.mxu0 %v2691_v17 }
  0xbc   : > { %2584 = vmatprep.subr.bf16.mxu0 %v2692_v24  ;;  %2612 = vmatpush3.bf16.msra.mxu1 %v2693_v32 }
  0xbd   : > { %2605 = vmatprep.subr.bf16.mxu1 %v2694_v40 }
  0xbf   : > { %2585 = vmatpush3.bf16.msra.mxu0 %v2692_v24 }
  0xc0   : > { %2586 = vmatprep.subr.bf16.mxu0 %v2693_v32  ;;  %2613 = vmatpush3.bf16.msra.mxu1 %v2694_v40 }
  0xc3   : > { %2587 = vmatpush3.bf16.msra.mxu0 %v2693_v32  ;;  %2595 = vmatmul.mubr.bf16.vlgmr.msra.gmra.mxu1 %v1701_v42 }
  0xc4   : > { %2588 = vmatprep.subr.bf16.mxu0 %v2694_v40 }
  0xc7   : > { %2589 = vmatpush3.bf16.msra.mxu0 %v2694_v40 }
  0xca   : > { %2591 = vmatmul.mubr.bf16.vlgmr.msra.gmra.mxu0 %v2975_v55 }
 0x102   : > { %v3124_v43 = vpop.f32.mrf.mxu1 }
 0x104   : > { %v3126_v44 = vpop.f32.mrf.mxu1 }
 0x106   : > { %v3130_v46 = vpop.f32.mrf.mxu1 }
 0x108   : > { %v3134_v48 = vpop.f32.mrf.mxu1 }
 0x10a   : > { %v3128_v45 = vpop.f32.mrf.mxu0  ;;  %v2428_v50 = vpop.f32.mrf.mxu1 }
 0x10c   : > { %v3132_v47 = vpop.f32.mrf.mxu0  ;;  %v654_v52 = vpop.f32.mrf.mxu1 }
 0x10e   : > { %v3136_v49 = vpop.f32.mrf.mxu0  ;;  %v2429_v54 = vpop.f32.mrf.mxu1 }
 0x110   : > { %v3138_v51 = vpop.f32.mrf.mxu0  ;;  %v657_v56 = vpop.f32.mrf.mxu1 }
 0x112   : > { %v2404_v53 = vpop.f32.mrf.mxu0 }
 0x113   : > { %v675_v39 = vadd.f32 %v2428_v50, %v2404_v53  ;;  %v672_v50 = vadd.f32 %v3130_v46, %v3136_v49 }
 0x114   : > { %v488_v55 = vpop.f32.mrf.mxu0 }
 0x115   : > { %v673_v32 = vadd.f32 %v654_v52, %v488_v55 }
 0x116   : > { %v2405_v57 = vpop.f32.mrf.mxu0 }
 0x117   : > { %v676_v17 = vadd.f32 %v2429_v54, %v2405_v57 }
 0x118   : > { %v491_v59 = vpop.f32.mrf.mxu0 }
 0x119   : > { %v674_v40 = vadd.f32 %v657_v56, %v491_v59  ;;  %v670_v56 = vadd.f32 %v3134_v48, %v3138_v51 }
 0x122   : > { %v3140_v58 = vpop.f32.mrf.mxu1 }
 0x124   : > { %v3142_v60 = vpop.f32.mrf.mxu1 }
 0x126   : > { %v3144_v8 = vpop.f32.mrf.mxu1 }
 0x128   : > { %v3146_v13 = vpop.f32.mrf.mxu1 }
 0x12a   : > { %v2448_v5 = vpop.f32.mrf.mxu0  ;;  %v2476_v15 = vpop.f32.mrf.mxu1 }
 0x12c   : > { %v804_v12 = vpop.f32.mrf.mxu0  ;;  %v986_v62 = vpop.f32.mrf.mxu1 }
 0x12e   : > { %v2449_v14 = vpop.f32.mrf.mxu0  ;;  %v2477_v18 = vpop.f32.mrf.mxu1 }
 0x130   : > { %v807_v61 = vpop.f32.mrf.mxu0  ;;  %v989_v21 = vpop.f32.mrf.mxu1 }
 0x132   : > { %v2452_v16 = vpop.f32.mrf.mxu0 }
 0x133   : > { %v841_v41 = vadd.f32 %v2452_v16, %v675_v39 }
 0x134   : > { %v820_v20 = vpop.f32.mrf.mxu0 }
 0x136   : > { %v2453_v22 = vpop.f32.mrf.mxu0 }
 0x137   : > { %v842_v42 = vadd.f32 %v2453_v22, %v676_v17 }
 0x138   : > { %v823_v25 = vpop.f32.mrf.mxu0 }
 0x143   : > { %v3148_v23 = vpop.f32.mrf.mxu1 }
 0x145   : > { %v3150_v26 = vpop.f32.mrf.mxu1 }
 0x147   : > { %v3154_v29 = vpop.f32.mrf.mxu1 }
 0x149   : > { %v3158_v31 = vpop.f32.mrf.mxu1 }
 0x14a   : > { %v3152_v28 = vpop.f32.mrf.mxu0  ;;  %3231 = vst [vmem:[#allocation4_spill] sm:$0xff] %v3158_v31  ;;  %v1007_v31 = vadd.f32 %v2476_v15, %v841_v41  ;;  %v838_v15 = vadd.f32 %v2449_v14, %v672_v50 }
 0x14c   : > { %v3156_v30 = vpop.f32.mrf.mxu0  ;;  %v1004_v49 = vadd.f32 %v3144_v8, %v838_v15 }
 0x14d   : > { %v2524_v27 = vpop.f32.mrf.mxu1 }
 0x14e   : > { %v2497_v33 = vpop.f32.mrf.mxu0 }
 0x14f   : > { %v1318_v35 = vpop.f32.mrf.mxu1 }
 0x150   : > { %v3160_v34 = vpop.f32.mrf.mxu0 }
 0x151   : > { %v2525_v0 = vpop.f32.mrf.mxu1 }
 0x152   : > { %v2500_v63 = vpop.f32.mrf.mxu0 }
 0x153   : > { %v1321_v2 = vpop.f32.mrf.mxu1  ;;  %v1173_v54 = vadd.f32 %v2500_v63, %v1007_v31  ;;  %v1170_v31 = vadd.f32 %v2497_v33, %v1004_v49 }
 0x154   : > { %v1152_v1 = vpop.f32.mrf.mxu0 }
 0x155   : > { %v1339_v22 = vadd.f32 %v2524_v27, %v1173_v54 }
 0x156   : > { %v2501_v3 = vpop.f32.mrf.mxu0 }
 0x158   : > { %v1155_v7 = vpop.f32.mrf.mxu0 }
 0x163   : > { %v3162_v6 = vpop.f32.mrf.mxu1 }
 0x164   : > { %3232 = vst [vmem:[#allocation5_spill] sm:$0xff] %v3162_v6  ;;  %v840_v6 = vadd.f32 %v823_v25, %v674_v40 }
 0x165   : > { %v3164_v10 = vpop.f32.mrf.mxu1 }
 0x166   : > { %3233 = vst [vmem:[#allocation6_spill] sm:$0xff] %v3164_v10  ;;  %v839_v10 = vadd.f32 %v820_v20, %v673_v32  ;;  %v1006_v52 = vadd.f32 %v989_v21, %v840_v6 }
 0x167   : > { %v3170_v36 = vpop.f32.mrf.mxu1 }
 0x168   : > { %3236 = vst [vmem:[#allocation9_spill] sm:$0xff] %v3170_v36  ;;  %v1008_v36 = vadd.f32 %v2477_v18, %v842_v42  ;;  %v1005_v53 = vadd.f32 %v986_v62, %v839_v10 }
 0x169   : > { %v3176_v9 = vpop.f32.mrf.mxu1 }
 0x16a   : > { %v3166_v11 = vpop.f32.mrf.mxu0  ;;  %3238 = vst [vmem:[#allocation11_spill] sm:$0xff] %v3176_v9  ;;  %v669_v9 = vadd.f32 %v3126_v44, %v3132_v47  ;;  %v1174_v55 = vadd.f32 %v2501_v3, %v1008_v36  ;;  %v1171_v20 = vadd.f32 %v1152_v1, %v1005_v53  ;;  %v1336_v3 = vadd.f32 %v3154_v29, %v1170_v31 }
 0x16b   : > { %3234 = vst [vmem:[#allocation7_spill] sm:$0xff] %v3166_v11  ;;  %v3243_v40 = vld [vmem:[#allocation5_spill] sm:$0xff] }
 0x16c   : > { %v3168_v19 = vpop.f32.mrf.mxu0  ;;  %v835_v59 = vadd.f32 %v804_v12, %v669_v9  ;;  %v1340_v44 = vadd.f32 %v2525_v0, %v1174_v55  ;;  %v1337_v25 = vadd.f32 %v1318_v35, %v1171_v20 }
 0x16d   : > { %3235 = vst [vmem:[#allocation8_spill] sm:$0xff] %v3168_v19  ;;  %v2572_v24 = vpop.f32.mrf.mxu1  ;;  %v3244_v42 = vld [vmem:[#allocation6_spill] sm:$0xff] }
 0x16e   : > { %v3172_v37 = vpop.f32.mrf.mxu0  ;;  %v1001_v46 = vadd.f32 %v3142_v60, %v835_v59 }
 0x16f   : > { %3237 = vst [vmem:[#allocation10_spill] sm:$0xff] %v3172_v37  ;;  %v1651_v19 = vpop.f32.mrf.mxu1  ;;  %v671_v37 = vadd.f32 %v3124_v43, %v3128_v45  ;;  %v1172_v43 = vadd.f32 %v1155_v7, %v1006_v52  ;;  %v836_v45 = vadd.f32 %v807_v61, %v670_v56  ;;  %v3239_v7 = vld [vmem:[#allocation4_spill] sm:$0xff]  ;;  %v3245_v53 = vld [vmem:[#allocation9_spill] sm:$0xff] }
 0x170   : > { %v3174_v38 = vpop.f32.mrf.mxu0  ;;  %v1167_v61 = vadd.f32 %v3156_v30, %v1001_v46 }
 0x171   : > { %v837_v57 = vadd.f32 %v2448_v5, %v671_v37  ;;  %v2573_v18 = vpop.f32.mrf.mxu1  ;;  %v1338_v48 = vadd.f32 %v1321_v2, %v1172_v43  ;;  %v1002_v12 = vadd.f32 %v3146_v13, %v836_v45  ;;  %v3246_v55 = vld [vmem:[#allocation11_spill] sm:$0xff] }
 0x172   : > { %v2548_v4 = vpop.f32.mrf.mxu0  ;;  %v1333_v2 = vadd.f32 %v3150_v26, %v1167_v61 }
 0x173   : > { %v1003_v47 = vadd.f32 %v3140_v58, %v837_v57  ;;  %v1654_v21 = vpop.f32.mrf.mxu1  ;;  %v1506_v51 = vadd.f32 %v2548_v4, %v1339_v22  ;;  %v1168_v60 = vadd.f32 %v3160_v34, %v1002_v12 }
 0x174   : > { %v1485_v11 = vpop.f32.mrf.mxu0  ;;  %v3241_v34 = vld [vmem:[#allocation8_spill] sm:$0xff] }
 0x175   : > { %v1169_v14 = vadd.f32 %v3152_v28, %v1003_v47  ;;  %v1504_v63 = vadd.f32 %v1485_v11, %v1337_v25  ;;  %v1672_v8 = vadd.f32 %v2572_v24, %v1506_v51  ;;  %v1334_v10 = vadd.f32 %v3239_v7, %v1168_v60  ;;  %v3240_v11 = vld [vmem:[#allocation7_spill] sm:$0xff] }
 0x176   : > { %v2549_v16 = vpop.f32.mrf.mxu0  ;;  %v1500_v37 = vadd.f32 %v3241_v34, %v1333_v2  ;;  %v3242_v9 = vld [vmem:[#allocation10_spill] sm:$0xff] }
 0x177   : > { %v1507_v5 = vadd.f32 %v2549_v16, %v1340_v44  ;;  %v1335_v35 = vadd.f32 %v3148_v23, %v1169_v14  ;;  %v1670_v28 = vadd.f32 %v1651_v19, %v1504_v63  ;;  %v1503_v39 = vadd.f32 %v3242_v9, %v1336_v3 }
 0x178   : > { %v1488_v62 = vpop.f32.mrf.mxu0  ;;  %v1501_v24 = vadd.f32 %v3174_v38, %v1334_v10  ;;  %v1666_v50 = vadd.f32 %v3244_v42, %v1500_v37  ;;  %v1896_v10 = vld [vmem:[%s3229_s5] sm:$0x1] }
 0x179   : > { %v1505_v58 = vadd.f32 %v1488_v62, %v1338_v48  ;;  %v1673_v1 = vadd.f32 %v2573_v18, %v1507_v5  ;;  %v1502_v36 = vadd.f32 %v3240_v11, %v1335_v35  ;;  %v1669_v52 = vadd.f32 %v3245_v53, %v1503_v39 }
 0x17a   : > { %v1667_v56 = vadd.f32 %v3246_v55, %v1501_v24 }
 0x17b   : > { %v1671_v6 = vadd.f32 %v1654_v21, %v1505_v58  ;;  %v1668_v41 = vadd.f32 %v3243_v40, %v1502_v36 }
 0x183   : > { %v2596_v27 = vpop.f32.mrf.mxu1 }
 0x184   : > { %v1838_v30 = vadd.f32 %v2596_v27, %v1672_v8 }
 0x185   : > { %v1817_v0 = vpop.f32.mrf.mxu1 }
 0x186   : > { %v1836_v26 = vadd.f32 %v1817_v0, %v1670_v28  ;;  %v1919_v61 = vmul.f32 %v1838_v30, %v1838_v30 }
 0x187   : > { %v2597_v13 = vpop.f32.mrf.mxu1 }
 0x188   : > { %v1839_v33 = vadd.f32 %v2597_v13, %v1673_v1  ;;  %v1917_v25 = vmul.f32 %v1836_v26, %v1836_v26 }
 0x189   : > { %v1820_v23 = vpop.f32.mrf.mxu1 }
 0x18a   : > { %v2592_v17 = vpop.f32.mrf.mxu0  ;;  %v2266_v4 = vpack.c.bf16 %v1839_v33, %v1838_v30  ;;  %v1837_v29 = vadd.f32 %v1820_v23, %v1671_v6  ;;  %v1920_v63 = vmul.f32 %v1839_v33, %v1839_v33 }
 0x18b   : > { %v1834_v57 = vadd.f32 %v2592_v17, %v1668_v41 }
 0x18c   : > { %v1801_v19 = vpop.f32.mrf.mxu0  ;;  %2273 = vst [vmem:[%s2757_s30 + $0x18] sm:$0xff] %v2266_v4   ;;  %v2261_v32 = vpack.c.bf16 %v1837_v29, %v1836_v26  ;;  %v1918_v12 = vmul.f32 %v1837_v29, %v1837_v29 }
 0x18d   : > { %v1832_v59 = vadd.f32 %v1801_v19, %v1666_v50  ;;  %v1915_v44 = vmul.f32 %v1834_v57, %v1834_v57 }
 0x18e   : > { %v2593_v54 = vpop.f32.mrf.mxu0  ;;  %2272 = vst [vmem:[%s2757_s30 + $0x10] sm:$0xff] %v2261_v32  }
 0x18f   : > { %v1835_v15 = vadd.f32 %v2593_v54, %v1669_v52  ;;  %v1913_v20 = vmul.f32 %v1832_v59, %v1832_v59 }
 0x190   : > { %v1804_v16 = vpop.f32.mrf.mxu0 }
 0x191   : > { %v2256_v38 = vpack.c.bf16 %v1835_v15, %v1834_v57  ;;  %v1833_v18 = vadd.f32 %v1804_v16, %v1667_v56  ;;  %v1916_v49 = vmul.f32 %v1835_v15, %v1835_v15 }
 0x193   : > { %2271 = vst [vmem:[%s2757_s30 + $0x8] sm:$0xff] %v2256_v38   ;;  %v2251_v43 = vpack.c.bf16 %v1833_v18, %v1832_v59  ;;  %v1897_v45 = vadd.f32 %v1833_v18, %v1832_v59  ;;  %v1914_v22 = vmul.f32 %v1833_v18, %v1833_v18 }
 0x195   : > { %2252 = vst [vmem:[%s2757_s30] sm:$0xff] %v2251_v43   ;;  %v1898_v47 = vadd.f32 %v1897_v45, %v1834_v57  ;;  %v1921_v46 = vadd.f32 %v1914_v22, %v1913_v20 }
 0x197   : > { %v1922_v62 = vadd.f32 %v1921_v46, %v1915_v44  ;;  %v1899_v21 = vadd.f32 %v1898_v47, %v1835_v15 }
 0x199   : > { %v1900_v48 = vadd.f32 %v1899_v21, %v1836_v26  ;;  %v1923_v51 = vadd.f32 %v1922_v62, %v1916_v49 }
 0x19b   : > { %v1901_v5 = vadd.f32 %v1900_v48, %v1837_v29  ;;  %v1924_v14 = vadd.f32 %v1923_v51, %v1917_v25 }
 0x19d   : > { %v1902_v31 = vadd.f32 %v1901_v5, %v1838_v30  ;;  %v1925_v27 = vadd.f32 %v1924_v14, %v1918_v12 }
 0x19f   : > { %v1903_v58 = vadd.f32 %v1902_v31, %v1839_v33  ;;  %v1926_v60 = vadd.f32 %v1925_v27, %v1919_v61  ;;  %v1912_v33 = vld [vmem:[%s3230_s6] sm:$0x1] }
 0x1a1   : > { %v1904_v0 = vrot.slane %v1903_v58, 4  ;;  %v1927_v8 = vadd.f32 %v1926_v60, %v1920_v63 }
 0x1a3   : > { %v1905_v1 = vadd.f32 %v1904_v0, %v1903_v58  ;;  %v1928_v35 = vrot.slane %v1927_v8, 4 }
 0x1a5   : > { %v1906_v2 = vrot.slane %v1905_v1, 2  ;;  %v1929_v3 = vadd.f32 %v1928_v35, %v1927_v8 }
 0x1a7   : > { %v1907_v13 = vadd.f32 %v1906_v2, %v1905_v1  ;;  %v1930_v28 = vrot.slane %v1929_v3, 2 }
 0x1a9   : > { %v1908_v6 = vrot.slane %v1907_v13, 1  ;;  %v1931_v7 = vadd.f32 %v1930_v28, %v1929_v3 }
 0x1ab   : > { %v1909_v11 = vadd.f32 %v1908_v6, %v1907_v13  ;;  %v1932_v30 = vrot.slane %v1931_v7, 1 }
 0x1ad   : > { %v1910_v36 = vadd.f32 %v1909_v11, %v1896_v10  ;;  %v1933_v34 = vadd.f32 %v1932_v30, %v1931_v7 }
 0x1af   : > { %1911 = vst [vmem:[%s3229_s5] sm:$0x1] %v1910_v36  ;;  %v1934_v37 = vadd.f32 %v1933_v34, %v1912_v33 }
 0x1b1   : > { %1935 = vst [vmem:[%s3230_s6] sm:$0x1] %v1934_v37 }
 0x1b2 PF: > { %s17_s21 = sadd.s32 1, %s2703_s21  }
 0x1b3   : > { %p14_p5 = scmp.ge.s32.totalorder %s17_s21, 4  }
 0x1b5   :  { %16 = sbr.rel (!%p14_p5) target bundleno = 1 (0x1), region = 96 }

</bundles_post_ra>
